<compile_context>
chip_gen: v5e
topology: v5e:2x2
jax: 0.10.0
libtpu: 0.0.40
codegen_flags: <defaults>
</compile_context>

<pallas_src>
import functools

import jax
import jax.numpy as jnp
from jax.experimental import pallas as pl
from jax.experimental.pallas import tpu as pltpu

N_EMBD = 384          # n_embd from the module
BLOCK_SIZE = 256      # block_size from the module (T <= BLOCK_SIZE)


def _mha_kernel(x_ref, wqkv_ref, wp_ref, bp_ref, o_ref, *, num_heads):
    """One grid step == one block of Bb batch elements. Everything in VMEM.

    x_ref    : (Bb, T, C)   bf16 input block
    wqkv_ref : (C, 3*C)     bf16 fused QKV weight (scale folded into Q cols)
    wp_ref   : (C, C)       bf16 output-projection weight (in, out)
    bp_ref   : (1, C)       f32 output-projection bias
    o_ref    : (Bb, T, C)   f32 output block
    """
    Bb, T, C = x_ref.shape
    Dh = C // num_heads

    x2 = x_ref[...].reshape(Bb * T, C)                       # (Bb*T, C) bf16

    # Fused QKV projection: one big MXU matmul, f32 accumulation.
    qkv = jnp.dot(x2, wqkv_ref[...], preferred_element_type=jnp.float32)
    qkv = qkv.astype(jnp.bfloat16).reshape(Bb, T, 3 * C)     # (Bb, T, 3C)

    # Additive causal bias (0 on/below diagonal, -1e30 above), once per step.
    row = jax.lax.broadcasted_iota(jnp.int32, (T, T), 0)
    col = jax.lax.broadcasted_iota(jnp.int32, (T, T), 1)
    bias = jnp.where(row >= col, 0.0, -1e30).astype(jnp.float32)

    wp = wp_ref[...]                                         # (C, C) bf16
    acc = jnp.zeros((Bb * T, C), jnp.float32)

    for h in range(num_heads):                               # static unroll
        q = qkv[:, :, h * Dh:(h + 1) * Dh]                   # (Bb, T, Dh) bf16
        k = qkv[:, :, C + h * Dh:C + (h + 1) * Dh]
        v = qkv[:, :, 2 * C + h * Dh:2 * C + (h + 1) * Dh]

        # scores (scale already folded into the Q weight columns)
        s = jnp.einsum('bqd,bkd->bqk', q, k,
                       preferred_element_type=jnp.float32)   # (Bb, T, T) f32
        s = s + bias[None, :, :]
        s = s - jnp.max(s, axis=-1, keepdims=True)
        p = jnp.exp(s)
        p = p * pl.reciprocal(jnp.sum(p, axis=-1, keepdims=True), approx=True)

        hout = jnp.einsum('bqk,bkd->bqd', p.astype(jnp.bfloat16), v,
                          preferred_element_type=jnp.float32)  # (Bb, T, Dh)

        # Accumulate the output projection instead of concatenating heads.
        acc = acc + jnp.dot(hout.reshape(Bb * T, Dh).astype(jnp.bfloat16),
                            wp[h * Dh:(h + 1) * Dh, :],
                            preferred_element_type=jnp.float32)

    out = acc + bp_ref[...].astype(jnp.float32)              # (Bb*T, C)
    o_ref[...] = out.reshape(Bb, T, C).astype(o_ref.dtype)


def _choose_batch_block(B, T):
    """Smallest divisor of B whose row count Bb*T reaches ~256 (else B)."""
    best = 1
    for bb in range(1, B + 1):
        if B % bb != 0:
            continue
        best = bb
        if bb * T >= 256:
            break
    return best


@jax.jit
def multi_head_attention(x, wq, wk, wv, wp, bp):
    """x: (B, T, C) f32; wq/wk/wv: (H, C, Dh); wp: (C, C) (in,out); bp: (1, C)."""
    B, T, C = x.shape
    H, _, Dh = wq.shape
    assert H * Dh == C == N_EMBD
    assert T <= BLOCK_SIZE

    scale = C ** (-0.5)   # matches the reference: scaled by n_embd, not head_size

    # Fuse per-head weights into a single (C, 3C) matrix; fold scale into Q.
    w_q = jnp.transpose(wq * scale, (1, 0, 2)).reshape(C, C)   # cols h*Dh:(h+1)*Dh = wq[h]
    w_k = jnp.transpose(wk, (1, 0, 2)).reshape(C, C)
    w_v = jnp.transpose(wv, (1, 0, 2)).reshape(C, C)
    w_qkv = jnp.concatenate([w_q, w_k, w_v], axis=1).astype(jnp.bfloat16)  # (C, 3C)

    x_bf = x.astype(jnp.bfloat16)
    wp_bf = wp.astype(jnp.bfloat16)
    bp_f32 = bp.astype(jnp.float32)

    Bb = _choose_batch_block(B, T)
    grid = (B // Bb,)

    kernel = functools.partial(_mha_kernel, num_heads=H)

    return pl.pallas_call(
        kernel,
        out_shape=jax.ShapeDtypeStruct((B, T, C), jnp.float32),
        grid_spec=pltpu.PrefetchScalarGridSpec(
            num_scalar_prefetch=0,
            grid=grid,
            in_specs=[
                pl.BlockSpec((Bb, T, C), lambda b: (b, 0, 0)),      # x block
                pl.BlockSpec((C, 3 * C), lambda b: (0, 0)),         # fused QKV weight
                pl.BlockSpec((C, C), lambda b: (0, 0)),             # proj weight
                pl.BlockSpec((1, C), lambda b: (0, 0)),             # proj bias
            ],
            out_specs=pl.BlockSpec((Bb, T, C), lambda b: (b, 0, 0)),
        ),
        compiler_params=pltpu.CompilerParams(
            dimension_semantics=("parallel",),
        ),
    )(x_bf, w_qkv, wp_bf, bp_f32)


def _reference(x, wq, wk, wv, wp, bp):
    """Pure-JAX f32 reference mirroring the PyTorch forward (eval mode)."""
    B, T, C = x.shape
    H, _, Dh = wq.shape
    scale = C ** (-0.5)
    mask = jnp.tril(jnp.ones((T, T), dtype=bool))
    outs = []
    for h in range(H):
        q = x @ wq[h]
        k = x @ wk[h]
        v = x @ wv[h]
        wei = (q @ jnp.swapaxes(k, -2, -1)) * scale
        wei = jnp.where(mask, wei, -jnp.inf)
        wei = jax.nn.softmax(wei, axis=-1)
        outs.append(wei @ v)
    cat = jnp.concatenate(outs, axis=-1)
    return cat @ wp + bp


if __name__ == "__main__":
    # Small shapes consistent with the module: n_embd = 384 is fixed;
    # num_heads=6, head_size=64 so H * Dh == n_embd.
    B, T, C = 2, 16, N_EMBD
    H, Dh = 6, C // 6

    key = jax.random.PRNGKey(0)
    k_x, k_q, k_k, k_v, k_p, k_b = jax.random.split(key, 6)

    x = jax.random.normal(k_x, (B, T, C), dtype=jnp.float32)

    lim = 1.0 / (C ** 0.5)
    wq = jax.random.uniform(k_q, (H, C, Dh), jnp.float32, -lim, lim)
    wk = jax.random.uniform(k_k, (H, C, Dh), jnp.float32, -lim, lim)
    wv = jax.random.uniform(k_v, (H, C, Dh), jnp.float32, -lim, lim)
    wp = jax.random.uniform(k_p, (C, C), jnp.float32, -lim, lim)   # (in, out) layout
    bp = jax.random.uniform(k_b, (1, C), jnp.float32, -lim, lim)

    out = multi_head_attention(x, wq, wk, wv, wp, bp)
    out = jax.block_until_ready(out)

    ref = _reference(x, wq, wk, wv, wp, bp)
    assert out.shape == (B, T, C)
    # bf16 matmul operands (f32 accumulation) -> compare at bf16-level tolerance.
    assert jnp.allclose(out, ref, atol=2e-2, rtol=2e-2), "mismatch vs JAX reference"

    print("KERNEL_OK")
</pallas_src>

<mosaic_0001>
module attributes {stable_mosaic.version = 11 : i64} {
  func.func @_mha_kernel(%arg0: i32, %arg1: memref<2x16x384xbf16, #tpu.memory_space<vmem>>, %arg2: memref<384x1152xbf16, #tpu.memory_space<vmem>>, %arg3: memref<384x384xbf16, #tpu.memory_space<vmem>>, %arg4: memref<1x384xf32, #tpu.memory_space<vmem>>, %arg5: memref<2x16x384xf32, #tpu.memory_space<vmem>>) attributes {dimension_semantics = [#tpu.dimension_semantics<parallel>], iteration_bounds = array<i64: 1>, scalar_prefetch = 0 : i64, scratch_operands = 0 : i64, tpu.core_type = #tpu.core_type<tc>, window_params = [{transform_indices = @transform_0, window_bounds = array<i64: 2, 16, 384>}, {pipeline_mode = #tpu.pipeline_mode<synchronous>, transform_indices = @transform_1, window_bounds = array<i64: 384, 1152>}, {pipeline_mode = #tpu.pipeline_mode<synchronous>, transform_indices = @transform_2, window_bounds = array<i64: 384, 384>}, {pipeline_mode = #tpu.pipeline_mode<synchronous>, transform_indices = @transform_3, window_bounds = array<i64: 1, 384>}, {transform_indices = @transform_4, window_bounds = array<i64: 2, 16, 384>}]} {
    %c0 = arith.constant 0 : index
    %c0_0 = arith.constant 0 : index
    %c0_1 = arith.constant 0 : index
    %0 = vector.load %arg1[%c0, %c0_0, %c0_1] : memref<2x16x384xbf16, #tpu.memory_space<vmem>>, vector<2x16x384xbf16>
    %1 = vector.shape_cast %0 : vector<2x16x384xbf16> to vector<32x384xbf16>
    %c0_2 = arith.constant 0 : index
    %c0_3 = arith.constant 0 : index
    %2 = vector.load %arg2[%c0_2, %c0_3] : memref<384x1152xbf16, #tpu.memory_space<vmem>>, vector<384x1152xbf16>
    %cst = arith.constant dense<0.000000e+00> : vector<32x1152xf32>
    %3 = tpu.matmul %1, %2, %cst {dimension_numbers = #tpu.dot_dimension_numbers<[1], [0], [0], [1], [0, 0, 1, 1], [], []>} : vector<32x384xbf16>, vector<384x1152xbf16>, vector<32x1152xf32> -> vector<32x1152xf32>
    %4 = arith.truncf %3 : vector<32x1152xf32> to vector<32x1152xbf16>
    %5 = vector.shape_cast %4 : vector<32x1152xbf16> to vector<2x16x1152xbf16>
    %6 = tpu.iota {dimensions = array<i32: 0>} : vector<16x16xi32>
    %7 = tpu.iota {dimensions = array<i32: 1>} : vector<16x16xi32>
    %8 = arith.cmpi sge, %6, %7 : vector<16x16xi32>
    %cst_4 = arith.constant 0.000000e+00 : f32
    %cst_5 = arith.constant -1.000000e+30 : f32
    %9 = vector.broadcast %cst_4 : f32 to vector<16x16xf32>
    %10 = vector.broadcast %cst_5 : f32 to vector<16x16xf32>
    %11 = arith.select %8, %9, %10 : vector<16x16xi1>, vector<16x16xf32>
    %c0_6 = arith.constant 0 : index
    %c0_7 = arith.constant 0 : index
    %12 = vector.load %arg3[%c0_6, %c0_7] : memref<384x384xbf16, #tpu.memory_space<vmem>>, vector<384x384xbf16>
    %cst_8 = arith.constant 0.000000e+00 : f32
    %13 = vector.broadcast %cst_8 : f32 to vector<32x384xf32>
    %14 = vector.extract_strided_slice %5 {offsets = [0, 0, 0], sizes = [2, 16, 64], strides = [1, 1, 1]} : vector<2x16x1152xbf16> to vector<2x16x64xbf16>
    %15 = vector.extract_strided_slice %5 {offsets = [0, 0, 384], sizes = [2, 16, 64], strides = [1, 1, 1]} : vector<2x16x1152xbf16> to vector<2x16x64xbf16>
    %16 = vector.extract_strided_slice %5 {offsets = [0, 0, 768], sizes = [2, 16, 64], strides = [1, 1, 1]} : vector<2x16x1152xbf16> to vector<2x16x64xbf16>
    "tpu.trace_start"() <{level = 10 : i32, message = "bqd,bkd->bqk"}> : () -> ()
    %cst_9 = arith.constant dense<0.000000e+00> : vector<2x16x16xf32>
    %17 = tpu.matmul %14, %15, %cst_9 {dimension_numbers = #tpu.dot_dimension_numbers<[2], [2], [1], [1], [0, 0, 0, 1, 1, 1], [0], [0]>} : vector<2x16x64xbf16>, vector<2x16x64xbf16>, vector<2x16x16xf32> -> vector<2x16x16xf32>
    "tpu.trace_stop"() : () -> ()
    %18 = vector.shape_cast %11 : vector<16x16xf32> to vector<1x16x16xf32>
    %19 = vector.broadcast %18 : vector<1x16x16xf32> to vector<2x16x16xf32>
    %20 = arith.addf %17, %19 : vector<2x16x16xf32>
    %cst_10 = arith.constant dense<0xFF800000> : vector<2x16xf32>
    %21 = vector.multi_reduction <maximumf>, %20, %cst_10 [2] : vector<2x16x16xf32> to vector<2x16xf32>
    %22 = vector.shape_cast %21 : vector<2x16xf32> to vector<2x16x1xf32>
    %23 = vector.broadcast %22 : vector<2x16x1xf32> to vector<2x16x16xf32>
    %24 = arith.subf %20, %23 : vector<2x16x16xf32>
    %25 = math.exp %24 : vector<2x16x16xf32>
    %cst_11 = arith.constant dense<0.000000e+00> : vector<2x16xf32>
    %26 = vector.multi_reduction <add>, %25, %cst_11 [2] : vector<2x16x16xf32> to vector<2x16xf32>
    %27 = vector.shape_cast %26 : vector<2x16xf32> to vector<2x16x1xf32>
    %28 = tpu.reciprocal %27 {approx = true} : vector<2x16x1xf32> -> vector<2x16x1xf32>
    %29 = vector.broadcast %28 : vector<2x16x1xf32> to vector<2x16x16xf32>
    %30 = arith.mulf %25, %29 : vector<2x16x16xf32>
    %31 = arith.truncf %30 : vector<2x16x16xf32> to vector<2x16x16xbf16>
    "tpu.trace_start"() <{level = 10 : i32, message = "bqk,bkd->bqd"}> : () -> ()
    %cst_12 = arith.constant dense<0.000000e+00> : vector<2x16x64xf32>
    %32 = tpu.matmul %31, %16, %cst_12 {dimension_numbers = #tpu.dot_dimension_numbers<[2], [1], [1], [2], [0, 0, 0, 1, 1, 2], [0], [0]>} : vector<2x16x16xbf16>, vector<2x16x64xbf16>, vector<2x16x64xf32> -> vector<2x16x64xf32>
    "tpu.trace_stop"() : () -> ()
    %33 = vector.shape_cast %32 : vector<2x16x64xf32> to vector<32x64xf32>
    %34 = arith.truncf %33 : vector<32x64xf32> to vector<32x64xbf16>
    %35 = vector.extract_strided_slice %12 {offsets = [0, 0], sizes = [64, 384], strides = [1, 1]} : vector<384x384xbf16> to vector<64x384xbf16>
    %cst_13 = arith.constant dense<0.000000e+00> : vector<32x384xf32>
    %36 = tpu.matmul %34, %35, %cst_13 {dimension_numbers = #tpu.dot_dimension_numbers<[1], [0], [0], [1], [0, 0, 1, 1], [], []>} : vector<32x64xbf16>, vector<64x384xbf16>, vector<32x384xf32> -> vector<32x384xf32>
    %37 = arith.addf %13, %36 : vector<32x384xf32>
    %38 = vector.extract_strided_slice %5 {offsets = [0, 0, 64], sizes = [2, 16, 64], strides = [1, 1, 1]} : vector<2x16x1152xbf16> to vector<2x16x64xbf16>
    %39 = vector.extract_strided_slice %5 {offsets = [0, 0, 448], sizes = [2, 16, 64], strides = [1, 1, 1]} : vector<2x16x1152xbf16> to vector<2x16x64xbf16>
    %40 = vector.extract_strided_slice %5 {offsets = [0, 0, 832], sizes = [2, 16, 64], strides = [1, 1, 1]} : vector<2x16x1152xbf16> to vector<2x16x64xbf16>
    "tpu.trace_start"() <{level = 10 : i32, message = "bqd,bkd->bqk"}> : () -> ()
    %cst_14 = arith.constant dense<0.000000e+00> : vector<2x16x16xf32>
    %41 = tpu.matmul %38, %39, %cst_14 {dimension_numbers = #tpu.dot_dimension_numbers<[2], [2], [1], [1], [0, 0, 0, 1, 1, 1], [0], [0]>} : vector<2x16x64xbf16>, vector<2x16x64xbf16>, vector<2x16x16xf32> -> vector<2x16x16xf32>
    "tpu.trace_stop"() : () -> ()
    %42 = vector.shape_cast %11 : vector<16x16xf32> to vector<1x16x16xf32>
    %43 = vector.broadcast %42 : vector<1x16x16xf32> to vector<2x16x16xf32>
    %44 = arith.addf %41, %43 : vector<2x16x16xf32>
    %cst_15 = arith.constant dense<0xFF800000> : vector<2x16xf32>
    %45 = vector.multi_reduction <maximumf>, %44, %cst_15 [2] : vector<2x16x16xf32> to vector<2x16xf32>
    %46 = vector.shape_cast %45 : vector<2x16xf32> to vector<2x16x1xf32>
    %47 = vector.broadcast %46 : vector<2x16x1xf32> to vector<2x16x16xf32>
    %48 = arith.subf %44, %47 : vector<2x16x16xf32>
    %49 = math.exp %48 : vector<2x16x16xf32>
    %cst_16 = arith.constant dense<0.000000e+00> : vector<2x16xf32>
    %50 = vector.multi_reduction <add>, %49, %cst_16 [2] : vector<2x16x16xf32> to vector<2x16xf32>
    %51 = vector.shape_cast %50 : vector<2x16xf32> to vector<2x16x1xf32>
    %52 = tpu.reciprocal %51 {approx = true} : vector<2x16x1xf32> -> vector<2x16x1xf32>
    %53 = vector.broadcast %52 : vector<2x16x1xf32> to vector<2x16x16xf32>
    %54 = arith.mulf %49, %53 : vector<2x16x16xf32>
    %55 = arith.truncf %54 : vector<2x16x16xf32> to vector<2x16x16xbf16>
    "tpu.trace_start"() <{level = 10 : i32, message = "bqk,bkd->bqd"}> : () -> ()
    %cst_17 = arith.constant dense<0.000000e+00> : vector<2x16x64xf32>
    %56 = tpu.matmul %55, %40, %cst_17 {dimension_numbers = #tpu.dot_dimension_numbers<[2], [1], [1], [2], [0, 0, 0, 1, 1, 2], [0], [0]>} : vector<2x16x16xbf16>, vector<2x16x64xbf16>, vector<2x16x64xf32> -> vector<2x16x64xf32>
    "tpu.trace_stop"() : () -> ()
    %57 = vector.shape_cast %56 : vector<2x16x64xf32> to vector<32x64xf32>
    %58 = arith.truncf %57 : vector<32x64xf32> to vector<32x64xbf16>
    %59 = vector.extract_strided_slice %12 {offsets = [64, 0], sizes = [64, 384], strides = [1, 1]} : vector<384x384xbf16> to vector<64x384xbf16>
    %cst_18 = arith.constant dense<0.000000e+00> : vector<32x384xf32>
    %60 = tpu.matmul %58, %59, %cst_18 {dimension_numbers = #tpu.dot_dimension_numbers<[1], [0], [0], [1], [0, 0, 1, 1], [], []>} : vector<32x64xbf16>, vector<64x384xbf16>, vector<32x384xf32> -> vector<32x384xf32>
    %61 = arith.addf %37, %60 : vector<32x384xf32>
    %62 = vector.extract_strided_slice %5 {offsets = [0, 0, 128], sizes = [2, 16, 64], strides = [1, 1, 1]} : vector<2x16x1152xbf16> to vector<2x16x64xbf16>
    %63 = vector.extract_strided_slice %5 {offsets = [0, 0, 512], sizes = [2, 16, 64], strides = [1, 1, 1]} : vector<2x16x1152xbf16> to vector<2x16x64xbf16>
    %64 = vector.extract_strided_slice %5 {offsets = [0, 0, 896], sizes = [2, 16, 64], strides = [1, 1, 1]} : vector<2x16x1152xbf16> to vector<2x16x64xbf16>
    "tpu.trace_start"() <{level = 10 : i32, message = "bqd,bkd->bqk"}> : () -> ()
    %cst_19 = arith.constant dense<0.000000e+00> : vector<2x16x16xf32>
    %65 = tpu.matmul %62, %63, %cst_19 {dimension_numbers = #tpu.dot_dimension_numbers<[2], [2], [1], [1], [0, 0, 0, 1, 1, 1], [0], [0]>} : vector<2x16x64xbf16>, vector<2x16x64xbf16>, vector<2x16x16xf32> -> vector<2x16x16xf32>
    "tpu.trace_stop"() : () -> ()
    %66 = vector.shape_cast %11 : vector<16x16xf32> to vector<1x16x16xf32>
    %67 = vector.broadcast %66 : vector<1x16x16xf32> to vector<2x16x16xf32>
    %68 = arith.addf %65, %67 : vector<2x16x16xf32>
    %cst_20 = arith.constant dense<0xFF800000> : vector<2x16xf32>
    %69 = vector.multi_reduction <maximumf>, %68, %cst_20 [2] : vector<2x16x16xf32> to vector<2x16xf32>
    %70 = vector.shape_cast %69 : vector<2x16xf32> to vector<2x16x1xf32>
    %71 = vector.broadcast %70 : vector<2x16x1xf32> to vector<2x16x16xf32>
    %72 = arith.subf %68, %71 : vector<2x16x16xf32>
    %73 = math.exp %72 : vector<2x16x16xf32>
    %cst_21 = arith.constant dense<0.000000e+00> : vector<2x16xf32>
    %74 = vector.multi_reduction <add>, %73, %cst_21 [2] : vector<2x16x16xf32> to vector<2x16xf32>
    %75 = vector.shape_cast %74 : vector<2x16xf32> to vector<2x16x1xf32>
    %76 = tpu.reciprocal %75 {approx = true} : vector<2x16x1xf32> -> vector<2x16x1xf32>
    %77 = vector.broadcast %76 : vector<2x16x1xf32> to vector<2x16x16xf32>
    %78 = arith.mulf %73, %77 : vector<2x16x16xf32>
    %79 = arith.truncf %78 : vector<2x16x16xf32> to vector<2x16x16xbf16>
    "tpu.trace_start"() <{level = 10 : i32, message = "bqk,bkd->bqd"}> : () -> ()
    %cst_22 = arith.constant dense<0.000000e+00> : vector<2x16x64xf32>
    %80 = tpu.matmul %79, %64, %cst_22 {dimension_numbers = #tpu.dot_dimension_numbers<[2], [1], [1], [2], [0, 0, 0, 1, 1, 2], [0], [0]>} : vector<2x16x16xbf16>, vector<2x16x64xbf16>, vector<2x16x64xf32> -> vector<2x16x64xf32>
    "tpu.trace_stop"() : () -> ()
    %81 = vector.shape_cast %80 : vector<2x16x64xf32> to vector<32x64xf32>
    %82 = arith.truncf %81 : vector<32x64xf32> to vector<32x64xbf16>
    %83 = vector.extract_strided_slice %12 {offsets = [128, 0], sizes = [64, 384], strides = [1, 1]} : vector<384x384xbf16> to vector<64x384xbf16>
    %cst_23 = arith.constant dense<0.000000e+00> : vector<32x384xf32>
    %84 = tpu.matmul %82, %83, %cst_23 {dimension_numbers = #tpu.dot_dimension_numbers<[1], [0], [0], [1], [0, 0, 1, 1], [], []>} : vector<32x64xbf16>, vector<64x384xbf16>, vector<32x384xf32> -> vector<32x384xf32>
    %85 = arith.addf %61, %84 : vector<32x384xf32>
    %86 = vector.extract_strided_slice %5 {offsets = [0, 0, 192], sizes = [2, 16, 64], strides = [1, 1, 1]} : vector<2x16x1152xbf16> to vector<2x16x64xbf16>
    %87 = vector.extract_strided_slice %5 {offsets = [0, 0, 576], sizes = [2, 16, 64], strides = [1, 1, 1]} : vector<2x16x1152xbf16> to vector<2x16x64xbf16>
    %88 = vector.extract_strided_slice %5 {offsets = [0, 0, 960], sizes = [2, 16, 64], strides = [1, 1, 1]} : vector<2x16x1152xbf16> to vector<2x16x64xbf16>
    "tpu.trace_start"() <{level = 10 : i32, message = "bqd,bkd->bqk"}> : () -> ()
    %cst_24 = arith.constant dense<0.000000e+00> : vector<2x16x16xf32>
    %89 = tpu.matmul %86, %87, %cst_24 {dimension_numbers = #tpu.dot_dimension_numbers<[2], [2], [1], [1], [0, 0, 0, 1, 1, 1], [0], [0]>} : vector<2x16x64xbf16>, vector<2x16x64xbf16>, vector<2x16x16xf32> -> vector<2x16x16xf32>
    "tpu.trace_stop"() : () -> ()
    %90 = vector.shape_cast %11 : vector<16x16xf32> to vector<1x16x16xf32>
    %91 = vector.broadcast %90 : vector<1x16x16xf32> to vector<2x16x16xf32>
    %92 = arith.addf %89, %91 : vector<2x16x16xf32>
    %cst_25 = arith.constant dense<0xFF800000> : vector<2x16xf32>
    %93 = vector.multi_reduction <maximumf>, %92, %cst_25 [2] : vector<2x16x16xf32> to vector<2x16xf32>
    %94 = vector.shape_cast %93 : vector<2x16xf32> to vector<2x16x1xf32>
    %95 = vector.broadcast %94 : vector<2x16x1xf32> to vector<2x16x16xf32>
    %96 = arith.subf %92, %95 : vector<2x16x16xf32>
    %97 = math.exp %96 : vector<2x16x16xf32>
    %cst_26 = arith.constant dense<0.000000e+00> : vector<2x16xf32>
    %98 = vector.multi_reduction <add>, %97, %cst_26 [2] : vector<2x16x16xf32> to vector<2x16xf32>
    %99 = vector.shape_cast %98 : vector<2x16xf32> to vector<2x16x1xf32>
    %100 = tpu.reciprocal %99 {approx = true} : vector<2x16x1xf32> -> vector<2x16x1xf32>
    %101 = vector.broadcast %100 : vector<2x16x1xf32> to vector<2x16x16xf32>
    %102 = arith.mulf %97, %101 : vector<2x16x16xf32>
    %103 = arith.truncf %102 : vector<2x16x16xf32> to vector<2x16x16xbf16>
    "tpu.trace_start"() <{level = 10 : i32, message = "bqk,bkd->bqd"}> : () -> ()
    %cst_27 = arith.constant dense<0.000000e+00> : vector<2x16x64xf32>
    %104 = tpu.matmul %103, %88, %cst_27 {dimension_numbers = #tpu.dot_dimension_numbers<[2], [1], [1], [2], [0, 0, 0, 1, 1, 2], [0], [0]>} : vector<2x16x16xbf16>, vector<2x16x64xbf16>, vector<2x16x64xf32> -> vector<2x16x64xf32>
    "tpu.trace_stop"() : () -> ()
    %105 = vector.shape_cast %104 : vector<2x16x64xf32> to vector<32x64xf32>
    %106 = arith.truncf %105 : vector<32x64xf32> to vector<32x64xbf16>
    %107 = vector.extract_strided_slice %12 {offsets = [192, 0], sizes = [64, 384], strides = [1, 1]} : vector<384x384xbf16> to vector<64x384xbf16>
    %cst_28 = arith.constant dense<0.000000e+00> : vector<32x384xf32>
    %108 = tpu.matmul %106, %107, %cst_28 {dimension_numbers = #tpu.dot_dimension_numbers<[1], [0], [0], [1], [0, 0, 1, 1], [], []>} : vector<32x64xbf16>, vector<64x384xbf16>, vector<32x384xf32> -> vector<32x384xf32>
    %109 = arith.addf %85, %108 : vector<32x384xf32>
    %110 = vector.extract_strided_slice %5 {offsets = [0, 0, 256], sizes = [2, 16, 64], strides = [1, 1, 1]} : vector<2x16x1152xbf16> to vector<2x16x64xbf16>
    %111 = vector.extract_strided_slice %5 {offsets = [0, 0, 640], sizes = [2, 16, 64], strides = [1, 1, 1]} : vector<2x16x1152xbf16> to vector<2x16x64xbf16>
    %112 = vector.extract_strided_slice %5 {offsets = [0, 0, 1024], sizes = [2, 16, 64], strides = [1, 1, 1]} : vector<2x16x1152xbf16> to vector<2x16x64xbf16>
    "tpu.trace_start"() <{level = 10 : i32, message = "bqd,bkd->bqk"}> : () -> ()
    %cst_29 = arith.constant dense<0.000000e+00> : vector<2x16x16xf32>
    %113 = tpu.matmul %110, %111, %cst_29 {dimension_numbers = #tpu.dot_dimension_numbers<[2], [2], [1], [1], [0, 0, 0, 1, 1, 1], [0], [0]>} : vector<2x16x64xbf16>, vector<2x16x64xbf16>, vector<2x16x16xf32> -> vector<2x16x16xf32>
    "tpu.trace_stop"() : () -> ()
    %114 = vector.shape_cast %11 : vector<16x16xf32> to vector<1x16x16xf32>
    %115 = vector.broadcast %114 : vector<1x16x16xf32> to vector<2x16x16xf32>
    %116 = arith.addf %113, %115 : vector<2x16x16xf32>
    %cst_30 = arith.constant dense<0xFF800000> : vector<2x16xf32>
    %117 = vector.multi_reduction <maximumf>, %116, %cst_30 [2] : vector<2x16x16xf32> to vector<2x16xf32>
    %118 = vector.shape_cast %117 : vector<2x16xf32> to vector<2x16x1xf32>
    %119 = vector.broadcast %118 : vector<2x16x1xf32> to vector<2x16x16xf32>
    %120 = arith.subf %116, %119 : vector<2x16x16xf32>
    %121 = math.exp %120 : vector<2x16x16xf32>
    %cst_31 = arith.constant dense<0.000000e+00> : vector<2x16xf32>
    %122 = vector.multi_reduction <add>, %121, %cst_31 [2] : vector<2x16x16xf32> to vector<2x16xf32>
    %123 = vector.shape_cast %122 : vector<2x16xf32> to vector<2x16x1xf32>
    %124 = tpu.reciprocal %123 {approx = true} : vector<2x16x1xf32> -> vector<2x16x1xf32>
    %125 = vector.broadcast %124 : vector<2x16x1xf32> to vector<2x16x16xf32>
    %126 = arith.mulf %121, %125 : vector<2x16x16xf32>
    %127 = arith.truncf %126 : vector<2x16x16xf32> to vector<2x16x16xbf16>
    "tpu.trace_start"() <{level = 10 : i32, message = "bqk,bkd->bqd"}> : () -> ()
    %cst_32 = arith.constant dense<0.000000e+00> : vector<2x16x64xf32>
    %128 = tpu.matmul %127, %112, %cst_32 {dimension_numbers = #tpu.dot_dimension_numbers<[2], [1], [1], [2], [0, 0, 0, 1, 1, 2], [0], [0]>} : vector<2x16x16xbf16>, vector<2x16x64xbf16>, vector<2x16x64xf32> -> vector<2x16x64xf32>
    "tpu.trace_stop"() : () -> ()
    %129 = vector.shape_cast %128 : vector<2x16x64xf32> to vector<32x64xf32>
    %130 = arith.truncf %129 : vector<32x64xf32> to vector<32x64xbf16>
    %131 = vector.extract_strided_slice %12 {offsets = [256, 0], sizes = [64, 384], strides = [1, 1]} : vector<384x384xbf16> to vector<64x384xbf16>
    %cst_33 = arith.constant dense<0.000000e+00> : vector<32x384xf32>
    %132 = tpu.matmul %130, %131, %cst_33 {dimension_numbers = #tpu.dot_dimension_numbers<[1], [0], [0], [1], [0, 0, 1, 1], [], []>} : vector<32x64xbf16>, vector<64x384xbf16>, vector<32x384xf32> -> vector<32x384xf32>
    %133 = arith.addf %109, %132 : vector<32x384xf32>
    %134 = vector.extract_strided_slice %5 {offsets = [0, 0, 320], sizes = [2, 16, 64], strides = [1, 1, 1]} : vector<2x16x1152xbf16> to vector<2x16x64xbf16>
    %135 = vector.extract_strided_slice %5 {offsets = [0, 0, 704], sizes = [2, 16, 64], strides = [1, 1, 1]} : vector<2x16x1152xbf16> to vector<2x16x64xbf16>
    %136 = vector.extract_strided_slice %5 {offsets = [0, 0, 1088], sizes = [2, 16, 64], strides = [1, 1, 1]} : vector<2x16x1152xbf16> to vector<2x16x64xbf16>
    "tpu.trace_start"() <{level = 10 : i32, message = "bqd,bkd->bqk"}> : () -> ()
    %cst_34 = arith.constant dense<0.000000e+00> : vector<2x16x16xf32>
    %137 = tpu.matmul %134, %135, %cst_34 {dimension_numbers = #tpu.dot_dimension_numbers<[2], [2], [1], [1], [0, 0, 0, 1, 1, 1], [0], [0]>} : vector<2x16x64xbf16>, vector<2x16x64xbf16>, vector<2x16x16xf32> -> vector<2x16x16xf32>
    "tpu.trace_stop"() : () -> ()
    %138 = vector.shape_cast %11 : vector<16x16xf32> to vector<1x16x16xf32>
    %139 = vector.broadcast %138 : vector<1x16x16xf32> to vector<2x16x16xf32>
    %140 = arith.addf %137, %139 : vector<2x16x16xf32>
    %cst_35 = arith.constant dense<0xFF800000> : vector<2x16xf32>
    %141 = vector.multi_reduction <maximumf>, %140, %cst_35 [2] : vector<2x16x16xf32> to vector<2x16xf32>
    %142 = vector.shape_cast %141 : vector<2x16xf32> to vector<2x16x1xf32>
    %143 = vector.broadcast %142 : vector<2x16x1xf32> to vector<2x16x16xf32>
    %144 = arith.subf %140, %143 : vector<2x16x16xf32>
    %145 = math.exp %144 : vector<2x16x16xf32>
    %cst_36 = arith.constant dense<0.000000e+00> : vector<2x16xf32>
    %146 = vector.multi_reduction <add>, %145, %cst_36 [2] : vector<2x16x16xf32> to vector<2x16xf32>
    %147 = vector.shape_cast %146 : vector<2x16xf32> to vector<2x16x1xf32>
    %148 = tpu.reciprocal %147 {approx = true} : vector<2x16x1xf32> -> vector<2x16x1xf32>
    %149 = vector.broadcast %148 : vector<2x16x1xf32> to vector<2x16x16xf32>
    %150 = arith.mulf %145, %149 : vector<2x16x16xf32>
    %151 = arith.truncf %150 : vector<2x16x16xf32> to vector<2x16x16xbf16>
    "tpu.trace_start"() <{level = 10 : i32, message = "bqk,bkd->bqd"}> : () -> ()
    %cst_37 = arith.constant dense<0.000000e+00> : vector<2x16x64xf32>
    %152 = tpu.matmul %151, %136, %cst_37 {dimension_numbers = #tpu.dot_dimension_numbers<[2], [1], [1], [2], [0, 0, 0, 1, 1, 2], [0], [0]>} : vector<2x16x16xbf16>, vector<2x16x64xbf16>, vector<2x16x64xf32> -> vector<2x16x64xf32>
    "tpu.trace_stop"() : () -> ()
    %153 = vector.shape_cast %152 : vector<2x16x64xf32> to vector<32x64xf32>
    %154 = arith.truncf %153 : vector<32x64xf32> to vector<32x64xbf16>
    %155 = vector.extract_strided_slice %12 {offsets = [320, 0], sizes = [64, 384], strides = [1, 1]} : vector<384x384xbf16> to vector<64x384xbf16>
    %cst_38 = arith.constant dense<0.000000e+00> : vector<32x384xf32>
    %156 = tpu.matmul %154, %155, %cst_38 {dimension_numbers = #tpu.dot_dimension_numbers<[1], [0], [0], [1], [0, 0, 1, 1], [], []>} : vector<32x64xbf16>, vector<64x384xbf16>, vector<32x384xf32> -> vector<32x384xf32>
    %157 = arith.addf %133, %156 : vector<32x384xf32>
    %c0_39 = arith.constant 0 : index
    %c0_40 = arith.constant 0 : index
    %158 = vector.load %arg4[%c0_39, %c0_40] : memref<1x384xf32, #tpu.memory_space<vmem>>, vector<1x384xf32>
    %159 = vector.broadcast %158 : vector<1x384xf32> to vector<32x384xf32>
    %160 = arith.addf %157, %159 : vector<32x384xf32>
    %161 = vector.shape_cast %160 : vector<32x384xf32> to vector<2x16x384xf32>
    %c0_41 = arith.constant 0 : index
    %c0_42 = arith.constant 0 : index
    %c0_43 = arith.constant 0 : index
    %162 = vector.load %arg5[%c0_41, %c0_42, %c0_43] : memref<2x16x384xf32, #tpu.memory_space<vmem>>, vector<2x16x384xf32>
    tpu.vector_store %arg5[%c0_41, %c0_42, %c0_43], %161 {strides = array<i32>} : memref<2x16x384xf32, #tpu.memory_space<vmem>>, vector<2x16x384xf32>,
    return
  }
  func.func @transform_0(%arg0: i32) -> (i32, i32, i32) {
    %c0_i32 = arith.constant 0 : i32
    %c0_i32_0 = arith.constant 0 : i32
    %c0_i32_1 = arith.constant 0 : i32
    return %arg0, %c0_i32, %c0_i32_0 : i32, i32, i32
  }
  func.func @transform_1(%arg0: i32) -> (i32, i32) {
    %c0_i32 = arith.constant 0 : i32
    %c0_i32_0 = arith.constant 0 : i32
    %c0_i32_1 = arith.constant 0 : i32
    return %c0_i32, %c0_i32_0 : i32, i32
  }
  func.func @transform_2(%arg0: i32) -> (i32, i32) {
    %c0_i32 = arith.constant 0 : i32
    %c0_i32_0 = arith.constant 0 : i32
    %c0_i32_1 = arith.constant 0 : i32
    return %c0_i32, %c0_i32_0 : i32, i32
  }
  func.func @transform_3(%arg0: i32) -> (i32, i32) {
    %c0_i32 = arith.constant 0 : i32
    %c0_i32_0 = arith.constant 0 : i32
    %c0_i32_1 = arith.constant 0 : i32
    return %c0_i32, %c0_i32_0 : i32, i32
  }
  func.func @transform_4(%arg0: i32) -> (i32, i32, i32) {
    %c0_i32 = arith.constant 0 : i32
    %c0_i32_0 = arith.constant 0 : i32
    %c0_i32_1 = arith.constant 0 : i32
    return %arg0, %c0_i32, %c0_i32_0 : i32, i32, i32
  }
}

</mosaic_0001>

<bundles_post_ra>
// kernel: multi_head_attention.1
= control target key start
LH: loop header
LB: loop body
LE: loop exit
PB: predicated region body
PF: predicated region fallthrough
CT: control target
= control target key end

     0   :  { %s8051_s0 = inlined_call_operand.vmem [shape: bf16[2,16,384], index: 0, kind: input, shape index: {}]   ;;  %s8052_s1 = inlined_call_operand.vmem [shape: bf16[384,1152], index: 1, kind: input, shape index: {}]   ;;  %s8053_s2 = inlined_call_operand.vmem [shape: bf16[384,384], index: 2, kind: input, shape index: {}]   ;;  %s8054_s3 = inlined_call_operand.vmem [shape: f32[1,384], index: 3, kind: input, shape index: {}]   ;;  %s8055_s4 = inlined_call_operand.hbm [shape: f32[2,16,384], index: 4, kind: output, shape index: {}]  }
   0x1   :  { %v4179_v0 = vld [vmem:[%s8052_s1 + $0x1f8] sm:$0xf]  ;;  %v5210_v1 = vld [vmem:[%s8052_s1 + $0x218] sm:$0xf0]  ;;  %v4181_v10 = vld [vmem:[%s8052_s1 + $0x21c] sm:$0xf0] }
   0x2   :  { %v4467_v2 = vld [vmem:[%s8052_s1 + $0x438] sm:$0xf]  ;;  %v4180_v3 = vor.u32 %v5210_v1, %v4179_v0  ;;  %v5282_v4 = vld [vmem:[%s8052_s1 + $0x458] sm:$0xf0]  ;;  %v4143_v11 = vld [vmem:[%s8052_s1 + $0x1b0] sm:$0xf] }
   0x3   :  { %v4755_v5 = vld [vmem:[%s8052_s1 + $0x678] sm:$0xf]  ;;  %v5354_v6 = vld [vmem:[%s8052_s1 + $0x698] sm:$0xf0]  ;;  %v4468_v7 = vor.u32 %v5282_v4, %v4467_v2  ;;  %v5201_v13 = vld [vmem:[%s8052_s1 + $0x1d0] sm:$0xf0] }
   0x4   :  { %v4756_v8 = vor.u32 %v5354_v6, %v4755_v5  ;;  %v5206_v9 = vld [vmem:[%s8052_s1 + $0x1fc] sm:$0xf]  ;;  %1403 = vmatpush.bf16.msra.mxu0 %v4180_v3  ;;  %v4431_v14 = vld [vmem:[%s8052_s1 + $0x3f0] sm:$0xf]  ;;  %v5273_v15 = vld [vmem:[%s8052_s1 + $0x410] sm:$0xf0]  ;;  %v4144_v16 = vor.u32 %v5201_v13, %v4143_v11 }
   0x5   :  { %v4184_v12 = vor.u32 %v5206_v9, %v4181_v10  ;;  %1422 = vmatpush.bf16.msra.mxu1 %v4468_v7  ;;  %v4432_v17 = vor.u32 %v5273_v15, %v4431_v14  ;;  %v4719_v18 = vld [vmem:[%s8052_s1 + $0x630] sm:$0xf]  ;;  %v5345_v19 = vld [vmem:[%s8052_s1 + $0x650] sm:$0xf0]  ;;  %v4145_v22 = vld [vmem:[%s8052_s1 + $0x1d4] sm:$0xf0] }
   0x6   :  { %1441 = vmatpush.bf16.msra.mxu2 %v4756_v8  ;;  %v5197_v20 = vld [vmem:[%s8052_s1 + $0x1b4] sm:$0xf]  ;;  %v4720_v21 = vor.u32 %v5345_v19, %v4719_v18  ;;  %v4107_v23 = vld [vmem:[%s8052_s1 + $0x168] sm:$0xf]  ;;  %v5192_v24 = vld [vmem:[%s8052_s1 + $0x188] sm:$0xf0] }
   0x7   :  { %1460 = vmatpush.bf16.msra.mxu3 %v4184_v12  ;;  %v4148_v25 = vor.u32 %v5197_v20, %v4145_v22  ;;  %v4395_v26 = vld [vmem:[%s8052_s1 + $0x3a8] sm:$0xf]  ;;  %v5264_v27 = vld [vmem:[%s8052_s1 + $0x3c8] sm:$0xf0]  ;;  %v4108_v29 = vor.u32 %v5192_v24, %v4107_v23  ;;  %v4109_v32 = vld [vmem:[%s8052_s1 + $0x18c] sm:$0xf0] }
   0x8   :  { %v4683_v28 = vld [vmem:[%s8052_s1 + $0x5e8] sm:$0xf]  ;;  %1404 = vmatpush.bf16.msra.mxu0 %v4144_v16  ;;  %v5336_v30 = vld [vmem:[%s8052_s1 + $0x608] sm:$0xf0]  ;;  %v4396_v33 = vor.u32 %v5264_v27, %v4395_v26  ;;  %v4071_v35 = vld [vmem:[%s8052_s1 + $0x120] sm:$0xf] }
   0x9   :  { %v5188_v31 = vld [vmem:[%s8052_s1 + $0x16c] sm:$0xf]  ;;  %1423 = vmatpush.bf16.msra.mxu1 %v4432_v17  ;;  %v4684_v34 = vor.u32 %v5336_v30, %v4683_v28  ;;  %v5183_v36 = vld [vmem:[%s8052_s1 + $0x140] sm:$0xf0]  ;;  %v4359_v37 = vld [vmem:[%s8052_s1 + $0x360] sm:$0xf] }
   0xa   :  { %1442 = vmatpush.bf16.msra.mxu2 %v4720_v21  ;;  %v4112_v38 = vor.u32 %v5188_v31, %v4109_v32  ;;  %v5255_v39 = vld [vmem:[%s8052_s1 + $0x380] sm:$0xf0]  ;;  %v4647_v40 = vld [vmem:[%s8052_s1 + $0x5a0] sm:$0xf]  ;;  %v4073_v43 = vld [vmem:[%s8052_s1 + $0x144] sm:$0xf0]  ;;  %v4072_v44 = vor.u32 %v5183_v36, %v4071_v35 }
   0xb   :  { %1461 = vmatpush.bf16.msra.mxu3 %v4148_v25  ;;  %v5327_v41 = vld [vmem:[%s8052_s1 + $0x5c0] sm:$0xf0]  ;;  %v4360_v45 = vor.u32 %v5255_v39, %v4359_v37  ;;  %v4035_v47 = vld [vmem:[%s8052_s1 + $0xd8] sm:$0xf]  ;;  %v5174_v48 = vld [vmem:[%s8052_s1 + $0xf8] sm:$0xf0] }
   0xc   :  { %v5179_v42 = vld [vmem:[%s8052_s1 + $0x124] sm:$0xf]  ;;  %1405 = vmatpush.bf16.msra.mxu0 %v4108_v29  ;;  %v4648_v46 = vor.u32 %v5327_v41, %v4647_v40  ;;  %v4323_v49 = vld [vmem:[%s8052_s1 + $0x318] sm:$0xf]  ;;  %v5246_v51 = vld [vmem:[%s8052_s1 + $0x338] sm:$0xf0]  ;;  %v4036_v56 = vor.u32 %v5174_v48, %v4035_v47 }
   0xd   :  { %1424 = vmatpush.bf16.msra.mxu1 %v4396_v33  ;;  %v4076_v50 = vor.u32 %v5179_v42, %v4073_v43  ;;  %v4611_v52 = vld [vmem:[%s8052_s1 + $0x558] sm:$0xf]  ;;  %v5318_v53 = vld [vmem:[%s8052_s1 + $0x578] sm:$0xf0]  ;;  %v4037_v55 = vld [vmem:[%s8052_s1 + $0xfc] sm:$0xf0]  ;;  %v4324_v57 = vor.u32 %v5246_v51, %v4323_v49 }
   0xe   :  { %1443 = vmatpush.bf16.msra.mxu2 %v4684_v34  ;;  %v5170_v54 = vld [vmem:[%s8052_s1 + $0xdc] sm:$0xf]  ;;  %v4612_v58 = vor.u32 %v5318_v53, %v4611_v52  ;;  %v3999_v59 = vld [vmem:[%s8052_s1 + $0x90] sm:$0xf]  ;;  %v5165_v60 = vld [vmem:[%s8052_s1 + $0xb0] sm:$0xf0] }
   0xf   :  { %1462 = vmatpush.bf16.msra.mxu3 %v4112_v38  ;;  %v4287_v61 = vld [vmem:[%s8052_s1 + $0x2d0] sm:$0xf]  ;;  %v4040_v62 = vor.u32 %v5170_v54, %v4037_v55  ;;  %v5237_v63 = vld [vmem:[%s8052_s1 + $0x2f0] sm:$0xf0]  ;;  %v4001_v3 = vld [vmem:[%s8052_s1 + $0xb4] sm:$0xf0]  ;;  %v4000_v4 = vor.u32 %v5165_v60, %v3999_v59 }
  0x10   :  { %1406 = vmatpush.bf16.msra.mxu0 %v4072_v44  ;;  %v4575_v0 = vld [vmem:[%s8052_s1 + $0x510] sm:$0xf]  ;;  %v5309_v1 = vld [vmem:[%s8052_s1 + $0x530] sm:$0xf0]  ;;  %v4288_v5 = vor.u32 %v5237_v63, %v4287_v61  ;;  %v3963_v7 = vld [vmem:[%s8052_s1 + $0x48] sm:$0xf] }
  0x11   :  { %1425 = vmatpush.bf16.msra.mxu1 %v4360_v45  ;;  %v5161_v2 = vld [vmem:[%s8052_s1 + $0x94] sm:$0xf]  ;;  %v4576_v6 = vor.u32 %v5309_v1, %v4575_v0  ;;  %v5156_v8 = vld [vmem:[%s8052_s1 + $0x68] sm:$0xf0]  ;;  %v4251_v9 = vld [vmem:[%s8052_s1 + $0x288] sm:$0xf] }
  0x12   :  { %1444 = vmatpush.bf16.msra.mxu2 %v4648_v46  ;;  %v4004_v10 = vor.u32 %v5161_v2, %v4001_v3  ;;  %v5228_v11 = vld [vmem:[%s8052_s1 + $0x2a8] sm:$0xf0]  ;;  %v4539_v12 = vld [vmem:[%s8052_s1 + $0x4c8] sm:$0xf]  ;;  %v3965_v15 = vld [vmem:[%s8052_s1 + $0x6c] sm:$0xf0]  ;;  %v3964_v16 = vor.u32 %v5156_v8, %v3963_v7 }
  0x13   :  { %1463 = vmatpush.bf16.msra.mxu3 %v4076_v50  ;;  %v5300_v13 = vld [vmem:[%s8052_s1 + $0x4e8] sm:$0xf0]  ;;  %v3927_v17 = vld [vmem:[%s8052_s1] sm:$0xf]  ;;  %v5147_v18 = vld [vmem:[%s8052_s1 + $0x20] sm:$0xf0]  ;;  %v4252_v20 = vor.u32 %v5228_v11, %v4251_v9 }
  0x14   :  { %1407 = vmatpush.bf16.msra.mxu0 %v4036_v56  ;;  %v5152_v14 = vld [vmem:[%s8052_s1 + $0x4c] sm:$0xf]  ;;  %v4215_v19 = vld [vmem:[%s8052_s1 + $0x240] sm:$0xf]  ;;  %v4540_v21 = vor.u32 %v5300_v13, %v4539_v12  ;;  %v5219_v22 = vld [vmem:[%s8052_s1 + $0x260] sm:$0xf0]  ;;  %v3928_v32 = vor.u32 %v5147_v18, %v3927_v17 }
  0x15   :  { %1426 = vmatpush.bf16.msra.mxu1 %v4324_v57  ;;  %v4503_v23 = vld [vmem:[%s8052_s1 + $0x480] sm:$0xf]  ;;  %v5291_v24 = vld [vmem:[%s8052_s1 + $0x4a0] sm:$0xf0]  ;;  %v3968_v25 = vor.u32 %v5152_v14, %v3965_v15  ;;  %v3929_v27 = vld [vmem:[%s8052_s1 + $0x24] sm:$0xf0]  ;;  %v4216_v36 = vor.u32 %v5219_v22, %v4215_v19 }
  0x16   :  { %1445 = vmatpush.bf16.msra.mxu2 %v4612_v58  ;;  %v5143_v26 = vld [vmem:[%s8052_s1 + $0x4] sm:$0xf]  ;;  %v3903_v28 = vld [vmem:[%s8051_s0] sm:$0xf]  ;;  %v5138_v29 = vld [vmem:[%s8051_s0 + $0x8] sm:$0xf0]  ;;  %v4504_v37 = vor.u32 %v5291_v24, %v4503_v23 }
  0x17   :  { %1464 = vmatpush.bf16.msra.mxu3 %v4040_v62  ;;  %v5278_v30 = vld [vmem:[%s8052_s1 + $0x43c] sm:$0xf]  ;;  %v4469_v31 = vld [vmem:[%s8052_s1 + $0x45c] sm:$0xf0]  ;;  %v5137_v33 = vld [vmem:[%s8051_s0 + $0x4] sm:$0xf]  ;;  %v3932_v41 = vor.u32 %v5143_v26, %v3929_v27  ;;  %v5827_v46 = vor.u32 %v5138_v29, %v3903_v28 }
  0x18   :  { %1408 = vmatpush.bf16.msra.mxu0 %v4000_v4  ;;  %v5350_v34 = vld [vmem:[%s8052_s1 + $0x67c] sm:$0xf]  ;;  %v4757_v35 = vld [vmem:[%s8052_s1 + $0x69c] sm:$0xf0]  ;;  %v3905_v38 = vld [vmem:[%s8051_s0 + $0xc] sm:$0xf0]  ;;  %v4472_v42 = vor.u32 %v5278_v30, %v4469_v31 }
  0x19   :  { %1427 = vmatpush.bf16.msra.mxu1 %v4288_v5  ;;  %v3911_v39 = vld [vmem:[%s8051_s0 + $0x8] sm:$0xf]  ;;  %v5139_v40 = vld [vmem:[%s8051_s0 + $0x10] sm:$0xf0]  ;;  %v4187_v43 = vld [vmem:[%s8052_s1 + $0x200] sm:$0xf]  ;;  %v4760_v47 = vor.u32 %v5350_v34, %v4757_v35  ;;  %v5838_v51 = vor.u32 %v5137_v33, %v3905_v38 }
  0x1a   :  { %1446 = vmatpush.bf16.msra.mxu2 %v4576_v6  ;;  %v5211_v44 = vld [vmem:[%s8052_s1 + $0x220] sm:$0xf0]  ;;  %v4475_v45 = vld [vmem:[%s8052_s1 + $0x440] sm:$0xf]  ;;  %v5269_v49 = vld [vmem:[%s8052_s1 + $0x3f4] sm:$0xf]  ;;  %v5840_v52 = vor.u32 %v5139_v40, %v3911_v39 }
  0x1b   :  { %1465 = vmatpush.bf16.msra.mxu3 %v4004_v10  ;;  %v5283_v48 = vld [vmem:[%s8052_s1 + $0x460] sm:$0xf0]  ;;  %v4433_v50 = vld [vmem:[%s8052_s1 + $0x414] sm:$0xf0]  ;;  %v5341_v53 = vld [vmem:[%s8052_s1 + $0x634] sm:$0xf]  ;;  %v4188_v55 = vor.u32 %v5211_v44, %v4187_v43 }
  0x1c   :  { %1409 = vmatpush.bf16.msra.mxu0 %v3964_v16  ;;  %v4721_v54 = vld [vmem:[%s8052_s1 + $0x654] sm:$0xf0]  ;;  %v4476_v56 = vor.u32 %v5283_v48, %v4475_v45  ;;  %v4436_v57 = vor.u32 %v5269_v49, %v4433_v50  ;;  %v5202_v59 = vld [vmem:[%s8052_s1 + $0x1d8] sm:$0xf0]  ;;  %v5260_v63 = vld [vmem:[%s8052_s1 + $0x3ac] sm:$0xf] }
  0x1d   :  { %1428 = vmatpush.bf16.msra.mxu1 %v4252_v20  ;;  %v4151_v58 = vld [vmem:[%s8052_s1 + $0x1b8] sm:$0xf]  ;;  %v4724_v61 = vor.u32 %v5341_v53, %v4721_v54  ;;  %v5274_v62 = vld [vmem:[%s8052_s1 + $0x418] sm:$0xf0]  ;;  %v4397_v0 = vld [vmem:[%s8052_s1 + $0x3cc] sm:$0xf0] }
  0x1e   :  { %1447 = vmatpush.bf16.msra.mxu2 %v4540_v21  ;;  %v4439_v60 = vld [vmem:[%s8052_s1 + $0x3f8] sm:$0xf]  ;;  %v5332_v1 = vld [vmem:[%s8052_s1 + $0x5ec] sm:$0xf]  ;;  %v4685_v2 = vld [vmem:[%s8052_s1 + $0x60c] sm:$0xf0]  ;;  %v4152_v3 = vor.u32 %v5202_v59, %v4151_v58  ;;  %v4400_v5 = vor.u32 %v5260_v63, %v4397_v0 }
  0x1f   :  { %1466 = vmatpush.bf16.msra.mxu3 %v3968_v25  ;;  %v4440_v4 = vor.u32 %v5274_v62, %v4439_v60  ;;  %v4115_v6 = vld [vmem:[%s8052_s1 + $0x170] sm:$0xf]  ;;  %v5193_v7 = vld [vmem:[%s8052_s1 + $0x190] sm:$0xf0]  ;;  %v4688_v9 = vor.u32 %v5332_v1, %v4685_v2  ;;  %v5251_v11 = vld [vmem:[%s8052_s1 + $0x364] sm:$0xf] }
  0x20   :  { %1410 = vmatpush.bf16.msra.mxu0 %v3928_v32  ;;  %v4403_v8 = vld [vmem:[%s8052_s1 + $0x3b0] sm:$0xf]  ;;  %v5265_v10 = vld [vmem:[%s8052_s1 + $0x3d0] sm:$0xf0]  ;;  %v4361_v12 = vld [vmem:[%s8052_s1 + $0x384] sm:$0xf0]  ;;  %v4116_v15 = vor.u32 %v5193_v7, %v4115_v6 }
  0x21   :  { %1429 = vmatpush.bf16.msra.mxu1 %v4216_v36  ;;  %v5323_v13 = vld [vmem:[%s8052_s1 + $0x5a4] sm:$0xf]  ;;  %v4649_v14 = vld [vmem:[%s8052_s1 + $0x5c4] sm:$0xf0]  ;;  %v5184_v17 = vld [vmem:[%s8052_s1 + $0x148] sm:$0xf0]  ;;  %v4404_v18 = vor.u32 %v5265_v10, %v4403_v8  ;;  %v4364_v19 = vor.u32 %v5251_v11, %v4361_v12 }
  0x22   :  { %1448 = vmatpush.bf16.msra.mxu2 %v4504_v37  ;;  %v4079_v16 = vld [vmem:[%s8052_s1 + $0x128] sm:$0xf]  ;;  %v5256_v21 = vld [vmem:[%s8052_s1 + $0x388] sm:$0xf0]  ;;  %v3915_v22 = vld [vmem:[%s8051_s0 + $0x18] sm:$0xf]  ;;  %v4652_v23 = vor.u32 %v5323_v13, %v4649_v14 }
  0x23   :  { %1467 = vmatpush.bf16.msra.mxu3 %v3932_v41  ;;  %1411 = vmatmul.bf16.vlgmr.msra.gmra.mxu0 %v5827_v46  ;;  %v4367_v20 = vld [vmem:[%s8052_s1 + $0x368] sm:$0xf]  ;;  %v5141_v24 = vld [vmem:[%s8051_s0 + $0x20] sm:$0xf0]  ;;  %v5242_v25 = vld [vmem:[%s8052_s1 + $0x31c] sm:$0xf]  ;;  %v4080_v30 = vor.u32 %v5184_v17, %v4079_v16 }
  0x24   :  { %1479 = vmatpush.bf16.msrb.mxu0 %v4472_v42  ;;  %1430 = vmatmul.bf16.vlgmr.msra.gmra.mxu1 %v5838_v51  ;;  %v4325_v26 = vld [vmem:[%s8052_s1 + $0x33c] sm:$0xf0]  ;;  %v5140_v27 = vld [vmem:[%s8051_s0 + $0x1c] sm:$0xf]  ;;  %v3917_v31 = vld [vmem:[%s8051_s0 + $0x24] sm:$0xf0]  ;;  %v4368_v34 = vor.u32 %v5256_v21, %v4367_v20  ;;  %v5951_v39 = vor.u32 %v5141_v24, %v3915_v22 }
  0x25   :  { %1498 = vmatpush.bf16.msrb.mxu1 %v4760_v47  ;;  %1449 = vmatmul.bf16.vlgmr.msra.gmra.mxu2 %v5840_v52  ;;  %v5314_v28 = vld [vmem:[%s8052_s1 + $0x55c] sm:$0xf]  ;;  %v4613_v29 = vld [vmem:[%s8052_s1 + $0x57c] sm:$0xf0]  ;;  %v5142_v33 = vld [vmem:[%s8051_s0 + $0x28] sm:$0xf0]  ;;  %v4328_v35 = vor.u32 %v5242_v25, %v4325_v26  ;;  %v5962_v44 = vor.u32 %v5140_v27, %v3917_v31 }
  0x26   :  { %1468 = vmatmul.bf16.vlgmr.msra.gmra.mxu3 %v5827_v46  ;;  %1517 = vmatpush.bf16.msrb.mxu2 %v4188_v55  ;;  %v3923_v32 = vld [vmem:[%s8051_s0 + $0x20] sm:$0xf]  ;;  %v5175_v37 = vld [vmem:[%s8052_s1 + $0x100] sm:$0xf0]  ;;  %v4616_v40 = vor.u32 %v5314_v28, %v4613_v29  ;;  %v5233_v42 = vld [vmem:[%s8052_s1 + $0x2d4] sm:$0xf] }
  0x27   :  { %1536 = vmatpush.bf16.msrb.mxu3 %v4476_v56  ;;  %v4043_v36 = vld [vmem:[%s8052_s1 + $0xe0] sm:$0xf]  ;;  %v5247_v41 = vld [vmem:[%s8052_s1 + $0x340] sm:$0xf0]  ;;  %v4289_v43 = vld [vmem:[%s8052_s1 + $0x2f4] sm:$0xf0]  ;;  %v5964_v45 = vor.u32 %v5142_v33, %v3923_v32 }
  0x28   :  { %1480 = vmatpush.bf16.msrb.mxu0 %v4436_v57  ;;  %v4331_v38 = vld [vmem:[%s8052_s1 + $0x320] sm:$0xf]  ;;  %v5305_v47 = vld [vmem:[%s8052_s1 + $0x514] sm:$0xf]  ;;  %v4577_v48 = vld [vmem:[%s8052_s1 + $0x534] sm:$0xf0]  ;;  %v4044_v49 = vor.u32 %v5175_v37, %v4043_v36  ;;  %v4292_v53 = vor.u32 %v5233_v42, %v4289_v43 }
  0x29   :  { %1499 = vmatpush.bf16.msrb.mxu1 %v4724_v61  ;;  %v4332_v50 = vor.u32 %v5247_v41, %v4331_v38  ;;  %v4007_v54 = vld [vmem:[%s8052_s1 + $0x98] sm:$0xf]  ;;  %v5166_v55 = vld [vmem:[%s8052_s1 + $0xb8] sm:$0xf0]  ;;  %v4580_v57 = vor.u32 %v5305_v47, %v4577_v48  ;;  %v5224_v59 = vld [vmem:[%s8052_s1 + $0x28c] sm:$0xf] }
  0x2a   :  { %1518 = vmatpush.bf16.msrb.mxu2 %v4152_v3  ;;  %v4295_v56 = vld [vmem:[%s8052_s1 + $0x2d8] sm:$0xf]  ;;  %v5238_v58 = vld [vmem:[%s8052_s1 + $0x2f8] sm:$0xf0]  ;;  %v4253_v60 = vld [vmem:[%s8052_s1 + $0x2ac] sm:$0xf0]  ;;  %v4008_v63 = vor.u32 %v5166_v55, %v4007_v54 }
  0x2b   :  { %1537 = vmatpush.bf16.msrb.mxu3 %v4440_v4  ;;  %v5296_v61 = vld [vmem:[%s8052_s1 + $0x4cc] sm:$0xf]  ;;  %v4541_v62 = vld [vmem:[%s8052_s1 + $0x4ec] sm:$0xf0]  ;;  %v4296_v1 = vor.u32 %v5238_v58, %v4295_v56  ;;  %v4256_v2 = vor.u32 %v5224_v59, %v4253_v60  ;;  %v5157_v3 = vld [vmem:[%s8052_s1 + $0x70] sm:$0xf0] }
  0x2c   :  { %1481 = vmatpush.bf16.msrb.mxu0 %v4400_v5  ;;  %v3971_v0 = vld [vmem:[%s8052_s1 + $0x50] sm:$0xf]  ;;  %v5229_v5 = vld [vmem:[%s8052_s1 + $0x2b0] sm:$0xf0]  ;;  %v4544_v6 = vor.u32 %v5296_v61, %v4541_v62  ;;  %v5215_v7 = vld [vmem:[%s8052_s1 + $0x244] sm:$0xf] }
  0x2d   :  { %1500 = vmatpush.bf16.msrb.mxu1 %v4688_v9  ;;  %v4259_v4 = vld [vmem:[%s8052_s1 + $0x290] sm:$0xf]  ;;  %v4217_v8 = vld [vmem:[%s8052_s1 + $0x264] sm:$0xf0]  ;;  %v5287_v9 = vld [vmem:[%s8052_s1 + $0x484] sm:$0xf]  ;;  %v3972_v13 = vor.u32 %v5157_v3, %v3971_v0 }
  0x2e   :  { %1519 = vmatpush.bf16.msrb.mxu2 %v4116_v15  ;;  %v4505_v10 = vld [vmem:[%s8052_s1 + $0x4a4] sm:$0xf0]  ;;  %v4763_v11 = vld [vmem:[%s8052_s1 + $0x680] sm:$0xf]  ;;  %v5355_v12 = vld [vmem:[%s8052_s1 + $0x6a0] sm:$0xf0]  ;;  %v4260_v16 = vor.u32 %v5229_v5, %v4259_v4  ;;  %v4220_v17 = vor.u32 %v5215_v7, %v4217_v8 }
  0x2f   :  { %1538 = vmatpush.bf16.msrb.mxu3 %v4404_v18  ;;  %v5207_v14 = vld [vmem:[%s8052_s1 + $0x204] sm:$0xf]  ;;  %v4189_v15 = vld [vmem:[%s8052_s1 + $0x224] sm:$0xf0]  ;;  %v4508_v21 = vor.u32 %v5287_v9, %v4505_v10  ;;  %v5220_v22 = vld [vmem:[%s8052_s1 + $0x268] sm:$0xf0] }
  0x30   :  { %1482 = vmatpush.bf16.msrb.mxu0 %v4364_v19  ;;  %v3935_v18 = vld [vmem:[%s8052_s1 + $0x8] sm:$0xf]  ;;  %v5148_v19 = vld [vmem:[%s8052_s1 + $0x28] sm:$0xf0]  ;;  %v5279_v24 = vld [vmem:[%s8052_s1 + $0x444] sm:$0xf]  ;;  %v4192_v26 = vor.u32 %v5207_v14, %v4189_v15 }
  0x31   :  { %1501 = vmatpush.bf16.msrb.mxu1 %v4652_v23  ;;  %v4223_v20 = vld [vmem:[%s8052_s1 + $0x248] sm:$0xf]  ;;  %v4764_v23 = vor.u32 %v5355_v12, %v4763_v11  ;;  %v5351_v27 = vld [vmem:[%s8052_s1 + $0x684] sm:$0xf]  ;;  %v3936_v29 = vor.u32 %v5148_v19, %v3935_v18  ;;  %v4727_v32 = vld [vmem:[%s8052_s1 + $0x638] sm:$0xf] }
  0x32   :  { %1520 = vmatpush.bf16.msrb.mxu2 %v4080_v30  ;;  %v4477_v25 = vld [vmem:[%s8052_s1 + $0x464] sm:$0xf0]  ;;  %v4224_v30 = vor.u32 %v5220_v22, %v4223_v20  ;;  %v5346_v33 = vld [vmem:[%s8052_s1 + $0x658] sm:$0xf0]  ;;  %v4153_v36 = vld [vmem:[%s8052_s1 + $0x1dc] sm:$0xf0] }
  0x33   :  { %1539 = vmatpush.bf16.msrb.mxu3 %v4368_v34  ;;  %1416 = vmatmul.bf16.gmra.mxu0 %v5951_v39  ;;  %v4765_v28 = vld [vmem:[%s8052_s1 + $0x6a4] sm:$0xf0]  ;;  %v4480_v31 = vor.u32 %v5279_v24, %v4477_v25  ;;  %v5198_v34 = vld [vmem:[%s8052_s1 + $0x1bc] sm:$0xf]  ;;  %v4441_v38 = vld [vmem:[%s8052_s1 + $0x41c] sm:$0xf0]  ;;  %v4728_v42 = vor.u32 %v5346_v33, %v4727_v32 }
  0x34   :  { %1483 = vmatpush.bf16.msrb.mxu0 %v4328_v35  ;;  %1435 = vmatmul.bf16.gmra.mxu1 %v5962_v44  ;;  %v4768_v35 = vor.u32 %v5351_v27, %v4765_v28  ;;  %v5270_v37 = vld [vmem:[%s8052_s1 + $0x3fc] sm:$0xf]  ;;  %v4729_v41 = vld [vmem:[%s8052_s1 + $0x65c] sm:$0xf0]  ;;  %v4156_v43 = vor.u32 %v5198_v34, %v4153_v36  ;;  %v4691_v48 = vld [vmem:[%s8052_s1 + $0x5f0] sm:$0xf] }
  0x35   :  { %1502 = vmatpush.bf16.msrb.mxu1 %v4616_v40  ;;  %1454 = vmatmul.bf16.gmra.mxu2 %v5964_v45  ;;  %v5342_v40 = vld [vmem:[%s8052_s1 + $0x63c] sm:$0xf]  ;;  %v4444_v47 = vor.u32 %v5270_v37, %v4441_v38  ;;  %v4117_v54 = vld [vmem:[%s8052_s1 + $0x194] sm:$0xf0]  ;;  %v5261_v55 = vld [vmem:[%s8052_s1 + $0x3b4] sm:$0xf] }
  0x36   :  { %1473 = vmatmul.bf16.gmra.mxu3 %v5951_v39  ;;  %1521 = vmatpush.bf16.msrb.mxu2 %v4044_v49  ;;  %v5337_v49 = vld [vmem:[%s8052_s1 + $0x610] sm:$0xf0]  ;;  %v4405_v56 = vld [vmem:[%s8052_s1 + $0x3d4] sm:$0xf0]  ;;  %v4655_v62 = vld [vmem:[%s8052_s1 + $0x5a8] sm:$0xf] }
  0x37   :  { %1540 = vmatpush.bf16.msrb.mxu3 %v4332_v50  ;;  %v5189_v50 = vld [vmem:[%s8052_s1 + $0x174] sm:$0xf]  ;;  %v4693_v58 = vld [vmem:[%s8052_s1 + $0x614] sm:$0xf0]  ;;  %v4692_v59 = vor.u32 %v5337_v49, %v4691_v48  ;;  %v4408_v61 = vor.u32 %v5261_v55, %v4405_v56  ;;  %v5180_v0 = vld [vmem:[%s8052_s1 + $0x12c] sm:$0xf] }
  0x38   :  { %1484 = vmatpush.bf16.msrb.mxu0 %v4292_v53  ;;  %v4732_v53 = vor.u32 %v5342_v40, %v4729_v41  ;;  %v4120_v60 = vor.u32 %v5189_v50, %v4117_v54  ;;  %v5252_v3 = vld [vmem:[%s8052_s1 + $0x36c] sm:$0xf]  ;;  %v4369_v4 = vld [vmem:[%s8052_s1 + $0x38c] sm:$0xf0]  ;;  %v4619_v10 = vld [vmem:[%s8052_s1 + $0x560] sm:$0xf] }
  0x39   :  { %1503 = vmatpush.bf16.msrb.mxu1 %v4580_v57  ;;  %v5333_v57 = vld [vmem:[%s8052_s1 + $0x5f4] sm:$0xf]  ;;  %v5324_v5 = vld [vmem:[%s8052_s1 + $0x5ac] sm:$0xf]  ;;  %v4372_v9 = vor.u32 %v5252_v3, %v4369_v4  ;;  %v5319_v11 = vld [vmem:[%s8052_s1 + $0x580] sm:$0xf0] }
  0x3a   :  { %1522 = vmatpush.bf16.msrb.mxu2 %v4008_v63  ;;  %v5328_v63 = vld [vmem:[%s8052_s1 + $0x5c8] sm:$0xf0]  ;;  %v5171_v12 = vld [vmem:[%s8052_s1 + $0xe4] sm:$0xf]  ;;  %v4045_v14 = vld [vmem:[%s8052_s1 + $0x104] sm:$0xf0]  ;;  %v4620_v19 = vor.u32 %v5319_v11, %v4619_v10 }
  0x3b   :  { %1541 = vmatpush.bf16.msrb.mxu3 %v4296_v1  ;;  %v4696_v1 = vor.u32 %v5333_v57, %v4693_v58  ;;  %v4656_v7 = vor.u32 %v5328_v63, %v4655_v62  ;;  %v5243_v15 = vld [vmem:[%s8052_s1 + $0x324] sm:$0xf]  ;;  %v4621_v18 = vld [vmem:[%s8052_s1 + $0x584] sm:$0xf0]  ;;  %v4583_v20 = vld [vmem:[%s8052_s1 + $0x518] sm:$0xf] }
  0x3c   :  { %1485 = vmatpush.bf16.msrb.mxu0 %v4256_v2  ;;  %v4081_v2 = vld [vmem:[%s8052_s1 + $0x14c] sm:$0xf0]  ;;  %v5162_v24 = vld [vmem:[%s8052_s1 + $0x9c] sm:$0xf]  ;;  %v4009_v25 = vld [vmem:[%s8052_s1 + $0xbc] sm:$0xf0] }
  0x3d   :  { %1504 = vmatpush.bf16.msrb.mxu1 %v4544_v6  ;;  %v4657_v6 = vld [vmem:[%s8052_s1 + $0x5cc] sm:$0xf0]  ;;  %v4084_v8 = vor.u32 %v5180_v0, %v4081_v2  ;;  %v5234_v27 = vld [vmem:[%s8052_s1 + $0x2dc] sm:$0xf]  ;;  %v4297_v28 = vld [vmem:[%s8052_s1 + $0x2fc] sm:$0xf0] }
  0x3e   :  { %1523 = vmatpush.bf16.msrb.mxu2 %v3972_v13  ;;  %v4660_v13 = vor.u32 %v5324_v5, %v4657_v6 }
  0x3f   :  { %1542 = vmatpush.bf16.msrb.mxu3 %v4260_v16  ;;  %v4333_v16 = vld [vmem:[%s8052_s1 + $0x344] sm:$0xf0] }
  0x40   :  { %1486 = vmatpush.bf16.msrb.mxu0 %v4220_v17  ;;  %v5315_v17 = vld [vmem:[%s8052_s1 + $0x564] sm:$0xf]  ;;  %v4336_v22 = vor.u32 %v5243_v15, %v4333_v16 }
  0x41   :  { %1505 = vmatpush.bf16.msrb.mxu1 %v4508_v21  ;;  %v4048_v21 = vor.u32 %v5171_v12, %v4045_v14 }
  0x42   :  { %1524 = vmatpush.bf16.msrb.mxu2 %v3936_v29 }
  0x43   :  { %1543 = vmatpush.bf16.msrb.mxu3 %v4224_v30  ;;  %1487 = vmatmul.bf16.vlgmr.msrb.gmra.mxu0 %v5838_v51 }
  0x44   :  { %1555 = vmatpush.bf16.msra.mxu0 %v4764_v23  ;;  %1506 = vmatmul.bf16.vlgmr.msrb.gmra.mxu1 %v5840_v52  ;;  %v5310_v23 = vld [vmem:[%s8052_s1 + $0x538] sm:$0xf0] }
  0x45   :  { %1574 = vmatpush.bf16.msra.mxu1 %v4192_v26  ;;  %1525 = vmatmul.bf16.vlgmr.msrb.gmra.mxu2 %v5827_v46  ;;  %v4624_v26 = vor.u32 %v5315_v17, %v4621_v18 }
  0x46   :  { %1593 = vmatpush.bf16.msra.mxu2 %v4480_v31  ;;  %1544 = vmatmul.bf16.vlgmr.msrb.gmra.mxu3 %v5838_v51 }
  0x47   :  { %1612 = vmatpush.bf16.msra.mxu3 %v4768_v35 }
  0x48   :  { %1556 = vmatpush.bf16.msra.mxu0 %v4728_v42 }
  0x49   :  { %1575 = vmatpush.bf16.msra.mxu1 %v4156_v43 }
  0x4a   :  { %1594 = vmatpush.bf16.msra.mxu2 %v4444_v47 }
  0x4b   :  { %1613 = vmatpush.bf16.msra.mxu3 %v4732_v53 }
  0x4c   :  { %1557 = vmatpush.bf16.msra.mxu0 %v4692_v59 }
  0x4d   :  { %1576 = vmatpush.bf16.msra.mxu1 %v4120_v60 }
  0x4e   :  { %1595 = vmatpush.bf16.msra.mxu2 %v4408_v61 }
  0x4f   :  { %1614 = vmatpush.bf16.msra.mxu3 %v4696_v1 }
  0x50   :  { %1558 = vmatpush.bf16.msra.mxu0 %v4656_v7 }
  0x51   :  { %1577 = vmatpush.bf16.msra.mxu1 %v4084_v8 }
  0x52   :  { %1596 = vmatpush.bf16.msra.mxu2 %v4372_v9 }
  0x53   :  { %1615 = vmatpush.bf16.msra.mxu3 %v4660_v13 }
  0x54   :  { %9 = vsyncpa [#allocation3], 0  ;;  %v5306_v29 = vld [vmem:[%s8052_s1 + $0x51c] sm:$0xf]  ;;  %v4585_v30 = vld [vmem:[%s8052_s1 + $0x53c] sm:$0xf0]  ;;  %1559 = vmatpush.bf16.msra.mxu0 %v4620_v19  ;;  %v4584_v31 = vor.u32 %v5310_v23, %v4583_v20  ;;  %v4012_v32 = vor.u32 %v5162_v24, %v4009_v25  ;;  %v4300_v33 = vor.u32 %v5234_v27, %v4297_v28  ;;  %1511 = vmatmul.bf16.gmra.mxu1 %v5964_v45 }
  0x55   :  { %1578 = vmatpush.bf16.msra.mxu1 %v4048_v21  ;;  %v4547_v34 = vld [vmem:[%s8052_s1 + $0x4d0] sm:$0xf]  ;;  %v5301_v35 = vld [vmem:[%s8052_s1 + $0x4f0] sm:$0xf0]  ;;  %1492 = vmatmul.bf16.gmra.mxu0 %v5962_v44  ;;  %v4588_v37 = vor.u32 %v5306_v29, %v4585_v30  ;;  %v3973_v38 = vld [vmem:[%s8052_s1 + $0x74] sm:$0xf0] }
  0x56   :  { %1597 = vmatpush.bf16.msra.mxu2 %v4336_v22  ;;  %v5153_v36 = vld [vmem:[%s8052_s1 + $0x54] sm:$0xf]  ;;  %v4261_v41 = vld [vmem:[%s8052_s1 + $0x2b4] sm:$0xf0]  ;;  %1549 = vmatmul.bf16.gmra.mxu3 %v5962_v44  ;;  %v4548_v47 = vor.u32 %v5301_v35, %v4547_v34  ;;  %v4511_v48 = vld [vmem:[%s8052_s1 + $0x488] sm:$0xf] }
  0x57   :  { %1616 = vmatpush.bf16.msra.mxu3 %v4624_v26  ;;  %v5225_v40 = vld [vmem:[%s8052_s1 + $0x294] sm:$0xf]  ;;  %1530 = vmatmul.bf16.gmra.mxu2 %v5951_v39  ;;  %v4549_v43 = vld [vmem:[%s8052_s1 + $0x4f4] sm:$0xf0]  ;;  %v5292_v49 = vld [vmem:[%s8052_s1 + $0x4a8] sm:$0xf0]  ;;  %v3976_v50 = vor.u32 %v5153_v36, %v3973_v38 }
  0x58   :  { %v5297_v42 = vld [vmem:[%s8052_s1 + $0x4d4] sm:$0xf]  ;;  %1560 = vmatpush.bf16.msra.mxu0 %v4584_v31  ;;  %v4264_v53 = vor.u32 %v5225_v40, %v4261_v41  ;;  %v5144_v54 = vld [vmem:[%s8052_s1 + $0xc] sm:$0xf]  ;;  %v3937_v55 = vld [vmem:[%s8052_s1 + $0x2c] sm:$0xf0]  ;;  %v4512_v0 = vor.u32 %v5292_v49, %v4511_v48 }
  0x59   :  { %1579 = vmatpush.bf16.msra.mxu1 %v4012_v32  ;;  %v5216_v56 = vld [vmem:[%s8052_s1 + $0x24c] sm:$0xf]  ;;  %v4552_v57 = vor.u32 %v5297_v42, %v4549_v43  ;;  %v4225_v58 = vld [vmem:[%s8052_s1 + $0x26c] sm:$0xf0]  ;;  %v4195_v61 = vld [vmem:[%s8052_s1 + $0x208] sm:$0xf]  ;;  %v3940_v4 = vor.u32 %v5144_v54, %v3937_v55 }
  0x5a   :  { %1598 = vmatpush.bf16.msra.mxu2 %v4300_v33  ;;  %v5288_v59 = vld [vmem:[%s8052_s1 + $0x48c] sm:$0xf]  ;;  %v4513_v60 = vld [vmem:[%s8052_s1 + $0x4ac] sm:$0xf0]  ;;  %v4483_v63 = vld [vmem:[%s8052_s1 + $0x448] sm:$0xf]  ;;  %v4228_v5 = vor.u32 %v5216_v56, %v4225_v58 }
  0x5b   :  { %1617 = vmatpush.bf16.msra.mxu3 %v4588_v37  ;;  %v5212_v62 = vld [vmem:[%s8052_s1 + $0x228] sm:$0xf0]  ;;  %v4771_v2 = vld [vmem:[%s8052_s1 + $0x688] sm:$0xf]  ;;  %v4197_v7 = vld [vmem:[%s8052_s1 + $0x22c] sm:$0xf0]  ;;  %v4516_v8 = vor.u32 %v5288_v59, %v4513_v60 }
  0x5c   :  { %1561 = vmatpush.bf16.msra.mxu0 %v4548_v47  ;;  %v5284_v1 = vld [vmem:[%s8052_s1 + $0x468] sm:$0xf0]  ;;  %v4196_v9 = vor.u32 %v5212_v62, %v4195_v61  ;;  %v4159_v13 = vld [vmem:[%s8052_s1 + $0x1c0] sm:$0xf]  ;;  %v5203_v14 = vld [vmem:[%s8052_s1 + $0x1e0] sm:$0xf0] }
  0x5d   :  { %v5356_v3 = vld [vmem:[%s8052_s1 + $0x6a8] sm:$0xf0]  ;;  %1580 = vmatpush.bf16.msra.mxu1 %v3976_v50  ;;  %v4484_v10 = vor.u32 %v5284_v1, %v4483_v63  ;;  %v4447_v15 = vld [vmem:[%s8052_s1 + $0x400] sm:$0xf]  ;;  %v5275_v16 = vld [vmem:[%s8052_s1 + $0x420] sm:$0xf0]  ;;  %v4160_v21 = vor.u32 %v5203_v14, %v4159_v13 }
  0x5e   :  { %1599 = vmatpush.bf16.msra.mxu2 %v4264_v53  ;;  %v5208_v6 = vld [vmem:[%s8052_s1 + $0x20c] sm:$0xf]  ;;  %v4772_v11 = vor.u32 %v5356_v3, %v4771_v2  ;;  %v4735_v17 = vld [vmem:[%s8052_s1 + $0x640] sm:$0xf]  ;;  %v5347_v18 = vld [vmem:[%s8052_s1 + $0x660] sm:$0xf0]  ;;  %v4448_v22 = vor.u32 %v5275_v16, %v4447_v15 }
  0x5f   :  { %1618 = vmatpush.bf16.msra.mxu3 %v4552_v57  ;;  %v4200_v12 = vor.u32 %v5208_v6, %v4197_v7  ;;  %v5199_v19 = vld [vmem:[%s8052_s1 + $0x1c4] sm:$0xf]  ;;  %v4161_v20 = vld [vmem:[%s8052_s1 + $0x1e4] sm:$0xf0]  ;;  %v4736_v23 = vor.u32 %v5347_v18, %v4735_v17  ;;  %v4123_v24 = vld [vmem:[%s8052_s1 + $0x178] sm:$0xf] }
  0x60   :  { %1562 = vmatpush.bf16.msra.mxu0 %v4512_v0  ;;  %v5194_v25 = vld [vmem:[%s8052_s1 + $0x198] sm:$0xf0]  ;;  %v4411_v26 = vld [vmem:[%s8052_s1 + $0x3b8] sm:$0xf]  ;;  %v4164_v27 = vor.u32 %v5199_v19, %v4161_v20  ;;  %v4125_v32 = vld [vmem:[%s8052_s1 + $0x19c] sm:$0xf0] }
  0x61   :  { %1581 = vmatpush.bf16.msra.mxu1 %v3940_v4  ;;  %v5266_v28 = vld [vmem:[%s8052_s1 + $0x3d8] sm:$0xf0]  ;;  %v4699_v29 = vld [vmem:[%s8052_s1 + $0x5f8] sm:$0xf]  ;;  %v4124_v33 = vor.u32 %v5194_v25, %v4123_v24  ;;  %v4087_v36 = vld [vmem:[%s8052_s1 + $0x130] sm:$0xf] }
  0x62   :  { %1600 = vmatpush.bf16.msra.mxu2 %v4228_v5  ;;  %v5338_v30 = vld [vmem:[%s8052_s1 + $0x618] sm:$0xf0]  ;;  %v4412_v34 = vor.u32 %v5266_v28, %v4411_v26  ;;  %v5185_v37 = vld [vmem:[%s8052_s1 + $0x150] sm:$0xf0]  ;;  %v4375_v38 = vld [vmem:[%s8052_s1 + $0x370] sm:$0xf] }
  0x63   :  { %1619 = vmatpush.bf16.msra.mxu3 %v4516_v8  ;;  %v5190_v31 = vld [vmem:[%s8052_s1 + $0x17c] sm:$0xf]  ;;  %v4700_v35 = vor.u32 %v5338_v30, %v4699_v29  ;;  %v5257_v41 = vld [vmem:[%s8052_s1 + $0x390] sm:$0xf0]  ;;  %v4663_v42 = vld [vmem:[%s8052_s1 + $0x5b0] sm:$0xf]  ;;  %v4088_v49 = vor.u32 %v5185_v37, %v4087_v36 }
  0x64   :  { %1631 = vmatpush.bf16.msrb.mxu0 %v4196_v9  ;;  %1582 = vmatmul.bf16.vlgmr.msra.gmra.mxu1 %v5827_v46  ;;  %v4128_v40 = vor.u32 %v5190_v31, %v4125_v32  ;;  %v5329_v43 = vld [vmem:[%s8052_s1 + $0x5d0] sm:$0xf0]  ;;  %v4089_v48 = vld [vmem:[%s8052_s1 + $0x154] sm:$0xf0]  ;;  %v4376_v50 = vor.u32 %v5257_v41, %v4375_v38  ;;  %v4051_v54 = vld [vmem:[%s8052_s1 + $0xe8] sm:$0xf] }
  0x65   :  { %1650 = vmatpush.bf16.msrb.mxu1 %v4484_v10  ;;  %1563 = vmatmul.bf16.vlgmr.msra.gmra.mxu0 %v5840_v52  ;;  %v5181_v47 = vld [vmem:[%s8052_s1 + $0x134] sm:$0xf]  ;;  %v4664_v53 = vor.u32 %v5329_v43, %v4663_v42  ;;  %v5176_v55 = vld [vmem:[%s8052_s1 + $0x108] sm:$0xf0]  ;;  %v4339_v56 = vld [vmem:[%s8052_s1 + $0x328] sm:$0xf] }
  0x66   :  { %1669 = vmatpush.bf16.msrb.mxu2 %v4772_v11  ;;  %1620 = vmatmul.bf16.vlgmr.msra.gmra.mxu3 %v5840_v52  ;;  %v4092_v57 = vor.u32 %v5181_v47, %v4089_v48  ;;  %v5248_v58 = vld [vmem:[%s8052_s1 + $0x348] sm:$0xf0]  ;;  %v4627_v59 = vld [vmem:[%s8052_s1 + $0x568] sm:$0xf]  ;;  %v4053_v62 = vld [vmem:[%s8052_s1 + $0x10c] sm:$0xf0]  ;;  %v4052_v63 = vor.u32 %v5176_v55, %v4051_v54 }
  0x67   :  { %1688 = vmatpush.bf16.msrb.mxu3 %v4200_v12  ;;  %1601 = vmatmul.bf16.vlgmr.msra.gmra.mxu2 %v5838_v51  ;;  %v5320_v60 = vld [vmem:[%s8052_s1 + $0x588] sm:$0xf0]  ;;  %v4340_v0 = vor.u32 %v5248_v58, %v4339_v56  ;;  %v4015_v2 = vld [vmem:[%s8052_s1 + $0xa0] sm:$0xf]  ;;  %v5167_v3 = vld [vmem:[%s8052_s1 + $0xc0] sm:$0xf0] }
  0x68   :  { %1632 = vmatpush.bf16.msrb.mxu0 %v4160_v21  ;;  %v5172_v61 = vld [vmem:[%s8052_s1 + $0xec] sm:$0xf]  ;;  %v4628_v1 = vor.u32 %v5320_v60, %v4627_v59  ;;  %v4303_v4 = vld [vmem:[%s8052_s1 + $0x2e0] sm:$0xf]  ;;  %v5239_v6 = vld [vmem:[%s8052_s1 + $0x300] sm:$0xf0]  ;;  %v4016_v11 = vor.u32 %v5167_v3, %v4015_v2 }
  0x69   :  { %1651 = vmatpush.bf16.msrb.mxu1 %v4448_v22  ;;  %v4056_v5 = vor.u32 %v5172_v61, %v4053_v62  ;;  %v4591_v7 = vld [vmem:[%s8052_s1 + $0x520] sm:$0xf]  ;;  %v5311_v8 = vld [vmem:[%s8052_s1 + $0x540] sm:$0xf0]  ;;  %v4017_v10 = vld [vmem:[%s8052_s1 + $0xc4] sm:$0xf0]  ;;  %v4304_v12 = vor.u32 %v5239_v6, %v4303_v4 }
  0x6a   :  { %1670 = vmatpush.bf16.msrb.mxu2 %v4736_v23  ;;  %v5163_v9 = vld [vmem:[%s8052_s1 + $0xa4] sm:$0xf]  ;;  %v4592_v13 = vor.u32 %v5311_v8, %v4591_v7  ;;  %v3979_v14 = vld [vmem:[%s8052_s1 + $0x58] sm:$0xf]  ;;  %v5158_v15 = vld [vmem:[%s8052_s1 + $0x78] sm:$0xf0] }
  0x6b   :  { %1689 = vmatpush.bf16.msrb.mxu3 %v4164_v27  ;;  %v4267_v16 = vld [vmem:[%s8052_s1 + $0x298] sm:$0xf]  ;;  %v4020_v17 = vor.u32 %v5163_v9, %v4017_v10  ;;  %v5230_v18 = vld [vmem:[%s8052_s1 + $0x2b8] sm:$0xf0]  ;;  %v3981_v22 = vld [vmem:[%s8052_s1 + $0x7c] sm:$0xf0]  ;;  %v3980_v23 = vor.u32 %v5158_v15, %v3979_v14 }
  0x6c   :  { %1633 = vmatpush.bf16.msrb.mxu0 %v4124_v33  ;;  %v4555_v19 = vld [vmem:[%s8052_s1 + $0x4d8] sm:$0xf]  ;;  %v5302_v20 = vld [vmem:[%s8052_s1 + $0x4f8] sm:$0xf0]  ;;  %v3943_v24 = vld [vmem:[%s8052_s1 + $0x10] sm:$0xf]  ;;  %v4268_v26 = vor.u32 %v5230_v18, %v4267_v16 }
  0x6d   :  { %1652 = vmatpush.bf16.msrb.mxu1 %v4412_v34  ;;  %v5154_v21 = vld [vmem:[%s8052_s1 + $0x5c] sm:$0xf]  ;;  %v5149_v25 = vld [vmem:[%s8052_s1 + $0x30] sm:$0xf0]  ;;  %v4556_v27 = vor.u32 %v5302_v20, %v4555_v19  ;;  %v4231_v28 = vld [vmem:[%s8052_s1 + $0x250] sm:$0xf] }
  0x6e   :  { %1671 = vmatpush.bf16.msrb.mxu2 %v4700_v35  ;;  %v5221_v29 = vld [vmem:[%s8052_s1 + $0x270] sm:$0xf0]  ;;  %v4519_v30 = vld [vmem:[%s8052_s1 + $0x490] sm:$0xf]  ;;  %v3984_v31 = vor.u32 %v5154_v21, %v3981_v22  ;;  %v3945_v34 = vld [vmem:[%s8052_s1 + $0x34] sm:$0xf0]  ;;  %v3944_v38 = vor.u32 %v5149_v25, %v3943_v24 }
  0x6f   :  { %1690 = vmatpush.bf16.msrb.mxu3 %v4128_v40  ;;  %v5293_v32 = vld [vmem:[%s8052_s1 + $0x4b0] sm:$0xf0]  ;;  %v5280_v35 = vld [vmem:[%s8052_s1 + $0x44c] sm:$0xf]  ;;  %v4485_v36 = vld [vmem:[%s8052_s1 + $0x46c] sm:$0xf0]  ;;  %v4232_v43 = vor.u32 %v5221_v29, %v4231_v28 }
  0x70   :  { %1634 = vmatpush.bf16.msrb.mxu0 %v4088_v49  ;;  %v5145_v33 = vld [vmem:[%s8052_s1 + $0x14] sm:$0xf]  ;;  %v5352_v37 = vld [vmem:[%s8052_s1 + $0x68c] sm:$0xf]  ;;  %v4773_v40 = vld [vmem:[%s8052_s1 + $0x6ac] sm:$0xf0]  ;;  %v4520_v47 = vor.u32 %v5293_v32, %v4519_v30 }
  0x71   :  { %1653 = vmatpush.bf16.msrb.mxu1 %v4376_v50  ;;  %v4203_v41 = vld [vmem:[%s8052_s1 + $0x210] sm:$0xf]  ;;  %v5213_v42 = vld [vmem:[%s8052_s1 + $0x230] sm:$0xf0]  ;;  %v3948_v50 = vor.u32 %v5145_v33, %v3945_v34  ;;  %v4776_v54 = vor.u32 %v5352_v37, %v4773_v40  ;;  %v4449_v58 = vld [vmem:[%s8052_s1 + $0x424] sm:$0xf0] }
  0x72   :  { %1672 = vmatpush.bf16.msrb.mxu2 %v4664_v53  ;;  %v4491_v48 = vld [vmem:[%s8052_s1 + $0x450] sm:$0xf]  ;;  %v5285_v49 = vld [vmem:[%s8052_s1 + $0x470] sm:$0xf0]  ;;  %v4488_v53 = vor.u32 %v5280_v35, %v4485_v36  ;;  %v4204_v55 = vor.u32 %v5213_v42, %v4203_v41  ;;  %v5343_v59 = vld [vmem:[%s8052_s1 + $0x644] sm:$0xf] }
  0x73   :  { %1691 = vmatpush.bf16.msrb.mxu3 %v4092_v57  ;;  %v4492_v56 = vor.u32 %v5285_v49, %v4491_v48  ;;  %v5271_v57 = vld [vmem:[%s8052_s1 + $0x404] sm:$0xf]  ;;  %v4737_v60 = vld [vmem:[%s8052_s1 + $0x664] sm:$0xf0]  ;;  %v5204_v62 = vld [vmem:[%s8052_s1 + $0x1e8] sm:$0xf0] }
  0x74   :  { %1635 = vmatpush.bf16.msrb.mxu0 %v4052_v63  ;;  %1587 = vmatmul.bf16.gmra.mxu1 %v5951_v39  ;;  %v4167_v61 = vld [vmem:[%s8052_s1 + $0x1c8] sm:$0xf]  ;;  %v4740_v2 = vor.u32 %v5343_v59, %v4737_v60  ;;  %v5262_v4 = vld [vmem:[%s8052_s1 + $0x3bc] sm:$0xf]  ;;  %v4701_v8 = vld [vmem:[%s8052_s1 + $0x61c] sm:$0xf0] }
  0x75   :  { %1654 = vmatpush.bf16.msrb.mxu1 %v4340_v0  ;;  %1568 = vmatmul.bf16.gmra.mxu0 %v5964_v45  ;;  %v4455_v63 = vld [vmem:[%s8052_s1 + $0x408] sm:$0xf]  ;;  %v5276_v0 = vld [vmem:[%s8052_s1 + $0x428] sm:$0xf0]  ;;  %v4168_v3 = vor.u32 %v5204_v62, %v4167_v61  ;;  %v5334_v6 = vld [vmem:[%s8052_s1 + $0x5fc] sm:$0xf] }
  0x76   :  { %1673 = vmatpush.bf16.msrb.mxu2 %v4628_v1  ;;  %1625 = vmatmul.bf16.gmra.mxu3 %v5964_v45  ;;  %v4452_v1 = vor.u32 %v5271_v57, %v4449_v58  ;;  %v4456_v7 = vor.u32 %v5276_v0, %v4455_v63  ;;  %v4131_v9 = vld [vmem:[%s8052_s1 + $0x180] sm:$0xf]  ;;  %v5195_v10 = vld [vmem:[%s8052_s1 + $0x1a0] sm:$0xf0]  ;;  %v4704_v14 = vor.u32 %v5334_v6, %v4701_v8  ;;  %v5253_v16 = vld [vmem:[%s8052_s1 + $0x374] sm:$0xf] }
  0x77   :  { %1692 = vmatpush.bf16.msrb.mxu3 %v4056_v5  ;;  %1606 = vmatmul.bf16.gmra.mxu2 %v5962_v44  ;;  %v4413_v5 = vld [vmem:[%s8052_s1 + $0x3dc] sm:$0xf0]  ;;  %v4132_v15 = vor.u32 %v5195_v10, %v4131_v9  ;;  %v5325_v18 = vld [vmem:[%s8052_s1 + $0x5b4] sm:$0xf]  ;;  %v4665_v20 = vld [vmem:[%s8052_s1 + $0x5d4] sm:$0xf0] }
  0x78   :  { %1636 = vmatpush.bf16.msrb.mxu0 %v4016_v11  ;;  %v4419_v11 = vld [vmem:[%s8052_s1 + $0x3c0] sm:$0xf]  ;;  %v4095_v21 = vld [vmem:[%s8052_s1 + $0x138] sm:$0xf]  ;;  %v5186_v22 = vld [vmem:[%s8052_s1 + $0x158] sm:$0xf0] }
  0x79   :  { %1655 = vmatpush.bf16.msrb.mxu1 %v4304_v12  ;;  %v5267_v12 = vld [vmem:[%s8052_s1 + $0x3e0] sm:$0xf0]  ;;  %v5258_v24 = vld [vmem:[%s8052_s1 + $0x398] sm:$0xf0]  ;;  %v5244_v28 = vld [vmem:[%s8052_s1 + $0x32c] sm:$0xf] }
  0x7a   :  { %1674 = vmatpush.bf16.msrb.mxu2 %v4592_v13  ;;  %v4416_v13 = vor.u32 %v5262_v4, %v4413_v5  ;;  %v4420_v19 = vor.u32 %v5267_v12, %v4419_v11  ;;  %v4341_v29 = vld [vmem:[%s8052_s1 + $0x34c] sm:$0xf0]  ;;  %v5316_v30 = vld [vmem:[%s8052_s1 + $0x56c] sm:$0xf]  ;;  %v5177_v34 = vld [vmem:[%s8052_s1 + $0x110] sm:$0xf0] }
  0x7b   :  { %1693 = vmatpush.bf16.msrb.mxu3 %v4020_v17  ;;  %v4377_v17 = vld [vmem:[%s8052_s1 + $0x394] sm:$0xf0]  ;;  %v4629_v32 = vld [vmem:[%s8052_s1 + $0x58c] sm:$0xf0]  ;;  %v5249_v36 = vld [vmem:[%s8052_s1 + $0x350] sm:$0xf0]  ;;  %v4344_v37 = vor.u32 %v5244_v28, %v4341_v29 }
  0x7c   :  { %1637 = vmatpush.bf16.msrb.mxu0 %v3980_v23  ;;  %v4383_v23 = vld [vmem:[%s8052_s1 + $0x378] sm:$0xf]  ;;  %v4380_v25 = vor.u32 %v5253_v16, %v4377_v17  ;;  %v4059_v33 = vld [vmem:[%s8052_s1 + $0xf0] sm:$0xf]  ;;  %v5235_v41 = vld [vmem:[%s8052_s1 + $0x2e4] sm:$0xf] }
  0x7d   :  { %1656 = vmatpush.bf16.msrb.mxu1 %v4268_v26  ;;  %v4668_v26 = vor.u32 %v5325_v18, %v4665_v20  ;;  %v4347_v35 = vld [vmem:[%s8052_s1 + $0x330] sm:$0xf]  ;;  %v4060_v40 = vor.u32 %v5177_v34, %v4059_v33  ;;  %v4305_v42 = vld [vmem:[%s8052_s1 + $0x304] sm:$0xf0]  ;;  %v5226_v58 = vld [vmem:[%s8052_s1 + $0x29c] sm:$0xf] }
  0x7e   :  { %1675 = vmatpush.bf16.msrb.mxu2 %v4556_v27  ;;  %v4096_v27 = vor.u32 %v5186_v22, %v4095_v21  ;;  %v4593_v48 = vld [vmem:[%s8052_s1 + $0x544] sm:$0xf0]  ;;  %v4269_v59 = vld [vmem:[%s8052_s1 + $0x2bc] sm:$0xf0]  ;;  %v5298_v60 = vld [vmem:[%s8052_s1 + $0x4dc] sm:$0xf] }
  0x7f   :  { %1694 = vmatpush.bf16.msrb.mxu3 %v3984_v31  ;;  %v4384_v31 = vor.u32 %v5258_v24, %v4383_v23  ;;  %v4023_v49 = vld [vmem:[%s8052_s1 + $0xa8] sm:$0xf]  ;;  %v4557_v62 = vld [vmem:[%s8052_s1 + $0x4fc] sm:$0xf0]  ;;  %v5159_v0 = vld [vmem:[%s8052_s1 + $0x80] sm:$0xf0] }
  0x80   :  { %1638 = vmatpush.bf16.msrb.mxu0 %v3944_v38  ;;  %v4632_v38 = vor.u32 %v5316_v30, %v4629_v32  ;;  %v3987_v63 = vld [vmem:[%s8052_s1 + $0x60] sm:$0xf]  ;;  %v5217_v4 = vld [vmem:[%s8052_s1 + $0x254] sm:$0xf]  ;;  %v4233_v5 = vld [vmem:[%s8052_s1 + $0x274] sm:$0xf0]  ;;  %v4560_v6 = vor.u32 %v5298_v60, %v4557_v62 }
  0x81   :  { %1657 = vmatpush.bf16.msrb.mxu1 %v4232_v43  ;;  %v5307_v43 = vld [vmem:[%s8052_s1 + $0x524] sm:$0xf]  ;;  %v5289_v8 = vld [vmem:[%s8052_s1 + $0x494] sm:$0xf]  ;;  %v4521_v9 = vld [vmem:[%s8052_s1 + $0x4b4] sm:$0xf0]  ;;  %v4236_v18 = vor.u32 %v5217_v4, %v4233_v5 }
  0x82   :  { %1676 = vmatpush.bf16.msrb.mxu2 %v4520_v47  ;;  %v4348_v47 = vor.u32 %v5249_v36, %v4347_v35  ;;  %v3951_v10 = vld [vmem:[%s8052_s1 + $0x18] sm:$0xf]  ;;  %v5150_v12 = vld [vmem:[%s8052_s1 + $0x38] sm:$0xf0]  ;;  %v5357_v16 = vld [vmem:[%s8052_s1 + $0x6b0] sm:$0xf0]  ;;  %v4524_v22 = vor.u32 %v5289_v8, %v4521_v9 }
  0x83   :  { %1695 = vmatpush.bf16.msrb.mxu3 %v3948_v50  ;;  %v5168_v50 = vld [vmem:[%s8052_s1 + $0xc8] sm:$0xf0]  ;;  %v5209_v17 = vld [vmem:[%s8052_s1 + $0x214] sm:$0xf]  ;;  %v4493_v21 = vld [vmem:[%s8052_s1 + $0x474] sm:$0xf0]  ;;  %v3952_v23 = vor.u32 %v5150_v12, %v3951_v10 }
  0x84   :  { %1707 = vmatpush.bf16.msra.mxu0 %v4488_v53  ;;  %1658 = vmatmul.bf16.vlgmr.msrb.gmra.mxu1 %v5838_v51  ;;  %v4311_v53 = vld [vmem:[%s8052_s1 + $0x2e8] sm:$0xf]  ;;  %v4024_v57 = vor.u32 %v5168_v50, %v4023_v49  ;;  %v5281_v20 = vld [vmem:[%s8052_s1 + $0x454] sm:$0xf]  ;;  %v5348_v32 = vld [vmem:[%s8052_s1 + $0x668] sm:$0xf0] }
  0x85   :  { %1726 = vmatpush.bf16.msra.mxu1 %v4776_v54  ;;  %1639 = vmatmul.bf16.vlgmr.msrb.gmra.mxu0 %v5827_v46  ;;  %v5240_v54 = vld [vmem:[%s8052_s1 + $0x308] sm:$0xf0]  ;;  %v5353_v24 = vld [vmem:[%s8052_s1 + $0x694] sm:$0xf]  ;;  %v4496_v29 = vor.u32 %v5281_v20, %v4493_v21  ;;  %v4169_v34 = vld [vmem:[%s8052_s1 + $0x1ec] sm:$0xf0] }
  0x86   :  { %1745 = vmatpush.bf16.msra.mxu2 %v4204_v55  ;;  %1696 = vmatmul.bf16.vlgmr.msrb.gmra.mxu3 %v5827_v46  ;;  %v4308_v55 = vor.u32 %v5235_v41, %v4305_v42  ;;  %v4312_v61 = vor.u32 %v5240_v54, %v4311_v53  ;;  %v5200_v33 = vld [vmem:[%s8052_s1 + $0x1cc] sm:$0xf]  ;;  %v4457_v36 = vld [vmem:[%s8052_s1 + $0x42c] sm:$0xf0]  ;;  %v5339_v49 = vld [vmem:[%s8052_s1 + $0x620] sm:$0xf0] }
  0x87   :  { %1764 = vmatpush.bf16.msra.mxu3 %v4492_v56  ;;  %1677 = vmatmul.bf16.vlgmr.msrb.gmra.mxu2 %v5840_v52  ;;  %v4596_v56 = vor.u32 %v5307_v43, %v4593_v48  ;;  %v5272_v35 = vld [vmem:[%s8052_s1 + $0x40c] sm:$0xf]  ;;  %v4172_v43 = vor.u32 %v5200_v33, %v4169_v34  ;;  %v4707_v48 = vld [vmem:[%s8052_s1 + $0x600] sm:$0xf]  ;;  %v5191_v50 = vld [vmem:[%s8052_s1 + $0x184] sm:$0xf] }
  0x88   :  { %1708 = vmatpush.bf16.msra.mxu0 %v4452_v1  ;;  %v4275_v1 = vld [vmem:[%s8052_s1 + $0x2a0] sm:$0xf]  ;;  %v4133_v54 = vld [vmem:[%s8052_s1 + $0x1a4] sm:$0xf0]  ;;  %v4671_v62 = vld [vmem:[%s8052_s1 + $0x5b8] sm:$0xf] }
  0x89   :  { %1727 = vmatpush.bf16.msra.mxu1 %v4740_v2  ;;  %v5231_v2 = vld [vmem:[%s8052_s1 + $0x2c0] sm:$0xf0]  ;;  %v4136_v60 = vor.u32 %v5191_v50, %v4133_v54  ;;  %v5254_v4 = vld [vmem:[%s8052_s1 + $0x37c] sm:$0xf]  ;;  %v4385_v5 = vld [vmem:[%s8052_s1 + $0x39c] sm:$0xf0] }
  0x8a   :  { %1746 = vmatpush.bf16.msra.mxu2 %v4168_v3  ;;  %v4272_v3 = vor.u32 %v5226_v58, %v4269_v59  ;;  %v4276_v11 = vor.u32 %v5231_v2, %v4275_v1  ;;  %v4709_v58 = vld [vmem:[%s8052_s1 + $0x624] sm:$0xf0]  ;;  %v4708_v59 = vor.u32 %v5339_v49, %v4707_v48  ;;  %v5326_v8 = vld [vmem:[%s8052_s1 + $0x5bc] sm:$0xf]  ;;  %v4673_v9 = vld [vmem:[%s8052_s1 + $0x5dc] sm:$0xf0] }
  0x8b   :  { %1765 = vmatpush.bf16.msra.mxu3 %v4456_v7  ;;  %v3988_v7 = vor.u32 %v5159_v0, %v3987_v63  ;;  %v5330_v63 = vld [vmem:[%s8052_s1 + $0x5d8] sm:$0xf0]  ;;  %v4349_v20 = vld [vmem:[%s8052_s1 + $0x354] sm:$0xf0]  ;;  %v5317_v21 = vld [vmem:[%s8052_s1 + $0x574] sm:$0xf] }
  0x8c   :  { %1709 = vmatpush.bf16.msra.mxu0 %v4416_v13  ;;  %v4239_v13 = vld [vmem:[%s8052_s1 + $0x258] sm:$0xf]  ;;  %v5182_v0 = vld [vmem:[%s8052_s1 + $0x13c] sm:$0xf]  ;;  %v4313_v33 = vld [vmem:[%s8052_s1 + $0x30c] sm:$0xf0] }
  0x8d   :  { %1728 = vmatpush.bf16.msra.mxu1 %v4704_v14  ;;  %v5222_v14 = vld [vmem:[%s8052_s1 + $0x278] sm:$0xf0]  ;;  %v4563_v48 = vld [vmem:[%s8052_s1 + $0x4e0] sm:$0xf]  ;;  %v5303_v49 = vld [vmem:[%s8052_s1 + $0x500] sm:$0xf0] }
  0x8e   :  { %1747 = vmatpush.bf16.msra.mxu2 %v4132_v15  ;;  %v4779_v15 = vld [vmem:[%s8052_s1 + $0x690] sm:$0xf]  ;;  %v5155_v50 = vld [vmem:[%s8052_s1 + $0x64] sm:$0xf]  ;;  %v3989_v54 = vld [vmem:[%s8052_s1 + $0x84] sm:$0xf0] }
  0x8f   :  { %1766 = vmatpush.bf16.msra.mxu3 %v4420_v19  ;;  %v4205_v19 = vld [vmem:[%s8052_s1 + $0x234] sm:$0xf0]  ;;  %s5566_s29 = smov 64   ;;  %vm2053_vm0 = vcmask 523264   ;;  %vm2106_vm2 = vcmask 130048   ;;  %s3889_s14 = sshll.u32 %s8055_s4, 4  ;;  %s3890_s14 = int_to_ptr.hbm [resolvable:$true] %s3889_s14 }
  0x90   :  { %1710 = vmatpush.bf16.msra.mxu0 %v4380_v25  ;;  %v4781_v25 = vld [vmem:[%s8052_s1 + $0x6b4] sm:$0xf0]  ;;  %v4208_v28 = vor.u32 %v5209_v17, %v4205_v19  ;;  %v4676_v17 = vor.u32 %v5326_v8, %v4673_v9  ;;  %v5245_v19 = vld [vmem:[%s8052_s1 + $0x334] sm:$0xf]  ;;  %v4241_v8 = vld [vmem:[%s8052_s1 + $0x27c] sm:$0xf0] }
  0x91   :  { %1729 = vmatpush.bf16.msra.mxu1 %v4668_v26  ;;  %v4240_v26 = vor.u32 %v5222_v14, %v4239_v13  ;;  %v4784_v30 = vor.u32 %v5353_v24, %v4781_v25  ;;  %v4388_v13 = vor.u32 %v5254_v4, %v4385_v5  ;;  %v4635_v14 = vld [vmem:[%s8052_s1 + $0x570] sm:$0xf]  ;;  %v4352_v25 = vor.u32 %v5245_v19, %v4349_v20  ;;  %v5290_v9 = vld [vmem:[%s8052_s1 + $0x49c] sm:$0xf]  ;;  %v4211_v20 = vld [vmem:[%s8052_s1 + $0x218] sm:$0xf] }
  0x92   :  { %1748 = vmatpush.bf16.msra.mxu2 %v4096_v27  ;;  %v4780_v27 = vor.u32 %v5357_v16, %v4779_v15  ;;  %v5321_v15 = vld [vmem:[%s8052_s1 + $0x590] sm:$0xf0]  ;;  %v5358_v19 = vld [vmem:[%s8052_s1 + $0x6b8] sm:$0xf0]  ;;  %s5569_s15 = smov 384   ;;  %s5570_s16 = smov 24  }
  0x93   :  { %1767 = vmatpush.bf16.msra.mxu3 %v4384_v31  ;;  %v4743_v31 = vld [vmem:[%s8052_s1 + $0x648] sm:$0xf]  ;;  %v5173_v16 = vld [vmem:[%s8052_s1 + $0xf4] sm:$0xf] }
  0x94   :  { %1711 = vmatpush.bf16.msra.mxu0 %v4344_v37  ;;  %1663 = vmatmul.bf16.gmra.mxu1 %v5962_v44  ;;  %v4744_v42 = vor.u32 %v5348_v32, %v4743_v31  ;;  %v4025_v31 = vld [vmem:[%s8052_s1 + $0xcc] sm:$0xf0]  ;;  %v5236_v32 = vld [vmem:[%s8052_s1 + $0x2ec] sm:$0xf] }
  0x95   :  { %1730 = vmatpush.bf16.msra.mxu1 %v4632_v38  ;;  %1644 = vmatmul.bf16.gmra.mxu0 %v5951_v39  ;;  %v5344_v38 = vld [vmem:[%s8052_s1 + $0x64c] sm:$0xf] }
  0x96   :  { %1749 = vmatpush.bf16.msra.mxu2 %v4060_v40  ;;  %1701 = vmatmul.bf16.gmra.mxu3 %v5951_v39  ;;  %v4745_v40 = vld [vmem:[%s8052_s1 + $0x66c] sm:$0xf0] }
  0x97   :  { %1768 = vmatpush.bf16.msra.mxu3 %v4348_v47  ;;  %1682 = vmatmul.bf16.gmra.mxu2 %v5964_v45  ;;  %v4460_v47 = vor.u32 %v5272_v35, %v4457_v36  ;;  %v4748_v53 = vor.u32 %v5344_v38, %v4745_v40  ;;  %v5308_v36 = vld [vmem:[%s8052_s1 + $0x52c] sm:$0xf]  ;;  %v4601_v38 = vld [vmem:[%s8052_s1 + $0x54c] sm:$0xf0] }
  0x98   :  { %1712 = vmatpush.bf16.msra.mxu0 %v4308_v55  ;;  %v5263_v55 = vld [vmem:[%s8052_s1 + $0x3c4] sm:$0xf] }
  0x99   :  { %1731 = vmatpush.bf16.msra.mxu1 %v4596_v56  ;;  %v4421_v56 = vld [vmem:[%s8052_s1 + $0x3e4] sm:$0xf0] }
  0x9a   :  { %1750 = vmatpush.bf16.msra.mxu2 %v4024_v57  ;;  %v5335_v57 = vld [vmem:[%s8052_s1 + $0x604] sm:$0xf] }
  0x9b   :  { %1769 = vmatpush.bf16.msra.mxu3 %v4312_v61  ;;  %v4424_v61 = vor.u32 %v5263_v55, %v4421_v56  ;;  %v4712_v2 = vor.u32 %v5335_v57, %v4709_v58  ;;  %v5227_v55 = vld [vmem:[%s8052_s1 + $0x2a4] sm:$0xf]  ;;  %v4277_v56 = vld [vmem:[%s8052_s1 + $0x2c4] sm:$0xf0] }
  0x9c   :  { %1713 = vmatpush.bf16.msra.mxu0 %v4272_v3  ;;  %v4097_v3 = vld [vmem:[%s8052_s1 + $0x15c] sm:$0xf0]  ;;  %v5299_v57 = vld [vmem:[%s8052_s1 + $0x4e4] sm:$0xf]  ;;  %v4565_v58 = vld [vmem:[%s8052_s1 + $0x504] sm:$0xf0] }
  0x9d   :  { %1732 = vmatpush.bf16.msra.mxu1 %v4560_v6  ;;  %v4100_v12 = vor.u32 %v5182_v0, %v4097_v3  ;;  %v5146_v0 = vld [vmem:[%s8052_s1 + $0x1c] sm:$0xf]  ;;  %v4568_v5 = vor.u32 %v5299_v57, %v4565_v58 }
  0x9e   :  { %1751 = vmatpush.bf16.msra.mxu2 %v3988_v7  ;;  %v5218_v3 = vld [vmem:[%s8052_s1 + $0x25c] sm:$0xf] }
  0x9f   :  { %1770 = vmatpush.bf16.msra.mxu3 %v4276_v11  ;;  %v4672_v11 = vor.u32 %v5330_v63, %v4671_v62  ;;  %v3992_v62 = vor.u32 %v5155_v50, %v3989_v54  ;;  %v4280_v63 = vor.u32 %v5227_v55, %v4277_v56  ;;  %v4715_v54 = vld [vmem:[%s8052_s1 + $0x608] sm:$0xf]  ;;  %v5340_v55 = vld [vmem:[%s8052_s1 + $0x628] sm:$0xf0] }
  0xa0   :  { %1714 = vmatpush.bf16.msra.mxu0 %v4236_v18  ;;  %v6678_v37 = vpop.f32.mrf.mxu0  ;;  %v4061_v18 = vld [vmem:[%s8052_s1 + $0x114] sm:$0xf0] }
  0xa1   :  { %1733 = vmatpush.bf16.msra.mxu1 %v4524_v22  ;;  %v6686_v41 = vpop.f32.mrf.mxu1  ;;  %v4637_v22 = vld [vmem:[%s8052_s1 + $0x594] sm:$0xf0]  ;;  %v4064_v24 = vor.u32 %v5173_v16, %v4061_v18 }
  0xa2   :  { %1752 = vmatpush.bf16.msra.mxu2 %v3952_v23  ;;  %v4636_v23 = vor.u32 %v5321_v15, %v4635_v14  ;;  %v4499_v14 = vld [vmem:[%s8052_s1 + $0x458] sm:$0xf]  ;;  %v5286_v15 = vld [vmem:[%s8052_s1 + $0x478] sm:$0xf0] }
  0xa3   :  { %1771 = vmatpush.bf16.msra.mxu3 %v4240_v26  ;;  %v4599_v26 = vld [vmem:[%s8052_s1 + $0x528] sm:$0xf]  ;;  %v4787_v16 = vld [vmem:[%s8052_s1 + $0x698] sm:$0xf] }
  0xa4   :  { %1783 = vmatpush.bf16.msrb.mxu0 %v4780_v27  ;;  %1734 = vmatmul.bf16.vlgmr.msra.gmra.mxu1 %v5840_v52  ;;  %v5312_v27 = vld [vmem:[%s8052_s1 + $0x548] sm:$0xf0] }
  0xa5   :  { %1802 = vmatpush.bf16.msrb.mxu1 %v4208_v28  ;;  %1715 = vmatmul.bf16.vlgmr.msra.gmra.mxu0 %v5838_v51  ;;  %v5164_v28 = vld [vmem:[%s8052_s1 + $0xac] sm:$0xf] }
  0xa6   :  { %1821 = vmatpush.bf16.msrb.mxu2 %v4496_v29  ;;  %1772 = vmatmul.bf16.vlgmr.msra.gmra.mxu3 %v5838_v51 }
  0xa7   :  { %1840 = vmatpush.bf16.msrb.mxu3 %v4784_v30  ;;  %1753 = vmatmul.bf16.vlgmr.msra.gmra.mxu2 %v5827_v46  ;;  %v4640_v30 = vor.u32 %v5317_v21, %v4637_v22  ;;  %v5214_v21 = vld [vmem:[%s8052_s1 + $0x238] sm:$0xf0] }
  0xa8   :  { %1784 = vmatpush.bf16.msrb.mxu0 %v4744_v42  ;;  %v6725_v1 = vpop.f32.mrf.mxu2  ;;  %v6738_v7 = vpop.f32.mrf.mxu0  ;;  %v4600_v42 = vor.u32 %v5312_v27, %v4599_v26  ;;  %v4788_v26 = vor.u32 %v5358_v19, %v4787_v16  ;;  %v4463_v27 = vld [vmem:[%s8052_s1 + $0x410] sm:$0xf]  ;;  %v5250_v16 = vld [vmem:[%s8052_s1 + $0x358] sm:$0xf0] }
  0xa9   :  { %1803 = vmatpush.bf16.msrb.mxu1 %v4172_v43  ;;  %v6736_v6 = vpop.f32.mrf.mxu3  ;;  %v6746_v10 = vpop.f32.mrf.mxu1  ;;  %v4028_v43 = vor.u32 %v5164_v28, %v4025_v31  ;;  %v5277_v28 = vld [vmem:[%s8052_s1 + $0x430] sm:$0xf0]  ;;  %v4751_v31 = vld [vmem:[%s8052_s1 + $0x650] sm:$0xf] }
  0xaa   :  { %1822 = vmatpush.bf16.msrb.mxu2 %v4460_v47  ;;  %v4316_v47 = vor.u32 %v5236_v32, %v4313_v33  ;;  %v5349_v32 = vld [vmem:[%s8052_s1 + $0x670] sm:$0xf0]  ;;  %v1434_v19 = vadd.f32 %v6746_v10, %v6738_v7 }
  0xab   :  { %1841 = vmatpush.bf16.msrb.mxu3 %v4748_v53  ;;  %v4604_v53 = vor.u32 %v5308_v36, %v4601_v38  ;;  %v4464_v36 = vor.u32 %v5277_v28, %v4463_v27  ;;  %v4175_v38 = vld [vmem:[%s8052_s1 + $0x1d0] sm:$0xf]  ;;  %v5178_v27 = vld [vmem:[%s8052_s1 + $0x118] sm:$0xf0] }
  0xac   :  { %1785 = vmatpush.bf16.msrb.mxu0 %v4708_v59  ;;  %v4564_v59 = vor.u32 %v5303_v49, %v4563_v48  ;;  %v4427_v48 = vld [vmem:[%s8052_s1 + $0x3c8] sm:$0xf]  ;;  %v5268_v49 = vld [vmem:[%s8052_s1 + $0x3e8] sm:$0xf0] }
  0xad   :  { %1804 = vmatpush.bf16.msrb.mxu1 %v4136_v60  ;;  %v4527_v60 = vld [vmem:[%s8052_s1 + $0x498] sm:$0xf]  ;;  %v4428_v58 = vor.u32 %v5268_v49, %v4427_v48  ;;  %v5313_v48 = vld [vmem:[%s8052_s1 + $0x550] sm:$0xf0]  ;;  %v4031_v49 = vld [vmem:[%s8052_s1 + $0xb0] sm:$0xf] }
  0xae   :  { %1823 = vmatpush.bf16.msrb.mxu2 %v4424_v61  ;;  %v5294_v61 = vld [vmem:[%s8052_s1 + $0x4b8] sm:$0xf0] }
  0xaf   :  { %1842 = vmatpush.bf16.msrb.mxu3 %v4712_v2  ;;  %v3953_v2 = vld [vmem:[%s8052_s1 + $0x3c] sm:$0xf0]  ;;  %v4528_v18 = vor.u32 %v5294_v61, %v4527_v60  ;;  %v5196_v60 = vld [vmem:[%s8052_s1 + $0x1a8] sm:$0xf0]  ;;  %v5259_v61 = vld [vmem:[%s8052_s1 + $0x3a0] sm:$0xf0] }
  0xb0   :  { %1786 = vmatpush.bf16.msrb.mxu0 %v4672_v11  ;;  %v6781_v29 = vpop.f32.mrf.mxu2  ;;  %v6794_v35 = vpop.f32.mrf.mxu0  ;;  %v4529_v11 = vld [vmem:[%s8052_s1 + $0x4bc] sm:$0xf0]  ;;  %v3956_v22 = vor.u32 %v5146_v0, %v3953_v2  ;;  %v5331_v2 = vld [vmem:[%s8052_s1 + $0x5e0] sm:$0xf0] }
  0xb1   :  { %1805 = vmatpush.bf16.msrb.mxu1 %v4100_v12  ;;  %v6792_v34 = vpop.f32.mrf.mxu3  ;;  %v6802_v40 = vpop.f32.mrf.mxu1  ;;  %v4679_v0 = vld [vmem:[%s8052_s1 + $0x5c0] sm:$0xf] }
  0xb2   :  { %1824 = vmatpush.bf16.msrb.mxu2 %v4388_v13 }
  0xb3   :  { %1843 = vmatpush.bf16.msrb.mxu3 %v4676_v17 }
  0xb4   :  { %1787 = vmatpush.bf16.msrb.mxu0 %v4636_v23  ;;  %1739 = vmatmul.bf16.gmra.mxu1 %v5964_v45  ;;  %v4244_v23 = vor.u32 %v5218_v3, %v4241_v8 }
  0xb5   :  { %1806 = vmatpush.bf16.msrb.mxu1 %v4064_v24  ;;  %1720 = vmatmul.bf16.gmra.mxu0 %v5962_v44  ;;  %v4532_v24 = vor.u32 %v5290_v9, %v4529_v11  ;;  %v5187_v9 = vld [vmem:[%s8052_s1 + $0x160] sm:$0xf0] }
  0xb6   :  { %1825 = vmatpush.bf16.msrb.mxu2 %v4352_v25  ;;  %1777 = vmatmul.bf16.gmra.mxu3 %v5962_v44  ;;  %v4500_v25 = vor.u32 %v5286_v15, %v4499_v14  ;;  %v4355_v15 = vld [vmem:[%s8052_s1 + $0x338] sm:$0xf] }
  0xb7   :  { %1844 = vmatpush.bf16.msrb.mxu3 %v4640_v30  ;;  %1758 = vmatmul.bf16.gmra.mxu2 %v5951_v39  ;;  %v4212_v30 = vor.u32 %v5214_v21, %v4211_v20  ;;  %v4356_v10 = vor.u32 %v5250_v16, %v4355_v15  ;;  %v5295_v15 = vld [vmem:[%s8052_s1 + $0x4c0] sm:$0xf0]  ;;  %v3959_v16 = vld [vmem:[%s8052_s1 + $0x20] sm:$0xf] }
  0xb8   :  { %1788 = vmatpush.bf16.msrb.mxu0 %v4600_v42  ;;  %v6847_v4 = vpop.f32.mrf.mxu2  ;;  %v6860_v13 = vpop.f32.mrf.mxu0  ;;  %v5205_v42 = vld [vmem:[%s8052_s1 + $0x1f0] sm:$0xf0] }
  0xb9   :  { %1807 = vmatpush.bf16.msrb.mxu1 %v4028_v43  ;;  %v6858_v12 = vpop.f32.mrf.mxu3  ;;  %v6871_v17 = vpop.f32.mrf.mxu1  ;;  %v4176_v56 = vor.u32 %v5205_v42, %v4175_v38 }
  0xba   :  { %1826 = vmatpush.bf16.msrb.mxu2 %v4316_v47 }
  0xbb   :  { %1845 = vmatpush.bf16.msrb.mxu3 %v4604_v53  ;;  %v4752_v53 = vor.u32 %v5349_v32, %v4751_v31  ;;  %v5241_v31 = vld [vmem:[%s8052_s1 + $0x310] sm:$0xf0]  ;;  %v4607_v32 = vld [vmem:[%s8052_s1 + $0x530] sm:$0xf] }
  0xbc   :  { %1789 = vmatpush.bf16.msrb.mxu0 %v4564_v59  ;;  %v4139_v59 = vld [vmem:[%s8052_s1 + $0x188] sm:$0xf] }
  0xbd   :  { %1808 = vmatpush.bf16.msrb.mxu1 %v3992_v62  ;;  %v1432_v62 = vadd.f32 %v6686_v41, %v6678_v37  ;;  %v4140_v3 = vor.u32 %v5196_v60, %v4139_v59  ;;  %v4103_v41 = vld [vmem:[%s8052_s1 + $0x140] sm:$0xf]  ;;  %v4283_v59 = vld [vmem:[%s8052_s1 + $0x2a8] sm:$0xf]  ;;  %v5232_v60 = vld [vmem:[%s8052_s1 + $0x2c8] sm:$0xf0] }
  0xbe   :  { %1827 = vmatpush.bf16.msrb.mxu2 %v4280_v63  ;;  %v4716_v63 = vor.u32 %v5340_v55, %v4715_v54 }
  0xbf   :  { %1846 = vmatpush.bf16.msrb.mxu3 %v4568_v5 }
  0xc0   :  { %1790 = vmatpush.bf16.msrb.mxu0 %v4528_v18  ;;  %v6894_v33 = vpop.f32.mrf.mxu2  ;;  %v1488_v47 = vpop.f32.mrf.mxu0  ;;  %v1451_v18 = vadd.f32 %v6725_v1, %v1432_v62  ;;  %v1453_v1 = vadd.f32 %v6781_v29, %v1434_v19  ;;  %v4319_v29 = vld [vmem:[%s8052_s1 + $0x2f0] sm:$0xf] }
  0xc1   :  { %1809 = vmatpush.bf16.msrb.mxu1 %v3956_v22  ;;  %v6902_v43 = vpop.f32.mrf.mxu3  ;;  %v1507_v50 = vpop.f32.mrf.mxu1  ;;  %v1489_v57 = vadd.f32 %v1488_v47, %v6736_v6  ;;  %v4391_v6 = vld [vmem:[%s8052_s1 + $0x380] sm:$0xf]  ;;  %v4680_v22 = vor.u32 %v5331_v2, %v4679_v0  ;;  %v3995_v0 = vld [vmem:[%s8052_s1 + $0x68] sm:$0xf]  ;;  %v5160_v2 = vld [vmem:[%s8052_s1 + $0x88] sm:$0xf0] }
  0xc2   :  { %1828 = vmatpush.bf16.msrb.mxu2 %v4244_v23  ;;  %v4392_v37 = vor.u32 %v5259_v61, %v4391_v6  ;;  %v4643_v23 = vld [vmem:[%s8052_s1 + $0x578] sm:$0xf]  ;;  %v4571_v6 = vld [vmem:[%s8052_s1 + $0x4e8] sm:$0xf] }
  0xc3   :  { %1847 = vmatpush.bf16.msrb.mxu3 %v4532_v24  ;;  %v1508_v5 = vadd.f32 %v1507_v50, %v1489_v57  ;;  %v5322_v24 = vld [vmem:[%s8052_s1 + $0x598] sm:$0xf0]  ;;  %v5169_v50 = vld [vmem:[%s8052_s1 + $0xd0] sm:$0xf0]  ;;  %v4320_v57 = vor.u32 %v5241_v31, %v4319_v29 }
  0xc4   :  { %1859 = vmatpush.bf16.msra.mxu0 %v4212_v30  ;;  %1810 = vmatmul.bf16.vlgmr.msrb.gmra.mxu1 %v5827_v46  ;;  %v4032_v61 = vor.u32 %v5169_v50, %v4031_v49 }
  0xc5   :  { %1878 = vmatpush.bf16.msra.mxu1 %v4500_v25  ;;  %1791 = vmatmul.bf16.vlgmr.msrb.gmra.mxu0 %v5840_v52  ;;  %v4104_v25 = vor.u32 %v5187_v9, %v4103_v41  ;;  %v5223_v41 = vld [vmem:[%s8052_s1 + $0x280] sm:$0xf0]  ;;  %v4535_v9 = vld [vmem:[%s8052_s1 + $0x4a0] sm:$0xf] }
  0xc6   :  { %1897 = vmatpush.bf16.msra.mxu2 %v4788_v26  ;;  %1848 = vmatmul.bf16.vlgmr.msrb.gmra.mxu3 %v5840_v52  ;;  %v6968_v26 = vpack.c.bf16 %v1508_v5, %v1451_v18  ;;  %v5151_v18 = vld [vmem:[%s8052_s1 + $0x40] sm:$0xf0] }
  0xc7   :  { %5431 = vmatpush.bf16.msra.mxu3 %v4212_v30  ;;  %1829 = vmatmul.bf16.vlgmr.msrb.gmra.mxu2 %v5838_v51  ;;  %v4644_v30 = vor.u32 %v5322_v24, %v4643_v23 }
  0xc8   :  { %1860 = vmatpush.bf16.msra.mxu0 %v4176_v56  ;;  %v6941_v8 = vpop.f32.mrf.mxu2  ;;  %v1490_v14 = vpop.f32.mrf.mxu0  ;;  %v2047_v42 = vunpack.c.l.b16 %v6968_v26 }
  0xc9   :  { %1879 = vmatpush.bf16.msra.mxu1 %v4464_v36  ;;  %v6949_v11 = vpop.f32.mrf.mxu3  ;;  %v1491_v20 = vadd.f32 %v1490_v14, %v6792_v34  ;;  %v1509_v21 = vpop.f32.mrf.mxu1  ;;  %v4067_v34 = vld [vmem:[%s8052_s1 + $0xf8] sm:$0xf] }
  0xca   :  { %1898 = vmatpush.bf16.msra.mxu2 %v4752_v53  ;;  %v4068_v36 = vor.u32 %v5178_v27, %v4067_v34 }
  0xcb   :  { %5432 = vmatpush.bf16.msra.mxu3 %v4176_v56  ;;  %v1510_v7 = vadd.f32 %v1509_v21, %v1491_v20 }
  0xcc   :  { %1861 = vmatpush.bf16.msra.mxu0 %v4140_v3 }
  0xcd   :  { %1880 = vmatpush.bf16.msra.mxu1 %v4428_v58  ;;  %v6976_v28 = vpack.c.bf16 %v1510_v7, %v1453_v1  ;;  %v4608_v58 = vor.u32 %v5313_v48, %v4607_v32  ;;  %v4536_v1 = vor.u32 %v5295_v15, %v4535_v9  ;;  %v3960_v7 = vor.u32 %v5151_v18, %v3959_v16 }
  0xce   :  { %1899 = vmatpush.bf16.msra.mxu2 %v4716_v63  ;;  %v5304_v63 = vld [vmem:[%s8052_s1 + $0x508] sm:$0xf0] }
  0xcf   :  { %5433 = vmatpush.bf16.msra.mxu3 %v4140_v3  ;;  %v2048_v47 = vunpack.c.l.b16 %v6976_v28  ;;  %v4284_v3 = vor.u32 %v5232_v60, %v4283_v59  ;;  %v4572_v5 = vor.u32 %v5304_v63, %v4571_v6 }
  0xd0   :  { %1862 = vmatpush.bf16.msra.mxu0 %v4104_v25  ;;  %v6987_v38 = vpop.f32.mrf.mxu2 }
  0xd1   :  { %1881 = vmatpush.bf16.msra.mxu1 %v4392_v37  ;;  %v7000_v53 = vpop.f32.mrf.mxu3  ;;  %v1512_v55 = vpop.f32.mrf.mxu1  ;;  %v7002_v56 = vpack.c.b16 %v2048_v47, %v2047_v42  ;;  %v4247_v37 = vld [vmem:[%s8052_s1 + $0x260] sm:$0xf] }
  0xd2   :  { %1900 = vmatpush.bf16.msra.mxu2 %v4680_v22  ;;  %v1493_v54 = vpop.f32.mrf.mxu0  ;;  %v1439_v22 = vadd.f32 %v6871_v17, %v6860_v13 }
  0xd3   :  { %5434 = vmatpush.bf16.msra.mxu3 %v4104_v25  ;;  %v1494_v62 = vadd.f32 %v1493_v54, %v6858_v12  ;;  %2219 = vrot.lane.b32.xlu2 %v7002_v56, %s5566_s29  ;;  %v1437_v12 = vadd.f32 %v6802_v40, %v6794_v35  ;;  %v3996_v35 = vor.u32 %v5160_v2, %v3995_v0 }
  0xd4   :  { %1863 = vmatpush.bf16.msra.mxu0 %v4068_v36  ;;  %1815 = vmatmul.bf16.gmra.mxu1 %v5951_v39  ;;  %v4248_v25 = vor.u32 %v5223_v41, %v4247_v37 }
  0xd5   :  { %1882 = vmatpush.bf16.msra.mxu1 %v4356_v10  ;;  %1796 = vmatmul.bf16.gmra.mxu0 %v5964_v45  ;;  %v1513_v40 = vadd.f32 %v1512_v55, %v1494_v62  ;;  %v1456_v21 = vadd.f32 %v6847_v4, %v1437_v12  ;;  %v1458_v10 = vadd.f32 %v6894_v33, %v1439_v22 }
  0xd6   :  { %1901 = vmatpush.bf16.msra.mxu2 %v4644_v30  ;;  %1853 = vmatmul.bf16.gmra.mxu3 %v5964_v45 }
  0xd7   :  { %5435 = vmatpush.bf16.msra.mxu3 %v4068_v36  ;;  %1834 = vmatmul.bf16.gmra.mxu2 %v5962_v44  ;;  %v7056_v34 = vpack.c.bf16 %v1513_v40, %v1456_v21  ;;  %v1546_v36 = vadd.f32 %v6949_v11, %v6941_v8 }
  0xd8   :  { %1864 = vmatpush.bf16.msra.mxu0 %v4032_v61 }
  0xd9   :  { %1883 = vmatpush.bf16.msra.mxu1 %v4320_v57  ;;  %v1550_v19 = vpop.f32.mrf.mxu3  ;;  %v1514_v24 = vpop.f32.mrf.mxu1  ;;  %v2080_v13 = vunpack.c.l.b16 %v7056_v34 }
  0xda   :  { %1902 = vmatpush.bf16.msra.mxu2 %v4608_v58  ;;  %v7040_v14 = vpop.f32.mrf.mxu2  ;;  %v1495_v20 = vpop.f32.mrf.mxu0 }
  0xdb   :  { %5436 = vmatpush.bf16.msra.mxu3 %v4032_v61  ;;  %v1496_v23 = vadd.f32 %v1495_v20, %v6902_v43  ;;  %v1551_v63 = vadd.f32 %v1550_v19, %v7040_v14 }
  0xdc   :  { %1865 = vmatpush.bf16.msra.mxu0 %v3996_v35 }
  0xdd   :  { %1884 = vmatpush.bf16.msra.mxu1 %v4284_v3  ;;  %v1515_v27 = vadd.f32 %v1514_v24, %v1496_v23 }
  0xde   :  { %1903 = vmatpush.bf16.msra.mxu2 %v4572_v5 }
  0xdf   :  { %5437 = vmatpush.bf16.msra.mxu3 %v3996_v35  ;;  %v7058_v30 = vpack.c.bf16 %v1515_v27, %v1458_v10 }
  0xe0   :  { %1866 = vmatpush.bf16.msra.mxu0 %v3960_v7 }
  0xe1   :  { %1885 = vmatpush.bf16.msra.mxu1 %v4248_v25  ;;  %v2081_v17 = vunpack.c.l.b16 %v7058_v30  ;;  %v1552_v43 = vpop.f32.mrf.mxu3  ;;  %v1583_v31 = vpop.f32.mrf.mxu1 }
  0xe2   :  { %1904 = vmatpush.bf16.msra.mxu2 %v4536_v1  ;;  %v1533_v4 = vpop.f32.mrf.mxu2  ;;  %v1564_v29 = vpop.f32.mrf.mxu0 }
  0xe3   :  { %5438 = vmatpush.bf16.msra.mxu3 %v3960_v7  ;;  %v7062_v32 = vpack.c.b16 %v2081_v17, %v2080_v13  ;;  %v1565_v50 = vadd.f32 %v1564_v29, %v1546_v36  ;;  %v1553_v14 = vadd.f32 %v1552_v43, %v1533_v4 }
  0xe4   :  { %1886 = vmatmul.bf16.vlgmr.msra.gmra.mxu1 %v5838_v51  ;;  %v1548_v51 = vadd.f32 %v7000_v53, %v6987_v38 }
  0xe5   :  { %2250 = vrot.lane.b32.xlu2 %v7062_v32, %s5566_s29  ;;  %1867 = vmatmul.bf16.vlgmr.msra.gmra.mxu0 %v5827_v46 }
  0xe6   :  { %1872 = vmatmul.bf16.vlgmr.msra.gmra.mxu3 %v5951_v39 }
  0xe7   :  { %1905 = vmatmul.bf16.vlgmr.msra.gmra.mxu2 %v5840_v52 }
  0xe9   :  { %v1621_v47 = vpop.f32.mrf.mxu3  ;;  %v1585_v49 = vpop.f32.mrf.mxu1 }
  0xea   :  { %v1602_v33 = vpop.f32.mrf.mxu2  ;;  %v1566_v48 = vpop.f32.mrf.mxu0 }
  0xeb   :  { %v1603_v42 = vadd.f32 %v1602_v33, %v1583_v31  ;;  %v1567_v59 = vadd.f32 %v1566_v48, %v1548_v51 }
  0xed   :  { %v1622_v54 = vadd.f32 %v1621_v47, %v1603_v42 }
  0xef   :  { %v1917_v55 = vpack.c.bf16 %v1622_v54, %v1565_v50 }
  0xf1   :  { %2213 = vrot.lane.b32.xlu0 %v1917_v55, %s5566_s29  ;;  %v1623_v57 = vpop.f32.mrf.mxu3  ;;  %v1588_v58 = vpop.f32.mrf.mxu1  ;;  %v2043_v8 = vrot.slane %v1917_v55, 4  ;;  %v3251_v6 = vunpack.c.l.b16 %v1917_v55 }
  0xf2   :  { %v1604_v46 = vpop.f32.mrf.mxu2  ;;  %v1569_v39 = vpop.f32.mrf.mxu0 }
  0xf3   :  { %v1605_v52 = vadd.f32 %v1604_v46, %v1585_v49  ;;  %v2050_v3 = vunpack.c.l.b16 %v2043_v8 }
  0xf4   :  { %1891 = vmatmul.bf16.gmra.mxu1 %v5962_v44  ;;  %v1570_v44 = vadd.f32 %v1569_v39, %v1551_v63 }
  0xf5   :  { %v1624_v60 = vadd.f32 %v1623_v57, %v1605_v52 }
  0xf7   :  { %v1922_v11 = vpack.c.bf16 %v1624_v60, %v1567_v59  ;;  %1910 = vmatmul.bf16.gmra.mxu2 %v5964_v45 }
  0xf9   :  { %v3252_v61 = vunpack.c.l.b16 %v1922_v11  ;;  %2215 = vrot.lane.b32.xlu0 %v1922_v11, %s5566_s29  ;;  %v2044_v62 = vrot.slane %v1922_v11, 4  ;;  %v1626_v2 = vpop.f32.mrf.mxu3  ;;  %v1590_v37 = vpop.f32.mrf.mxu1 }
  0xfa   :  { %v1607_v38 = vpop.f32.mrf.mxu2  ;;  %v1571_v12 = vpop.f32.mrf.mxu0 }
  0xfb   :  { %v7079_v53 = vpack.c.b16 %v3252_v61, %v3251_v6  ;;  %v1608_v0 = vadd.f32 %v1607_v38, %v1588_v58  ;;  %v2051_v5 = vunpack.c.l.b16 %v2044_v62  ;;  %v1572_v20 = vadd.f32 %v1571_v12, %v1553_v14 }
  0xfd   :  { %v1627_v41 = vadd.f32 %v1626_v2, %v1608_v0  ;;  %v2052_v45 = vpack.c.b16 %v2051_v5, %v2050_v3 }
  0xff   :  { %v1927_v9 = vpack.c.bf16 %v1627_v41, %v1570_v44  ;;  %v2058_v35 = vsel %vm2053_vm0, %v2052_v45, 0 }
 0x100   :  { %2067 = vmatpush.bf16.xpose.msrb.mxu3 %v2058_v35 }
 0x101   :  { %2244 = vrot.lane.b32.xlu1 %v1927_v9, %s5566_s29  ;;  %v1628_v16 = vpop.f32.mrf.mxu3  ;;  %v1659_v19 = vpop.f32.mrf.mxu1  ;;  %v2076_v23 = vrot.slane %v1927_v9, 4  ;;  %v3279_v25 = vunpack.c.l.b16 %v1927_v9 }
 0x102   :  { %v1609_v40 = vpop.f32.mrf.mxu2  ;;  %v1640_v18 = vpop.f32.mrf.mxu0 }
 0x103   :  { %v1610_v15 = vadd.f32 %v1609_v40, %v1590_v37  ;;  %v1660_v22 = vadd.f32 %v1659_v19, %v1640_v18  ;;  %v2083_v43 = vunpack.c.l.b16 %v2076_v23 }
 0x105   :  { %v1629_v21 = vadd.f32 %v1628_v16, %v1610_v15 }
 0x107   :  { %v1932_v24 = vpack.c.bf16 %v1629_v21, %v1572_v20  ;;  %4789 = vmatmul.msk.bf16.vlgmr.msrb.gmra.mxu3 %vm2053_vm0, %v7002_v56 }
 0x109   :  { %v3280_v1 = vunpack.c.l.b16 %v1932_v24  ;;  %2246 = vrot.lane.b32.xlu1 %v1932_v24, %s5566_s29  ;;  %v2077_v7 = vrot.slane %v1932_v24, 4  ;;  %v1697_v17 = vpop.f32.mrf.mxu3  ;;  %v7090_v31 = vpop.f32.mrf.mxu1 }
 0x10a   :  { %v1678_v10 = vpop.f32.mrf.mxu2  ;;  %v7088_v13 = vpop.f32.mrf.mxu0 }
 0x10b   :  { %v7086_v27 = vpack.c.b16 %v3280_v1, %v3279_v25  ;;  %v1679_v4 = vadd.f32 %v1678_v10, %v1660_v22  ;;  %v2084_v29 = vunpack.c.l.b16 %v2077_v7 }
 0x10d   :  { %v2085_v33 = vpack.c.b16 %v2084_v29, %v2083_v43 }
 0x10f   :  { %v2090_v36 = vsel %vm2053_vm0, %v2085_v33, 0 }
 0x110   :  { %2099 = vmatpush.bf16.xpose.msra.mxu3 %v2090_v36 }
 0x111   :  { %v7095_v47 = vpop.f32.mrf.mxu3  ;;  %v1664_v48 = vpop.f32.mrf.mxu1 }
 0x112   :  { %v7093_v56 = vpop.f32.mrf.mxu2  ;;  %v1645_v42 = vpop.f32.mrf.mxu0 }
 0x113   :  { %v1665_v49 = vadd.f32 %v1664_v48, %v1645_v42 }
 0x117   :  { %4790 = vmatmul.msk.bf16.vlgmr.msra.gmra.mxu3 %vm2053_vm0, %v7062_v32 }
 0x119   :  { %v1702_v46 = vpop.f32.mrf.mxu3  ;;  %v7101_v51 = vpop.f32.mrf.mxu1 }
 0x11a   :  { %v1683_v50 = vpop.f32.mrf.mxu2  ;;  %v7099_v55 = vpop.f32.mrf.mxu0 }
 0x11b   :  { %v1684_v54 = vadd.f32 %v1683_v50, %v1665_v49 }
 0x121   :  { %v7105_v57 = vpop.f32.mrf.mxu3  ;;  %v1735_v59 = vpop.f32.mrf.mxu1 }
 0x122   :  { %v7103_v52 = vpop.f32.mrf.mxu2  ;;  %v1716_v39 = vpop.f32.mrf.mxu0 }
 0x123   :  { %v1717_v58 = vadd.f32 %v1716_v39, %v1697_v17 }
 0x125   :  { %v1736_v60 = vadd.f32 %v1735_v59, %v1717_v58 }
 0x127   :  { %v7107_v8 = vpack.c.bf16 %v1736_v60, %v1679_v4 }
 0x129   :  { %v1773_v32 = vpop.f32.mrf.mxu3  ;;  %v7111_v61 = vpop.f32.mrf.mxu1 }
 0x12a   :  { %v1754_v11 = vpop.f32.mrf.mxu2  ;;  %v7109_v6 = vpop.f32.mrf.mxu0 }
 0x12b   :  { %v1774_v20 = vadd.f32 %v1773_v32, %v1754_v11 }
 0x131   :  { %v1775_v38 = vpop.f32.mrf.mxu3  ;;  %v1740_v2 = vpop.f32.mrf.mxu1 }
 0x132   :  { %v1756_v62 = vpop.f32.mrf.mxu2  ;;  %v1721_v63 = vpop.f32.mrf.mxu0 }
 0x133   :  { %v1722_v0 = vadd.f32 %v1721_v63, %v1702_v46  ;;  %v1776_v23 = vadd.f32 %v1775_v38, %v1756_v62 }
 0x135   :  { %v1741_v12 = vadd.f32 %v1740_v2, %v1722_v0 }
 0x137   :  { %v7113_v3 = vpack.c.bf16 %v1741_v12, %v1684_v54 }
 0x139   :  { %v1778_v44 = vpop.f32.mrf.mxu3  ;;  %v7117_v41 = vpop.f32.mrf.mxu1 }
 0x13a   :  { %v1759_v5 = vpop.f32.mrf.mxu2  ;;  %v7115_v37 = vpop.f32.mrf.mxu0 }
 0x13b   :  { %v1779_v46 = vadd.f32 %v1778_v44, %v1759_v5 }
 0x141   :  { %v1780_v9 = vpop.f32.mrf.mxu3  ;;  %v1811_v40 = vpop.f32.mrf.mxu1 }
 0x142   :  { %v1761_v45 = vpop.f32.mrf.mxu2  ;;  %v1792_v35 = vpop.f32.mrf.mxu0 }
 0x143   :  { %v1793_v24 = vadd.f32 %v1792_v35, %v1774_v20  ;;  %v1781_v60 = vadd.f32 %v1780_v9, %v1761_v45 }
 0x149   :  { %v1849_v15 = vpop.f32.mrf.mxu3  ;;  %v1813_v16 = vpop.f32.mrf.mxu1 }
 0x14a   :  { %v1830_v14 = vpop.f32.mrf.mxu2  ;;  %v1794_v19 = vpop.f32.mrf.mxu0 }
 0x14b   :  { %v1831_v18 = vadd.f32 %v1830_v14, %v1811_v40  ;;  %v1795_v10 = vadd.f32 %v1794_v19, %v1776_v23 }
 0x14d   :  { %v1850_v21 = vadd.f32 %v1849_v15, %v1831_v18 }
 0x14f   :  { %v7119_v4 = vpack.c.bf16 %v1850_v21, %v1793_v24 }
 0x151   :  { %v1851_v1 = vpop.f32.mrf.mxu3  ;;  %v1816_v7 = vpop.f32.mrf.mxu1  ;;  %v2162_v33 = vunpack.c.l.b16 %v7119_v4 }
 0x152   :  { %v1832_v22 = vpop.f32.mrf.mxu2  ;;  %v1797_v29 = vpop.f32.mrf.mxu0 }
 0x153   :  { %v1833_v25 = vadd.f32 %v1832_v22, %v1813_v16  ;;  %v1798_v11 = vadd.f32 %v1797_v29, %v1779_v46 }
 0x155   :  { %v1852_v17 = vadd.f32 %v1851_v1, %v1833_v25 }
 0x157   :  { %v7121_v43 = vpack.c.bf16 %v1852_v17, %v1795_v10 }
 0x159   :  { %v2163_v36 = vunpack.c.l.b16 %v7121_v43  ;;  %v1854_v48 = vpop.f32.mrf.mxu3  ;;  %v1818_v50 = vpop.f32.mrf.mxu1 }
 0x15a   :  { %v1835_v42 = vpop.f32.mrf.mxu2  ;;  %v1799_v58 = vpop.f32.mrf.mxu0 }
 0x15b   :  { %v7125_v49 = vpack.c.b16 %v2163_v36, %v2162_v33  ;;  %v1836_v54 = vadd.f32 %v1835_v42, %v1816_v7  ;;  %v1800_v0 = vadd.f32 %v1799_v58, %v1781_v60  ;;  %v2220_v7 = vpop.permute.xlu2 %2219  ;;  %v1936_v42 = vlaneseq }
 0x15c   :  { %v5567_v60 = vmov -1e+30  }
 0x15d   :  { %2176 = vmatpush.bf16.msrb.mxu0 %v7125_v49  ;;  %v1855_v39 = vadd.f32 %v1854_v48, %v1836_v54  ;;  %v1937_v46 = vshrl.u32 %v1936_v42, 7 }
 0x15f   :  { %v7130_v2 = vpack.c.bf16 %v1855_v39, %v1798_v11  ;;  %v1940_v39 = vand.u32 127, %v1936_v42 }
 0x161   :  { %v1856_v63 = vpop.f32.mrf.mxu3  ;;  %v7128_v38 = vpop.f32.mrf.mxu1  ;;  %v2190_v40 = vunpack.c.l.b16 %v7130_v2  ;;  %vm1941_vm1 = vcmp.ge.s32.totalorder %v1937_v46, %v1940_v39 }
 0x162   :  { %v1837_v59 = vpop.f32.mrf.mxu2  ;;  %v7152_v11 = vsel %vm1941_vm1, 0.0, %v5567_v60 }
 0x163   :  { %v1838_v32 = vadd.f32 %v1837_v59, %v1818_v50  ;;  %v2214_v62 = vpop.permute.xlu0 %2213 }
 0x164   :  { %v2217_v44 = vrot.slane %v2214_v62, 4  ;;  %v1938_v62 = vadd.s32 8, %v1937_v46 }
 0x165   :  { %v1857_v12 = vadd.f32 %v1856_v63, %v1838_v32  ;;  %v2251_v32 = vpop.permute.xlu2 %2250 }
 0x166   :  { %v2221_v18 = vunpack.c.l.b16 %v2217_v44  ;;  %vm1942_vm3 = vcmp.ge.s32.totalorder %v1938_v62, %v1940_v39 }
 0x167   :  { %v7132_v35 = vpack.c.bf16 %v1857_v12, %v1800_v0 }
 0x169   :  { %v2191_v5 = vunpack.c.l.b16 %v7132_v35  ;;  %v7140_v16 = vpop.f32.mrf.mxu1  ;;  %v1873_v24 = vpop.f32.mrf.mxu3 }
 0x16a   :  { %v7136_v14 = vpop.f32.mrf.mxu2 }
 0x16b   :  { %v2216_v45 = vpop.permute.xlu0 %2215  ;;  %v7138_v9 = vpack.c.b16 %v2191_v5, %v2190_v40  ;;  %v7157_v40 = vsel %vm1942_vm3, 0.0, %v5567_v60 }
 0x16c   :  { %v2218_v15 = vrot.slane %v2216_v45, 4 }
 0x16d   :  { %2204 = vmatpush.bf16.msrb.mxu1 %v7138_v9 }
 0x16e   :  { %v2222_v19 = vunpack.c.l.b16 %v2218_v15 }
 0x170   :  { %v2223_v20 = vpack.c.b16 %v2222_v19, %v2221_v18 }
 0x171   :  { %v1892_v25 = vpop.f32.mrf.mxu1  ;;  %v7149_v58 = vpop.f32.mrf.mxu3 }
 0x172   :  { %v7143_v21 = vpop.f32.mrf.mxu2  ;;  %v2228_v22 = vsel %vm2053_vm0, %v2223_v20, 0  ;;  %v1893_v1 = vadd.f32 %v1892_v25, %v1873_v24 }
 0x173   :  { %2237 = vmatpush.bf16.xpose.msrb.mxu2 %v2228_v22  ;;  %v2245_v23 = vpop.permute.xlu1 %2244 }
 0x174   :  { %v2248_v10 = vrot.slane %v2245_v23, 4 }
 0x176   :  { %v2252_v48 = vunpack.c.l.b16 %v2248_v10 }
 0x17a   :  { %v1911_v17 = vpop.f32.mrf.mxu2  ;;  %4793 = vmatmul.msk.bf16.vlgmr.msrb.gmra.mxu2 %vm2053_vm0, %v2220_v7 }
 0x17b   :  { %v7147_v29 = vadd.f32 %v1911_v17, %v1893_v1  ;;  %v2247_v33 = vpop.permute.xlu1 %2246 }
 0x17c   :  { %v2249_v36 = vrot.slane %v2247_v33, 4 }
 0x17e   :  { %v2253_v50 = vunpack.c.l.b16 %v2249_v36 }
 0x180   :  { %v2254_v54 = vpack.c.b16 %v2253_v50, %v2252_v48 }
 0x182   :  { %v2259_v59 = vsel %vm2053_vm0, %v2254_v54, 0  ;;  %v7165_v33 = vpop.f32.mrf.mxu2 }
 0x183   :  { %2268 = vmatpush.bf16.xpose.msrb.mxu3 %v2259_v59 }
 0x18a   :  { %v2069_v63 = vpop.f32.mrf.mxu3  ;;  %4794 = vmatmul.msk.bf16.vlgmr.msrb.gmra.mxu3 %vm2053_vm0, %v2251_v32 }
 0x18b   :  { %v2070_v0 = vadd.f32 %v2069_v63, %v7152_v11 }
 0x18d   :  { %v2107_v12 = vsel %vm2106_vm2, %v2070_v0, -inf }
 0x18e   :  { %2108 = vmax.xlane.f32.xlu0 %v2107_v12 }
 0x192   :  { %v2071_v5 = vpop.f32.mrf.mxu3 }
 0x193   :  { %v2072_v44 = vadd.f32 %v2071_v5, %v7157_v40 }
 0x195   :  { %v2110_v45 = vsel %vm2106_vm2, %v2072_v44, -inf }
 0x196   :  { %2111 = vmax.xlane.f32.xlu1 %v2110_v45 }
 0x19a   :  { %v2101_v15 = vpop.f32.mrf.mxu3 }
 0x19b   :  { %v2102_v18 = vadd.f32 %v2101_v15, %v7152_v11 }
 0x19d   :  { %v2113_v19 = vsel %vm2106_vm2, %v2102_v18, -inf }
 0x19e   :  { %2114 = vmax.xlane.f32.xlu2 %v2113_v19 }
 0x1a2   :  { %v2103_v20 = vpop.f32.mrf.mxu3 }
 0x1a3   :  { %v2104_v22 = vadd.f32 %v2103_v20, %v7157_v40 }
 0x1a5   :  { %v2116_v23 = vsel %vm2106_vm2, %v2104_v22, -inf }
 0x1a6   :  { %2117 = vmax.xlane.f32.xlu2 %v2116_v23 }
 0x1fd   :  { %v2239_v46 = vpop.f32.mrf.mxu2 }
 0x1fe   :  { %v2240_v32 = vadd.f32 %v2239_v46, %v7152_v11 }
 0x201   :  { %v2109_v24 = vpop.xlane.xlu0 %2108 }
 0x202   :  { %v2119_v25 = vsub.f32 %v2070_v0, %v2109_v24 }
 0x204   :  { %v2123_v1 = vmul.f32 1.442695, %v2119_v25 }
 0x205   :  { %v2241_v45 = vpop.f32.mrf.mxu2 }
 0x206   :  { %5444 = vpow2.f32 %v2123_v1 }
 0x209   :  { %v2112_v7 = vpop.xlane.xlu1 %2111 }
 0x20a   :  { %v2120_v10 = vsub.f32 %v2072_v44, %v2112_v7  ;;  %v2275_v44 = vsel %vm2106_vm2, %v2240_v32, -inf }
 0x20c   :  { %v5445_v17 = vpop.eup %5444  ;;  %v2125_v36 = vmul.f32 1.442695, %v2120_v10 }
 0x20d   :  { %v2131_v42 = vsel %vm2106_vm2, %v5445_v17, 0.0  ;;  %v2270_v39 = vpop.f32.mrf.mxu3 }
 0x20e   :  { %5446 = vpow2.f32 %v2125_v36  ;;  %2132 = vadd.xlane.f32.xlu0 %v2131_v42  ;;  %v2271_v25 = vadd.f32 %v2270_v39, %v7152_v11 }
 0x210   :  { %v2281_v1 = vsel %vm2106_vm2, %v2271_v25, -inf }
 0x211   :  { %v2115_v48 = vpop.xlane.xlu2 %2114 }
 0x212   :  { %v2121_v50 = vsub.f32 %v2102_v18, %v2115_v48  ;;  %v2242_v18 = vadd.f32 %v2241_v45, %v7157_v40 }
 0x214   :  { %v5447_v54 = vpop.eup %5446  ;;  %v2127_v59 = vmul.f32 1.442695, %v2121_v50  ;;  %v2278_v23 = vsel %vm2106_vm2, %v2242_v18, -inf }
 0x215   :  { %v2134_v60 = vsel %vm2106_vm2, %v5447_v54, 0.0  ;;  %v2272_v15 = vpop.f32.mrf.mxu3 }
 0x216   :  { %5448 = vpow2.f32 %v2127_v59  ;;  %2135 = vadd.xlane.f32.xlu1 %v2134_v60  ;;  %v2273_v19 = vadd.f32 %v2272_v15, %v7157_v40 }
 0x219   :  { %v2118_v62 = vpop.xlane.xlu2 %2117 }
 0x21a   :  { %v2122_v63 = vsub.f32 %v2104_v22, %v2118_v62  ;;  %v2284_v22 = vsel %vm2106_vm2, %v2273_v19, -inf }
 0x21c   :  { %v5449_v0 = vpop.eup %5448  ;;  %v2129_v12 = vmul.f32 1.442695, %v2122_v63 }
 0x21d   :  { %v2137_v5 = vsel %vm2106_vm2, %v5449_v0, 0.0 }
 0x21e   :  { %5450 = vpow2.f32 %v2129_v12  ;;  %2138 = vadd.xlane.f32.xlu2 %v2137_v5  ;;  %2276 = vmax.xlane.f32.xlu1 %v2275_v44 }
 0x224   :  { %v5451_v20 = vpop.eup %5450 }
 0x225   :  { %v2140_v24 = vsel %vm2106_vm2, %v5451_v20, 0.0 }
 0x226   :  { %2279 = vmax.xlane.f32.xlu2 %v2278_v23  ;;  %2285 = vmax.xlane.f32.xlu1 %v2284_v22 }
 0x227   :  { %2141 = vadd.xlane.f32.xlu0 %v2140_v24 }
 0x22f   :  { %2282 = vmax.xlane.f32.xlu0 %v2281_v1 }
 0x281   :  { %v2133_v7 = vpop.xlane.xlu0 %2132 }
 0x282   :  { %5452 = vrcp.f32 %v2133_v7 }
 0x288   :  { %v5453_v36 = vpop.eup %5452 }
 0x289   :  { %v2136_v10 = vpop.xlane.xlu1 %2135  ;;  %v2147_v42 = vmul.f32 %v5453_v36, %v5445_v17 }
 0x28a   :  { %5454 = vrcp.f32 %v2136_v10 }
 0x28b   :  { %v2151_v50 = vpack.c.bf16 %v2147_v42, %v2147_v42 }
 0x28d   :  { %v2157_v5 = vunpack.c.l.b16 %v2151_v50 }
 0x290   :  { %v5455_v48 = vpop.eup %5454 }
 0x291   :  { %v2148_v46 = vmul.f32 %v5455_v48, %v5447_v54  ;;  %v2139_v59 = vpop.xlane.xlu2 %2138  ;;  %v2277_v60 = vpop.xlane.xlu1 %2276 }
 0x292   :  { %v2287_v62 = vsub.f32 %v2240_v32, %v2277_v60  ;;  %5456 = vrcp.f32 %v2139_v59 }
 0x293   :  { %v2152_v63 = vpack.c.bf16 %v2148_v46, %v2148_v46 }
 0x294   :  { %v2291_v12 = vmul.f32 1.442695, %v2287_v62 }
 0x295   :  { %v2158_v44 = vunpack.c.l.b16 %v2152_v63 }
 0x296   :  { %5458 = vpow2.f32 %v2291_v12 }
 0x297   :  { %v2159_v39 = vpack.c.b16 %v2158_v44, %v2157_v5  ;;  %v1662_v44 = vadd.f32 %v7090_v31, %v7088_v13  ;;  %v1724_v13 = vadd.f32 %v7115_v37, %v7105_v57 }
 0x298   :  { %v5457_v24 = vpop.eup %5456 }
 0x299   :  { %v2280_v45 = vpop.xlane.xlu2 %2279  ;;  %v2286_v15 = vpop.xlane.xlu1 %2285  ;;  %4791 = vmatmul.msk.bf16.vlgmr.msrb.gmra.mxu0 %vm2106_vm2, %v2159_v39  ;;  %v2149_v10 = vmul.f32 %v5457_v24, %v5449_v0  ;;  %v1719_v39 = vadd.f32 %v7109_v6, %v7095_v47  ;;  %v1743_v47 = vadd.f32 %v7117_v41, %v1724_v13 }
 0x29a   :  { %v2288_v23 = vsub.f32 %v2242_v18, %v2280_v45  ;;  %v2290_v22 = vsub.f32 %v2273_v19, %v2286_v15  ;;  %v2142_v17 = vpop.xlane.xlu0 %2141  ;;  %v1681_v45 = vadd.f32 %v7093_v56, %v1662_v44 }
 0x29b   :  { %5460 = vrcp.f32 %v2142_v17  ;;  %v2153_v42 = vpack.c.bf16 %v2149_v10, %v2149_v10  ;;  %v1738_v15 = vadd.f32 %v7111_v61, %v1719_v39  ;;  %v2636_v17 = vunpack.c.l.b16 %v7107_v8  ;;  %v4843_v10 = vld [vmem:[%s8053_s2 + $0xb0] sm:$0xf] }
 0x29c   :  { %v5459_v54 = vpop.eup %5458  ;;  %v2293_v1 = vmul.f32 1.442695, %v2288_v23  ;;  %v2297_v7 = vmul.f32 1.442695, %v2290_v22 }
 0x29d   :  { %v2299_v32 = vsel %vm2106_vm2, %v5459_v54, 0.0  ;;  %v2185_v63 = vunpack.c.l.b16 %v2153_v42  ;;  %v7196_v23 = vpack.c.bf16 %v1738_v15, %v1681_v45  ;;  %v4807_v15 = vld [vmem:[%s8053_s2 + $0x68] sm:$0xf] }
 0x29e   :  { %5462 = vpow2.f32 %v2293_v1  ;;  %2300 = vadd.xlane.f32.xlu2 %v2299_v32 }
 0x29f   :  { %5464 = vpow2.f32 %v2297_v7  ;;  %v2637_v22 = vunpack.c.l.b16 %v7196_v23 }
 0x2a1   :  { %v5461_v36 = vpop.eup %5460  ;;  %v7206_v31 = vpack.c.b16 %v2637_v22, %v2636_v17  ;;  %v5373_v22 = vld [vmem:[%s8053_s2 + $0x70] sm:$0xf0] }
 0x2a2   :  { %v2150_v48 = vmul.f32 %v5461_v36, %v5451_v20  ;;  %v2283_v50 = vpop.xlane.xlu0 %2282  ;;  %v5382_v36 = vld [vmem:[%s8053_s2 + $0xb8] sm:$0xf0]  ;;  %v4808_v13 = vor.u32 %v5373_v22, %v4807_v15 }
 0x2a3   :  { %v2289_v46 = vsub.f32 %v2271_v25, %v2283_v50  ;;  %v4844_v50 = vor.u32 %v5382_v36, %v4843_v10  ;;  %v5360_v36 = vld [vmem:[%s8053_s2 + $0x8] sm:$0xf0] }
 0x2a4   :  { %v5463_v59 = vpop.eup %5462  ;;  %v2154_v18 = vpack.c.bf16 %v2150_v48, %v2150_v48 }
 0x2a5   :  { %v7181_v19 = vpop.eup %5464  ;;  %v2295_v60 = vmul.f32 1.442695, %v2289_v46  ;;  %v2302_v62 = vsel %vm2106_vm2, %v5463_v59, 0.0  ;;  %v5379_v46 = vld [vmem:[%s8053_s2 + $0xa0] sm:$0xf0] }
 0x2a6   :  { %v2186_v12 = vunpack.c.l.b16 %v2154_v18  ;;  %v2308_v0 = vsel %vm2106_vm2, %v7181_v19, 0.0  ;;  %2303 = vadd.xlane.f32.xlu0 %v2302_v62  ;;  %v7236_v62 = vpop.f32.mrf.mxu0 }
 0x2a7   :  { %5466 = vpow2.f32 %v2295_v60  ;;  %2309 = vadd.xlane.f32.xlu2 %v2308_v0 }
 0x2a8   :  { %v2187_v5 = vpack.c.b16 %v2186_v12, %v2185_v63 }
 0x2aa   :  { %4792 = vmatmul.msk.bf16.vlgmr.msrb.gmra.mxu1 %vm2106_vm2, %v2187_v5  ;;  %v4819_v5 = vld [vmem:[%s8053_s2 + $0x80] sm:$0xf] }
 0x2ad   :  { %v5467_v20 = vpop.eup %5466 }
 0x2ae   :  { %v2305_v25 = vsel %vm2106_vm2, %v5467_v20, 0.0 }
 0x2af   :  { %2306 = vadd.xlane.f32.xlu1 %v2305_v25  ;;  %v5376_v25 = vld [vmem:[%s8053_s2 + $0x88] sm:$0xf0] }
 0x2b0   :  { %v4820_v45 = vor.u32 %v5376_v25, %v4819_v5  ;;  %v4835_v5 = vld [vmem:[%s8053_s2 + $0xa8] sm:$0xf]  ;;  %v5380_v25 = vld [vmem:[%s8053_s2 + $0xac] sm:$0xf] }
 0x2ba   :  { %2328 = vrot.lane.b32.xlu0 %v7125_v49, %s5566_s29  ;;  %v1667_v49 = vadd.f32 %v7101_v51, %v7099_v55  ;;  %v2666_v55 = vunpack.c.l.b16 %v7113_v3 }
 0x2bc   :  { %v1686_v56 = vadd.f32 %v7103_v52, %v1667_v49  ;;  %v4889_v49 = vld [vmem:[%s8053_s2 + $0x48] sm:$0xf] }
 0x2be   :  { %v7212_v6 = vpack.c.bf16 %v1743_v47, %v1686_v56  ;;  %v7258_v56 = vpop.f32.mrf.mxu0 }
 0x2c0   :  { %v2667_v61 = vunpack.c.l.b16 %v7212_v6 }
 0x2c2   :  { %v7218_v51 = vpack.c.b16 %v2667_v61, %v2666_v55  ;;  %v4877_v55 = vld [vmem:[%s8053_s2 + $0x30] sm:$0xf] }
 0x2c8   :  { %2353 = vrot.lane.b32.xlu1 %v7138_v9, %s5566_s29 }
 0x2d0   :  { %2943 = vrot.lane.b32.xlu1 %v7206_v31, %s5566_s29 }
 0x2d8   :  { %2936 = vrot.lane.b32.xlu1 %v6976_v28, %s5566_s29 }
 0x2e0   :  { %2974 = vrot.lane.b32.xlu1 %v7218_v51, %s5566_s29 }
 0x2e8   :  { %2965 = vrot.lane.b32.xlu1 %v7056_v34, %s5566_s29 }
 0x311   :  { %v2301_v52 = vpop.xlane.xlu2 %2300 }
 0x319   :  { %v2304_v57 = vpop.xlane.xlu0 %2303 }
 0x31a   :  { %5468 = vrcp.f32 %v2304_v57  ;;  %v2310_v7 = vpop.xlane.xlu2 %2309 }
 0x31b   :  { %5470 = vrcp.f32 %v2301_v52  ;;  %v5366_v52 = vld [vmem:[%s8053_s2 + $0x38] sm:$0xf0] }
 0x320   :  { %v5469_v37 = vpop.eup %5468 }
 0x321   :  { %v5471_v41 = vpop.eup %5470  ;;  %v2316_v9 = vmul.f32 %v5469_v37, %v5463_v59 }
 0x322   :  { %v2315_v24 = vmul.f32 %v5471_v41, %v5459_v54  ;;  %v2307_v1 = vpop.xlane.xlu1 %2306  ;;  %v4831_v54 = vld [vmem:[%s8053_s2 + $0x98] sm:$0xf]  ;;  %v2643_v41 = vsel %vm2053_vm0, %v7206_v31, 0  ;;  %v4853_v31 = vld [vmem:[%s8053_s2] sm:$0xf] }
 0x323   :  { %v2320_v32 = vpack.c.bf16 %v2316_v9, %v2316_v9  ;;  %5472 = vrcp.f32 %v2307_v1  ;;  %v4832_v12 = vor.u32 %v5379_v46, %v4831_v54  ;;  %v4865_v1 = vld [vmem:[%s8053_s2 + $0x18] sm:$0xf]  ;;  %v7283_v54 = vpop.f32.mrf.mxu1  ;;  %v2673_v46 = vsel %vm2053_vm0, %v7218_v51, 0  ;;  %v5381_v51 = vld [vmem:[%s8053_s2 + $0xb0] sm:$0xf0] }
 0x324   :  { %v2319_v42 = vpack.c.bf16 %v2315_v24, %v2315_v24  ;;  %5474 = vrcp.f32 %v2310_v7  ;;  %v4878_v24 = vor.u32 %v5366_v52, %v4877_v55  ;;  %v5363_v7 = vld [vmem:[%s8053_s2 + $0x20] sm:$0xf0]  ;;  %v4823_v55 = vld [vmem:[%s8053_s2 + $0x90] sm:$0xf]  ;;  %v5378_v52 = vld [vmem:[%s8053_s2 + $0x98] sm:$0xf0] }
 0x325   :  { %v2326_v48 = vunpack.c.l.b16 %v2320_v32  ;;  %v2178_v32 = vpop.f32.mrf.mxu0  ;;  %v4866_v10 = vor.u32 %v5363_v7, %v4865_v1  ;;  %v5374_v1 = vld [vmem:[%s8053_s2 + $0x7c] sm:$0xf]  ;;  %v4813_v7 = vld [vmem:[%s8053_s2 + $0x84] sm:$0xf0] }
 0x326   :  { %v2325_v59 = vunpack.c.l.b16 %v2319_v42  ;;  %v4854_v42 = vor.u32 %v5360_v36, %v4853_v31  ;;  %v4799_v31 = vld [vmem:[%s8053_s2 + $0x60] sm:$0xf]  ;;  %v5372_v36 = vld [vmem:[%s8053_s2 + $0x68] sm:$0xf0] }
 0x328   :  { %v2327_v63 = vpack.c.b16 %v2326_v48, %v2325_v59  ;;  %v2766_v48 = vrot.slane %v7132_v35, 4 }
 0x329   :  { %v5473_v60 = vpop.eup %5472 }
 0x32a   :  { %v5475_v0 = vpop.eup %5474  ;;  %v2317_v44 = vmul.f32 %v5473_v60, %v5467_v20  ;;  %v5369_v20 = vld [vmem:[%s8053_s2 + $0x50] sm:$0xf0]  ;;  %v2773_v59 = vunpack.c.l.b16 %v2766_v48  ;;  %v4800_v48 = vor.u32 %v5372_v36, %v4799_v31 }
 0x32b   :  { %v2318_v39 = vmul.f32 %v5475_v0, %v7181_v19  ;;  %v4890_v61 = vor.u32 %v5369_v20, %v4889_v49  ;;  %v2206_v0 = vpop.f32.mrf.mxu1  ;;  %v2659_v49 = vrot.slane %v7056_v34, 4  ;;  %v5377_v34 = vld [vmem:[%s8053_s2 + $0x94] sm:$0xf] }
 0x32c   :  { %v2329_v18 = vpop.permute.xlu0 %2328  ;;  %v2321_v17 = vpack.c.bf16 %v2317_v44, %v2317_v44  ;;  %v4836_v44 = vor.u32 %v5381_v51, %v4835_v5  ;;  %v5365_v51 = vld [vmem:[%s8053_s2 + $0x34] sm:$0xf] }
 0x32d   :  { %2341 = vmatpush.bf16.msra.mxu0 %v2329_v18  ;;  %v2322_v19 = vpack.c.bf16 %v2318_v39, %v2318_v39  ;;  %v2180_v18 = vpop.f32.mrf.mxu0  ;;  %v4837_v39 = vld [vmem:[%s8053_s2 + $0xb4] sm:$0xf0] }
 0x32e   :  { %v2350_v47 = vunpack.c.l.b16 %v2321_v17  ;;  %2449 = vmatpush.bf16.msra.mxu2 %v4836_v44  ;;  %v2660_v17 = vrot.slane %v7058_v30, 4  ;;  %v4885_v44 = vld [vmem:[%s8053_s2 + $0x38] sm:$0xf] }
 0x32f   :  { %v2351_v57 = vunpack.c.l.b16 %v2322_v19  ;;  %v2661_v19 = vunpack.c.l.b16 %v2659_v49 }
 0x330   :  { %4795 = vmatmul.msk.bf16.vlgmr.msra.gmra.mxu0 %vm2106_vm2, %v2327_v63  ;;  %v7287_v63 = vpack.c.bf16 %v2180_v18, %v2178_v32  ;;  %v2662_v20 = vunpack.c.l.b16 %v2660_v17  ;;  %v4891_v18 = vld [vmem:[%s8053_s2 + $0x54] sm:$0xf0]  ;;  %v4867_v17 = vld [vmem:[%s8053_s2 + $0x24] sm:$0xf0] }
 0x331   :  { %2487 = vmatpush.bf16.msrb.mxu0 %v4844_v50  ;;  %v2352_v9 = vpack.c.b16 %v2351_v57, %v2350_v47  ;;  %v2765_v50 = vrot.slane %v7130_v2, 4  ;;  %v4824_v57 = vor.u32 %v5378_v52, %v4823_v55  ;;  %v2737_v52 = vrot.slane %v7119_v4, 4 }
 0x332   :  { %v2663_v47 = vpack.c.b16 %v2662_v20, %v2661_v19  ;;  %v4873_v19 = vld [vmem:[%s8053_s2 + $0x20] sm:$0xf] }
 0x333   :  { %v2772_v60 = vunpack.c.l.b16 %v2765_v50  ;;  %v2208_v15 = vpop.f32.mrf.mxu1  ;;  %2450 = vmatpush.bf16.msra.mxu2 %v4824_v57  ;;  %v4801_v50 = vld [vmem:[%s8053_s2 + $0x6c] sm:$0xf0] }
 0x334   :  { %v7303_v22 = vpack.c.bf16 %v2208_v15, %v2206_v0  ;;  %v5370_v0 = vld [vmem:[%s8053_s2 + $0x58] sm:$0xf0]  ;;  %v4855_v57 = vld [vmem:[%s8053_s2 + $0xc] sm:$0xf0] }
 0x335   :  { %2488 = vmatpush.bf16.msrb.mxu0 %v4832_v12  ;;  %v2774_v12 = vpack.c.b16 %v2773_v59, %v2772_v60  ;;  %v5368_v59 = vld [vmem:[%s8053_s2 + $0x4c] sm:$0xf]  ;;  %v4897_v60 = vld [vmem:[%s8053_s2 + $0x50] sm:$0xf]  ;;  %v5362_v15 = vld [vmem:[%s8053_s2 + $0x1c] sm:$0xf] }
 0x336   :  { %v4898_v5 = vor.u32 %v5370_v0, %v4897_v60 }
 0x339   :  { %2489 = vmatpush.bf16.msrb.mxu0 %v4820_v45  ;;  %v4840_v45 = vor.u32 %v5380_v25, %v4837_v39  ;;  %v4879_v25 = vld [vmem:[%s8053_s2 + $0x3c] sm:$0xf0] }
 0x33a   :  { %v2354_v37 = vpop.permute.xlu1 %2353  ;;  %v4882_v39 = vor.u32 %v5365_v51, %v4879_v25 }
 0x33b   :  { %2366 = vmatpush.bf16.msra.mxu1 %v2354_v37  ;;  %2468 = vmatpush.bf16.msra.mxu3 %v4840_v45  ;;  %v4825_v37 = vld [vmem:[%s8053_s2 + $0x9c] sm:$0xf0]  ;;  %v5367_v45 = vld [vmem:[%s8053_s2 + $0x40] sm:$0xf0] }
 0x33c   :  { %v4886_v20 = vor.u32 %v5367_v45, %v4885_v44 }
 0x33d   :  { %2490 = vmatpush.bf16.msrb.mxu0 %v4808_v13 }
 0x33e   :  { %4796 = vmatmul.msk.bf16.vlgmr.msra.gmra.mxu1 %vm2106_vm2, %v2352_v9  ;;  %v5375_v9 = vld [vmem:[%s8053_s2 + $0x80] sm:$0xf0] }
 0x33f   :  { %2576 = vmatpush.bf16.msrb.mxu1 %v4890_v61 }
 0x341   :  { %2652 = vmatpush.bf16.xpose.msra.mxu0 %v2643_v41  ;;  %v4811_v41 = vld [vmem:[%s8053_s2 + $0x78] sm:$0xf] }
 0x342   :  { %v2944_v13 = vpop.permute.xlu1 %2943  ;;  %v4812_v32 = vor.u32 %v5375_v9, %v4811_v41 }
 0x343   :  { %2577 = vmatpush.bf16.msrb.mxu1 %v4878_v24  ;;  %v2949_v61 = vsel %vm2053_vm0, %v2944_v13, 0  ;;  %v4828_v24 = vor.u32 %v5377_v34, %v4825_v37  ;;  %v5364_v13 = vld [vmem:[%s8053_s2 + $0x28] sm:$0xf0]  ;;  %v5359_v34 = vld [vmem:[%s8053_s2 + $0x4] sm:$0xf] }
 0x344   :  { %2451 = vmatpush.bf16.msra.mxu2 %v4812_v32  ;;  %v4874_v55 = vor.u32 %v5364_v13, %v4873_v19  ;;  %v4861_v37 = vld [vmem:[%s8053_s2 + $0x8] sm:$0xf]  ;;  %v4858_v9 = vor.u32 %v5359_v34, %v4855_v57  ;;  %v2744_v32 = vunpack.c.l.b16 %v2737_v52 }
 0x345   :  { %2469 = vmatpush.bf16.msra.mxu3 %v4828_v24  ;;  %v5361_v24 = vld [vmem:[%s8053_s2 + $0x10] sm:$0xf0] }
 0x347   :  { %2578 = vmatpush.bf16.msrb.mxu1 %v4866_v10  ;;  %v4816_v10 = vor.u32 %v5374_v1, %v4813_v7  ;;  %v4862_v7 = vor.u32 %v5361_v24, %v4861_v37 }
 0x348   :  { %2452 = vmatpush.bf16.msra.mxu2 %v4800_v48 }
 0x349   :  { %2470 = vmatpush.bf16.msra.mxu3 %v4816_v10 }
 0x34b   :  { %2579 = vmatpush.bf16.msrb.mxu1 %v4854_v42  ;;  %v5371_v42 = vld [vmem:[%s8053_s2 + $0x64] sm:$0xf] }
 0x34e   :  { %4899 = vmatmul.msk.bf16.vlgmr.msrb.gmra.mxu1 %vm2053_vm0, %v7287_v63 }
 0x34f   :  { %2682 = vmatpush.bf16.xpose.msra.mxu1 %v2673_v46  ;;  %v4804_v46 = vor.u32 %v5371_v42, %v4801_v50 }
 0x351   :  { %2471 = vmatpush.bf16.msra.mxu3 %v4804_v46  ;;  %v2630_v46 = vrot.slane %v6976_v28, 4 }
 0x355   :  { %2614 = vmatpush.bf16.msrb.mxu3 %v4898_v5 }
 0x357   :  { %2786 = vmatpush.bf16.msrb.mxu1 %v2774_v12  ;;  %v4894_v12 = vor.u32 %v5368_v59, %v4891_v18  ;;  %v2629_v59 = vrot.slane %v6968_v26, 4  ;;  %v2632_v18 = vunpack.c.l.b16 %v2630_v46 }
 0x359   :  { %2595 = vmatpush.bf16.msrb.mxu2 %v4894_v12  ;;  %2615 = vmatpush.bf16.msrb.mxu3 %v4886_v20  ;;  %v2631_v12 = vunpack.c.l.b16 %v2629_v59 }
 0x35b   :  { %v2633_v0 = vpack.c.b16 %v2632_v18, %v2631_v12 }
 0x35d   :  { %2596 = vmatpush.bf16.msrb.mxu2 %v4882_v39  ;;  %2616 = vmatpush.bf16.msrb.mxu3 %v4874_v55 }
 0x35e   :  { %4900 = vmatmul.msk.bf16.gmra.mxu1 %vm2053_vm0, %v7303_v22 }
 0x361   :  { %2617 = vmatpush.bf16.msrb.mxu3 %v4862_v7 }
 0x36e   :  { %4906 = vmatmul.msk.bf16.vlgmr.msra.gmra.mxu1 %vm2053_vm0, %v2663_v47  ;;  %v4870_v47 = vor.u32 %v5362_v15, %v4867_v17 }
 0x36f   :  { %2958 = vmatpush.bf16.xpose.msra.mxu1 %v2949_v61  ;;  %v2738_v61 = vrot.slane %v7121_v43, 4 }
 0x370   :  { %2597 = vmatpush.bf16.msrb.mxu2 %v4870_v47 }
 0x371   :  { %v2745_v41 = vunpack.c.l.b16 %v2738_v61 }
 0x373   :  { %v2746_v31 = vpack.c.b16 %v2745_v41, %v2744_v32 }
 0x374   :  { %2598 = vmatpush.bf16.msrb.mxu2 %v4858_v9 }
 0x3ad   :  { %v2343_v49 = vpop.f32.mrf.mxu0 }
 0x3b5   :  { %v2345_v1 = vpop.f32.mrf.mxu0 }
 0x3b6   :  { %v2373_v10 = vpack.c.bf16 %v2345_v1, %v2343_v49 }
 0x3b8   :  { %4845 = vmatmul.msk.bf16.vlgmr.msra.gmra.mxu2 %vm2053_vm0, %v2373_v10  ;;  %4847 = vmatmul.msk.bf16.vlgmr.msra.gmra.mxu3 %vm2053_vm0, %v2373_v10 }
 0x3b9   :  { %4849 = vmatmul.msk.bf16.vlgmr.msrb.gmra.mxu0 %vm2053_vm0, %v2373_v10 }
 0x3ba   :  { %2758 = vmatpush.bf16.msrb.mxu0 %v2746_v31 }
 0x3bb   :  { %v2368_v36 = vpop.f32.mrf.mxu1 }
 0x3c3   :  { %v2370_v42 = vpop.f32.mrf.mxu1 }
 0x3c4   :  { %v2374_v48 = vpack.c.bf16 %v2370_v42, %v2368_v36 }
 0x3c8   :  { %4846 = vmatmul.msk.bf16.gmra.mxu2 %vm2053_vm0, %v2374_v48  ;;  %4848 = vmatmul.msk.bf16.gmra.mxu3 %vm2053_vm0, %v2374_v48 }
 0x3c9   :  { %4850 = vmatmul.msk.bf16.gmra.mxu0 %vm2053_vm0, %v2374_v48 }
 0x3cb   :  { %v7403_v50 = vpop.f32.mrf.mxu1 }
 0x3d3   :  { %v7407_v60 = vpop.f32.mrf.mxu1 }
 0x3d8   :  { %4901 = vmatmul.msk.bf16.vlgmr.msrb.gmra.mxu2 %vm2053_vm0, %v7287_v63  ;;  %4903 = vmatmul.msk.bf16.vlgmr.msrb.gmra.mxu3 %vm2053_vm0, %v7287_v63 }
 0x3d9   :  { %4905 = vmatmul.msk.bf16.vlgmr.msra.gmra.mxu0 %vm2053_vm0, %v2633_v0 }
 0x3db   :  { %v7414_v5 = vpop.f32.mrf.mxu1 }
 0x3e3   :  { %v7416_v51 = vpop.f32.mrf.mxu1 }
 0x3e8   :  { %4902 = vmatmul.msk.bf16.gmra.mxu2 %vm2053_vm0, %v7303_v22  ;;  %4904 = vmatmul.msk.bf16.gmra.mxu3 %vm2053_vm0, %v7303_v22 }
 0x3eb   :  { %v2684_v28 = vpop.f32.mrf.mxu1 }
 0x3ec   :  { %v2685_v25 = vadd.f32 %v2684_v28, %v7152_v11 }
 0x3ee   :  { %v2695_v44 = vsel %vm2106_vm2, %v2685_v25, -inf }
 0x3ef   :  { %2696 = vmax.xlane.f32.xlu2 %v2695_v44 }
 0x3f3   :  { %v2686_v39 = vpop.f32.mrf.mxu1 }
 0x3f4   :  { %v2687_v63 = vadd.f32 %v2686_v39, %v7157_v40 }
 0x3f6   :  { %v2698_v45 = vsel %vm2106_vm2, %v2687_v63, -inf }
 0x3f7   :  { %2699 = vmax.xlane.f32.xlu2 %v2698_v45 }
 0x436   :  { %v2492_v15 = vpop.f32.mrf.mxu0 }
 0x43b   :  { %v7426_v17 = vpop.f32.mrf.mxu2  ;;  %v2473_v49 = vpop.f32.mrf.mxu3 }
 0x43e   :  { %v7428_v20 = vpop.f32.mrf.mxu0 }
 0x443   :  { %v7430_v19 = vpop.f32.mrf.mxu2  ;;  %v2475_v22 = vpop.f32.mrf.mxu3 }
 0x446   :  { %v2497_v13 = vpop.f32.mrf.mxu0 }
 0x44b   :  { %v7432_v47 = vpop.f32.mrf.mxu2  ;;  %v2478_v61 = vpop.f32.mrf.mxu3 }
 0x44e   :  { %v7434_v55 = vpop.f32.mrf.mxu0 }
 0x453   :  { %v7436_v52 = vpop.f32.mrf.mxu2  ;;  %v7438_v34 = vpop.f32.mrf.mxu3 }
 0x456   :  { %v2654_v57 = vpop.f32.mrf.mxu0 }
 0x457   :  { %v2655_v37 = vadd.f32 %v2654_v57, %v7152_v11 }
 0x459   :  { %v2689_v41 = vsel %vm2106_vm2, %v2655_v37, -inf }
 0x45a   :  { %2690 = vmax.xlane.f32.xlu1 %v2689_v41 }
 0x45b   :  { %v2600_v9 = vpop.f32.mrf.mxu2  ;;  %v2619_v24 = vpop.f32.mrf.mxu3 }
 0x45c   :  { %v7442_v1 = vadd.f32 %v2600_v9, %v2473_v49  ;;  %v7444_v7 = vadd.f32 %v2619_v24, %v2492_v15 }
 0x462   :  { %v2697_v32 = vpop.xlane.xlu2 %2696 }
 0x463   :  { %v2703_v10 = vsub.f32 %v2685_v25, %v2697_v32  ;;  %v2602_v31 = vpop.f32.mrf.mxu2  ;;  %v7446_v36 = vpop.f32.mrf.mxu3 }
 0x464   :  { %v7448_v42 = vadd.f32 %v2602_v31, %v2475_v22  ;;  %v2656_v25 = vpop.f32.mrf.mxu0 }
 0x465   :  { %v2709_v48 = vmul.f32 1.442695, %v2703_v10  ;;  %v2657_v15 = vadd.f32 %v2656_v25, %v7157_v40 }
 0x467   :  { %5476 = vpow2.f32 %v2709_v48 }
 0x46a   :  { %v2700_v46 = vpop.xlane.xlu2 %2699 }
 0x46b   :  { %v2704_v59 = vsub.f32 %v2687_v63, %v2700_v46  ;;  %v2605_v18 = vpop.f32.mrf.mxu2  ;;  %v2624_v12 = vpop.f32.mrf.mxu3  ;;  %v2692_v63 = vsel %vm2106_vm2, %v2657_v15, -inf }
 0x46c   :  { %v7450_v0 = vadd.f32 %v2605_v18, %v2478_v61  ;;  %v7452_v28 = vadd.f32 %v2624_v12, %v2497_v13  ;;  %v2937_v13 = vpop.permute.xlu1 %2936 }
 0x46d   :  { %v5477_v44 = vpop.eup %5476  ;;  %v2711_v39 = vmul.f32 1.442695, %v2704_v59 }
 0x46e   :  { %v2719_v45 = vsel %vm2106_vm2, %v5477_v44, 0.0 }
 0x46f   :  { %5478 = vpow2.f32 %v2711_v39  ;;  %2720 = vadd.xlane.f32.xlu0 %v2719_v45 }
 0x474   :  { %v2975_v61 = vpop.permute.xlu1 %2974 }
 0x475   :  { %v5479_v49 = vpop.eup %5478 }
 0x476   :  { %v2722_v22 = vsel %vm2106_vm2, %v5479_v49, 0.0 }
 0x477   :  { %2723 = vadd.xlane.f32.xlu2 %v2722_v22  ;;  %2693 = vmax.xlane.f32.xlu0 %v2692_v63 }
 0x47c   :  { %v7462_v57 = vpop.permute.xlu1 %2965 }
 0x48f   :  { %2934 = vrot.lane.b32.xlu2 %v6968_v26, %s5566_s29 }
 0x497   :  { %2967 = vrot.lane.b32.xlu2 %v7058_v30, %s5566_s29 }
 0x4cd   :  { %v2691_v41 = vpop.xlane.xlu1 %2690 }
 0x4ce   :  { %v2701_v9 = vsub.f32 %v2655_v37, %v2691_v41 }
 0x4d0   :  { %v2705_v24 = vmul.f32 1.442695, %v2701_v9 }
 0x4d2   :  { %5480 = vpow2.f32 %v2705_v24  ;;  %v2980_v24 = vsel %vm2053_vm0, %v2975_v61, 0 }
 0x4d8   :  { %v7464_v32 = vpop.eup %5480 }
 0x4d9   :  { %v2713_v10 = vsel %vm2106_vm2, %v7464_v32, 0.0 }
 0x4da   :  { %2714 = vadd.xlane.f32.xlu2 %v2713_v10  ;;  %v5404_v10 = vld [vmem:[%s8053_s2 + $0x16c] sm:$0xf] }
 0x4e2   :  { %v2721_v31 = vpop.xlane.xlu0 %2720 }
 0x4e3   :  { %5482 = vrcp.f32 %v2721_v31  ;;  %v5007_v31 = vld [vmem:[%s8053_s2 + $0x174] sm:$0xf0] }
 0x4e4   :  { %v5010_v61 = vor.u32 %v5404_v10, %v5007_v31 }
 0x4e9   :  { %v5483_v46 = vpop.eup %5482 }
 0x4ea   :  { %v2724_v26 = vpop.xlane.xlu2 %2723  ;;  %v2694_v48 = vpop.xlane.xlu0 %2693  ;;  %v2731_v18 = vmul.f32 %v5483_v46, %v5477_v44  ;;  %v1895_v46 = vadd.f32 %v7283_v54, %v7149_v58  ;;  %v5395_v58 = vld [vmem:[%s8053_s2 + $0x124] sm:$0xf]  ;;  %v4971_v54 = vld [vmem:[%s8053_s2 + $0x12c] sm:$0xf0] }
 0x4eb   :  { %5484 = vrcp.f32 %v2724_v26  ;;  %v2702_v30 = vsub.f32 %v2657_v15, %v2694_v48 }
 0x4ec   :  { %v2735_v37 = vpack.c.bf16 %v2731_v18, %v2731_v18  ;;  %v4983_v18 = vld [vmem:[%s8053_s2 + $0x144] sm:$0xf0] }
 0x4ed   :  { %v2707_v59 = vmul.f32 1.442695, %v2702_v30 }
 0x4ee   :  { %v2769_v22 = vunpack.c.l.b16 %v2735_v37 }
 0x4ef   :  { %5486 = vpow2.f32 %v2707_v59  ;;  %v5398_v59 = vld [vmem:[%s8053_s2 + $0x13c] sm:$0xf] }
 0x4f1   :  { %v5485_v12 = vpop.eup %5484 }
 0x4f2   :  { %v2732_v39 = vmul.f32 %v5485_v12, %v5479_v49  ;;  %3078 = vrot.lane.b32.xlu2 %v7132_v35, %s5566_s29  ;;  %v2935_v44 = vpop.permute.xlu2 %2934  ;;  %v2939_v49 = vrot.slane %v2937_v13, 4  ;;  %v4995_v13 = vld [vmem:[%s8053_s2 + $0x15c] sm:$0xf0]  ;;  %v1914_v12 = vadd.f32 %v7165_v33, %v1895_v46  ;;  %v4974_v33 = vor.u32 %v5395_v58, %v4971_v54  ;;  %v4947_v58 = vld [vmem:[%s8053_s2 + $0x108] sm:$0xf] }
 0x4f3   :  { %v2938_v15 = vrot.slane %v2935_v44, 4  ;;  %v5393_v54 = vld [vmem:[%s8053_s2 + $0x110] sm:$0xf0] }
 0x4f4   :  { %v2736_v45 = vpack.c.bf16 %v2732_v39, %v2732_v39  ;;  %v2941_v26 = vunpack.c.l.b16 %v2939_v49  ;;  %v4986_v39 = vor.u32 %v5398_v59, %v4983_v18 }
 0x4f5   :  { %v5487_v25 = vpop.eup %5486  ;;  %v2940_v35 = vunpack.c.l.b16 %v2938_v15 }
 0x4f6   :  { %v2770_v63 = vunpack.c.l.b16 %v2736_v45  ;;  %v2716_v41 = vsel %vm2106_vm2, %v5487_v25, 0.0 }
 0x4f7   :  { %2717 = vadd.xlane.f32.xlu0 %v2716_v41  ;;  %v2942_v48 = vpack.c.b16 %v2941_v26, %v2940_v35  ;;  %v1930_v41 = vpack.c.bf16 %v7147_v29, %v7147_v29 }
 0x4f8   :  { %v2771_v9 = vpack.c.b16 %v2770_v63, %v2769_v22  ;;  %v1935_v22 = vpack.c.bf16 %v1914_v12, %v1914_v12  ;;  %v2969_v63 = vrot.slane %v7462_v57, 4 }
 0x4f9   :  { %v3388_v15 = vunpack.c.l.b16 %v1930_v41  ;;  %v4948_v41 = vor.u32 %v5393_v54, %v4947_v58  ;;  %v4993_v54 = vld [vmem:[%s8053_s2 + $0x150] sm:$0xf] }
 0x4fa   :  { %3044 = vrot.lane.b32.xlu2 %v7119_v4, %s5566_s29  ;;  %4908 = vmatmul.msk.bf16.vlgmr.msrb.gmra.mxu1 %vm2106_vm2, %v2771_v9  ;;  %v5401_v4 = vld [vmem:[%s8053_s2 + $0x154] sm:$0xf]  ;;  %v2968_v37 = vpop.permute.xlu2 %2967  ;;  %v2971_v44 = vunpack.c.l.b16 %v2969_v63 }
 0x4fb   :  { %2989 = vmatpush.bf16.xpose.msrb.mxu1 %v2980_v24  ;;  %v4998_v30 = vor.u32 %v5401_v4, %v4995_v13  ;;  %v2970_v45 = vrot.slane %v2968_v37, 4  ;;  %v3389_v24 = vunpack.c.l.b16 %v1935_v22  ;;  %v4955_v37 = vld [vmem:[%s8053_s2 + $0x110] sm:$0xf]  ;;  %v5392_v22 = vld [vmem:[%s8053_s2 + $0x10c] sm:$0xf]  ;;  %2869 = vmatpush.bf16.msra.mxu2 %v4948_v41 }
 0x4fd   :  { %v2972_v9 = vunpack.c.l.b16 %v2970_v45  ;;  %v7506_v35 = vpack.c.b16 %v3389_v24, %v3388_v15  ;;  %v5391_v45 = vld [vmem:[%s8053_s2 + $0x100] sm:$0xf0]  ;;  %v4931_v24 = vld [vmem:[%s8053_s2 + $0xe0] sm:$0xf] }
 0x4ff   :  { %v2973_v49 = vpack.c.b16 %v2972_v9, %v2971_v44  ;;  %v5388_v44 = vld [vmem:[%s8053_s2 + $0xe8] sm:$0xf0] }
 0x50a   :  { %4963 = vmatmul.msk.bf16.vlgmr.msra.gmra.mxu1 %vm2053_vm0, %v2942_v48 }
 0x50b   :  { %3203 = vmatpush.bf16.msra.mxu1 %v5010_v61 }
 0x50f   :  { %3204 = vmatpush.bf16.msra.mxu1 %v4998_v30 }
 0x513   :  { %3205 = vmatpush.bf16.msra.mxu1 %v4986_v39 }
 0x517   :  { %3206 = vmatpush.bf16.msra.mxu1 %v4974_v33  ;;  %v4949_v33 = vld [vmem:[%s8053_s2 + $0x114] sm:$0xf0] }
 0x518   :  { %v4952_v15 = vor.u32 %v5392_v22, %v4949_v33  ;;  %v5402_v22 = vld [vmem:[%s8053_s2 + $0x158] sm:$0xf0]  ;;  %v5387_v33 = vld [vmem:[%s8053_s2 + $0xe0] sm:$0xf0] }
 0x519   :  { %v4994_v41 = vor.u32 %v5402_v22, %v4993_v54 }
 0x51a   :  { %4964 = vmatmul.msk.bf16.vlgmr.msrb.gmra.mxu1 %vm2053_vm0, %v2973_v49  ;;  %2888 = vmatpush.bf16.msra.mxu3 %v4952_v15  ;;  %v4932_v49 = vor.u32 %v5388_v44, %v4931_v24  ;;  %v5386_v24 = vld [vmem:[%s8053_s2 + $0xdc] sm:$0xf]  ;;  %v4925_v44 = vld [vmem:[%s8053_s2 + $0xe4] sm:$0xf0] }
 0x51b   :  { %3402 = vmatpush.bf16.msrb.mxu1 %v7506_v35 }
 0x54d   :  { %v2715_v10 = vpop.xlane.xlu2 %2714 }
 0x54e   :  { %5488 = vrcp.f32 %v2715_v10  ;;  %v4919_v10 = vld [vmem:[%s8053_s2 + $0xc8] sm:$0xf] }
 0x554   :  { %v5489_v31 = vpop.eup %5488 }
 0x555   :  { %v2729_v29 = vmul.f32 %v5489_v31, %v7464_v32  ;;  %v5394_v32 = vld [vmem:[%s8053_s2 + $0x118] sm:$0xf0]  ;;  %v5005_v31 = vld [vmem:[%s8053_s2 + $0x168] sm:$0xf] }
 0x556   :  { %v4956_v39 = vor.u32 %v5394_v32, %v4955_v37  ;;  %v4935_v37 = vld [vmem:[%s8053_s2 + $0xf0] sm:$0xf]  ;;  %v5390_v32 = vld [vmem:[%s8053_s2 + $0xf8] sm:$0xf0] }
 0x557   :  { %v2733_v61 = vpack.c.bf16 %v2729_v29, %v2729_v29  ;;  %v5405_v29 = vld [vmem:[%s8053_s2 + $0x170] sm:$0xf0] }
 0x558   :  { %2907 = vmatpush.bf16.msra.mxu0 %v4956_v39  ;;  %v4936_v39 = vor.u32 %v5390_v32, %v4935_v37  ;;  %v5396_v37 = vld [vmem:[%s8053_s2 + $0x128] sm:$0xf0] }
 0x559   :  { %v2741_v13 = vunpack.c.l.b16 %v2733_v61 }
 0x55a   :  { %2870 = vmatpush.bf16.msra.mxu2 %v4936_v39  ;;  %v1890_v39 = vadd.f32 %v7140_v16, %v7258_v56 }
 0x56a   :  { %v2718_v57 = vpop.xlane.xlu0 %2717 }
 0x56b   :  { %5490 = vrcp.f32 %v2718_v57  ;;  %v5385_v57 = vld [vmem:[%s8053_s2 + $0xd0] sm:$0xf0] }
 0x571   :  { %v5491_v26 = vpop.eup %5490 }
 0x572   :  { %v2730_v48 = vmul.f32 %v5491_v26, %v5487_v25  ;;  %v4943_v25 = vld [vmem:[%s8053_s2 + $0xf8] sm:$0xf]  ;;  %v4920_v26 = vor.u32 %v5385_v57, %v4919_v10  ;;  %v5399_v57 = vld [vmem:[%s8053_s2 + $0x140] sm:$0xf0] }
 0x573   :  { %v4944_v63 = vor.u32 %v5391_v45, %v4943_v25  ;;  %v5389_v25 = vld [vmem:[%s8053_s2 + $0xf4] sm:$0xf]  ;;  %v4937_v45 = vld [vmem:[%s8053_s2 + $0xfc] sm:$0xf0]  ;;  %v4981_v10 = vld [vmem:[%s8053_s2 + $0x138] sm:$0xf] }
 0x574   :  { %v2734_v4 = vpack.c.bf16 %v2730_v48, %v2730_v48  ;;  %v5006_v48 = vor.u32 %v5405_v29, %v5005_v31  ;;  %v4940_v58 = vor.u32 %v5389_v25, %v4937_v45  ;;  %v4982_v31 = vor.u32 %v5399_v57, %v4981_v10  ;;  %v4911_v29 = vld [vmem:[%s8053_s2 + $0xc0] sm:$0xf] }
 0x575   :  { %2908 = vmatpush.bf16.msra.mxu0 %v4944_v63  ;;  %v4923_v63 = vld [vmem:[%s8053_s2 + $0xd8] sm:$0xf]  ;;  %v1888_v25 = vadd.f32 %v7128_v38, %v7236_v62 }
 0x576   :  { %v2742_v46 = vunpack.c.l.b16 %v2734_v4  ;;  %2889 = vmatpush.bf16.msra.mxu3 %v4940_v58  ;;  %v4924_v15 = vor.u32 %v5387_v33, %v4923_v63  ;;  %v1909_v58 = vadd.f32 %v7143_v21, %v1890_v39 }
 0x577   :  { %v2788_v30 = vpop.f32.mrf.mxu1  ;;  %v1907_v45 = vadd.f32 %v7136_v14, %v1888_v25 }
 0x578   :  { %v2743_v59 = vpack.c.b16 %v2742_v46, %v2741_v13  ;;  %2871 = vmatpush.bf16.msra.mxu2 %v4924_v15  ;;  %v1925_v63 = vpack.c.bf16 %v1909_v58, %v1909_v58 }
 0x579   :  { %2909 = vmatpush.bf16.msra.mxu0 %v4932_v49  ;;  %v4928_v49 = vor.u32 %v5386_v24, %v4925_v44  ;;  %v1920_v22 = vpack.c.bf16 %v1907_v45, %v1907_v45 }
 0x57a   :  { %4907 = vmatmul.msk.bf16.vlgmr.msrb.gmra.mxu0 %vm2106_vm2, %v2743_v59  ;;  %v3361_v33 = vunpack.c.l.b16 %v1925_v63 }
 0x57b   :  { %2890 = vmatpush.bf16.msra.mxu3 %v4928_v49 }
 0x57d   :  { %2910 = vmatpush.bf16.msra.mxu0 %v4920_v26  ;;  %v5384_v26 = vld [vmem:[%s8053_s2 + $0xc8] sm:$0xf0] }
 0x57f   :  { %v2790_v18 = vpop.f32.mrf.mxu1 }
 0x580   :  { %v7512_v12 = vpack.c.bf16 %v2790_v18, %v2788_v30 }
 0x581   :  { %3184 = vmatpush.bf16.msrb.mxu0 %v5006_v48  ;;  %v5383_v48 = vld [vmem:[%s8053_s2 + $0xc4] sm:$0xf] }
 0x585   :  { %3185 = vmatpush.bf16.msrb.mxu0 %v4994_v41  ;;  %v3360_v41 = vunpack.c.l.b16 %v1920_v22 }
 0x587   :  { %v7538_v9 = vpop.f32.mrf.mxu1  ;;  %v7627_v15 = vpack.c.b16 %v3361_v33, %v3360_v41  ;;  %v3250_v41 = vrot.slane %v7196_v23, 4 }
 0x589   :  { %3186 = vmatpush.bf16.msrb.mxu0 %v4982_v31  ;;  %v2961_v31 = vadd.f32 %v7538_v9, %v7152_v11 }
 0x58f   :  { %v7558_v61 = vpop.f32.mrf.mxu1 }
 0x597   :  { %v2991_v4 = vpop.f32.mrf.mxu1 }
 0x598   :  { %v2992_v13 = vadd.f32 %v2991_v4, %v7152_v11  ;;  %v4912_v4 = vor.u32 %v5384_v26, %v4911_v29  ;;  %v2996_v29 = vsel %vm2106_vm2, %v2961_v31, -inf  ;;  %v7653_v26 = vpop.f32.mrf.mxu2 }
 0x59a   :  { %v3002_v46 = vsel %vm2106_vm2, %v2992_v13, -inf  ;;  %2872 = vmatpush.bf16.msra.mxu2 %v4912_v4 }
 0x59b   :  { %3003 = vmax.xlane.f32.xlu0 %v3002_v46  ;;  %v4913_v46 = vld [vmem:[%s8053_s2 + $0xcc] sm:$0xf0] }
 0x59f   :  { %v2993_v30 = vpop.f32.mrf.mxu1 }
 0x5a0   :  { %v7563_v59 = vadd.f32 %v2993_v30, %v7157_v40  ;;  %v4916_v30 = vor.u32 %v5383_v48, %v4913_v46  ;;  %v7655_v48 = vpop.f32.mrf.mxu3  ;;  %v2582_v46 = vadd.f32 %v7403_v50, %v7426_v17 }
 0x5a2   :  { %v3005_v18 = vsel %vm2106_vm2, %v7563_v59, -inf  ;;  %2891 = vmatpush.bf16.msra.mxu3 %v4916_v30 }
 0x5a3   :  { %3006 = vmax.xlane.f32.xlu0 %v3005_v18  ;;  %v4969_v18 = vld [vmem:[%s8053_s2 + $0x120] sm:$0xf] }
 0x5a4   :  { %v4970_v32 = vor.u32 %v5396_v37, %v4969_v18  ;;  %v2622_v37 = vadd.f32 %v7446_v36, %v7428_v20 }
 0x5a6   :  { %3187 = vmatpush.bf16.msrb.mxu0 %v4970_v32 }
 0x5f7   :  { %v2760_v54 = vpop.f32.mrf.mxu0 }
 0x5ff   :  { %v2762_v24 = vpop.f32.mrf.mxu0 }
 0x600   :  { %v2793_v44 = vpack.c.bf16 %v2762_v24, %v2760_v54  ;;  %v3249_v24 = vrot.slane %v7107_v8, 4 }
 0x602   :  { %4957 = vmatmul.msk.bf16.vlgmr.msra.gmra.mxu2 %vm2053_vm0, %v2793_v44  ;;  %4959 = vmatmul.msk.bf16.vlgmr.msra.gmra.mxu3 %vm2053_vm0, %v2793_v44 }
 0x603   :  { %4961 = vmatmul.msk.bf16.vlgmr.msra.gmra.mxu0 %vm2053_vm0, %v2793_v44 }
 0x604   :  { %3374 = vmatpush.bf16.msra.mxu0 %v7627_v15 }
 0x60e   :  { %v3004_v38 = vpop.xlane.xlu0 %3003 }
 0x60f   :  { %v3010_v14 = vsub.f32 %v2992_v13, %v3004_v38 }
 0x611   :  { %v3016_v16 = vmul.f32 1.442695, %v3010_v14  ;;  %v3278_v14 = vrot.slane %v7212_v6, 4 }
 0x612   :  { %4958 = vmatmul.msk.bf16.gmra.mxu2 %vm2053_vm0, %v7512_v12  ;;  %4960 = vmatmul.msk.bf16.gmra.mxu3 %vm2053_vm0, %v7512_v12 }
 0x613   :  { %5492 = vpow2.f32 %v3016_v16  ;;  %4962 = vmatmul.msk.bf16.gmra.mxu0 %vm2053_vm0, %v7512_v12  ;;  %v7647_v12 = vadd.f32 %v7558_v61, %v7157_v40 }
 0x616   :  { %v3007_v21 = vpop.xlane.xlu0 %3006 }
 0x617   :  { %v3011_v62 = vsub.f32 %v7563_v59, %v3007_v21  ;;  %v2999_v59 = vsel %vm2106_vm2, %v7647_v12, -inf  ;;  %v3255_v21 = vunpack.c.l.b16 %v3250_v41 }
 0x619   :  { %v5493_v56 = vpop.eup %5492  ;;  %v3018_v49 = vmul.f32 1.442695, %v3011_v62 }
 0x61a   :  { %v3026_v10 = vsel %vm2106_vm2, %v5493_v56, 0.0 }
 0x61b   :  { %5494 = vpow2.f32 %v3018_v49  ;;  %3027 = vadd.xlane.f32.xlu0 %v3026_v10 }
 0x621   :  { %v5495_v13 = vpop.eup %5494 }
 0x622   :  { %v3029_v57 = vsel %vm2106_vm2, %v5495_v13, 0.0 }
 0x623   :  { %3030 = vadd.xlane.f32.xlu1 %v3029_v57 }
 0x62b   :  { %2997 = vmax.xlane.f32.xlu1 %v2996_v29  ;;  %v3254_v29 = vunpack.c.l.b16 %v3249_v24 }
 0x62f   :  { %3076 = vrot.lane.b32.xlu0 %v7130_v2, %s5566_s29 }
 0x633   :  { %3000 = vmax.xlane.f32.xlu1 %v2999_v59 }
 0x680   :  { %v2912_v4 = vpop.f32.mrf.mxu0 }
 0x681   :  { %v7658_v9 = vadd.f32 %v2912_v4, %v7444_v7  ;;  %v3283_v4 = vunpack.c.l.b16 %v3278_v14 }
 0x685   :  { %v2874_v61 = vpop.f32.mrf.mxu2  ;;  %v2893_v30 = vpop.f32.mrf.mxu3 }
 0x686   :  { %v7662_v18 = vadd.f32 %v2874_v61, %v2582_v46  ;;  %v7665_v2 = vadd.f32 %v2893_v30, %v7442_v1  ;;  %v2587_v1 = vadd.f32 %v7414_v5, %v7432_v47 }
 0x688   :  { %v2914_v32 = vpop.f32.mrf.mxu0 }
 0x689   :  { %v7669_v25 = vadd.f32 %v2914_v32, %v2622_v37 }
 0x68d   :  { %v7671_v39 = vpop.f32.mrf.mxu2  ;;  %v2895_v7 = vpop.f32.mrf.mxu3 }
 0x68e   :  { %v7674_v45 = vadd.f32 %v2895_v7, %v7448_v42  ;;  %v3028_v58 = vpop.xlane.xlu0 %3027 }
 0x68f   :  { %5496 = vrcp.f32 %v3028_v58 }
 0x690   :  { %v2917_v50 = vpop.f32.mrf.mxu0 }
 0x691   :  { %v7677_v17 = vadd.f32 %v2917_v50, %v7452_v28  ;;  %v3079_v28 = vpop.permute.xlu2 %3078 }
 0x692   :  { %v3081_v16 = vrot.slane %v3079_v28, 4 }
 0x694   :  { %v3088_v46 = vunpack.c.l.b16 %v3081_v16 }
 0x695   :  { %v2879_v54 = vpop.f32.mrf.mxu2  ;;  %v2898_v22 = vpop.f32.mrf.mxu3 }
 0x696   :  { %v7681_v20 = vadd.f32 %v2879_v54, %v2587_v1  ;;  %v7684_v36 = vadd.f32 %v2898_v22, %v7450_v0  ;;  %v3031_v63 = vpop.xlane.xlu1 %3030  ;;  %v5497_v42 = vpop.eup %5496  ;;  %v3277_v0 = vrot.slane %v7113_v3, 4 }
 0x697   :  { %5498 = vrcp.f32 %v3031_v63  ;;  %v3038_v5 = vmul.f32 %v5497_v42, %v5493_v56 }
 0x698   :  { %v3282_v56 = vunpack.c.l.b16 %v3277_v0 }
 0x699   :  { %v3042_v59 = vpack.c.bf16 %v3038_v5, %v3038_v5  ;;  %v3045_v16 = vpop.permute.xlu2 %3044 }
 0x69a   :  { %v3284_v50 = vpack.c.b16 %v3283_v4, %v3282_v56  ;;  %v3048_v0 = vrot.slane %v3045_v16, 4 }
 0x69b   :  { %v3084_v32 = vunpack.c.l.b16 %v3042_v59 }
 0x69c   :  { %v3289_v42 = vsel %vm2053_vm0, %v3284_v50, 0 }
 0x69d   :  { %v5499_v33 = vpop.eup %5498 }
 0x69e   :  { %v3039_v44 = vmul.f32 %v5499_v33, %v5495_v13  ;;  %v2998_v38 = vpop.xlane.xlu1 %2997  ;;  %v3256_v13 = vpack.c.b16 %v3255_v21, %v3254_v29  ;;  %v7704_v33 = vpop.f32.mrf.mxu3  ;;  %v3055_v29 = vunpack.c.l.b16 %v3048_v0 }
 0x69f   :  { %v3008_v47 = vsub.f32 %v2961_v31, %v2998_v38 }
 0x6a0   :  { %v3043_v62 = vpack.c.bf16 %v3039_v44, %v3039_v44  ;;  %v3261_v58 = vsel %vm2053_vm0, %v3256_v13, 0 }
 0x6a1   :  { %v3012_v49 = vmul.f32 1.442695, %v3008_v47  ;;  %v3077_v10 = vpop.permute.xlu0 %3076 }
 0x6a2   :  { %v3080_v57 = vrot.slane %v3077_v10, 4  ;;  %v3085_v30 = vunpack.c.l.b16 %v3043_v62 }
 0x6a3   :  { %5500 = vpow2.f32 %v3012_v49 }
 0x6a4   :  { %v3087_v61 = vunpack.c.l.b16 %v3080_v57  ;;  %v3086_v54 = vpack.c.b16 %v3085_v30, %v3084_v32 }
 0x6a6   :  { %v3089_v31 = vpack.c.b16 %v3088_v46, %v3087_v61  ;;  %v3001_v37 = vpop.xlane.xlu1 %3000 }
 0x6a7   :  { %v3009_v7 = vsub.f32 %v7647_v12, %v3001_v37 }
 0x6a8   :  { %3101 = vmatpush.bf16.msrb.mxu3 %v3089_v31 }
 0x6a9   :  { %v5501_v1 = vpop.eup %5500  ;;  %v3014_v22 = vmul.f32 1.442695, %v3009_v7 }
 0x6aa   :  { %v3020_v63 = vsel %vm2106_vm2, %v5501_v1, 0.0 }
 0x6ab   :  { %5502 = vpow2.f32 %v3014_v22  ;;  %3021 = vadd.xlane.f32.xlu0 %v3020_v63  ;;  %4966 = vmatmul.msk.bf16.vlgmr.msrb.gmra.mxu3 %vm2106_vm2, %v3086_v54  ;;  %v5013_v54 = vld [vmem:[%s8053_s2 + $0x170] sm:$0xf]  ;;  %v4989_v63 = vld [vmem:[%s8053_s2 + $0x140] sm:$0xf] }
 0x6ac   :  { %3270 = vmatpush.bf16.xpose.msra.mxu3 %v3261_v58 }
 0x6b1   :  { %v5503_v41 = vpop.eup %5502 }
 0x6b2   :  { %v3023_v12 = vsel %vm2106_vm2, %v5503_v41, 0.0 }
 0x6b3   :  { %3024 = vadd.xlane.f32.xlu1 %v3023_v12  ;;  %v4977_v12 = vld [vmem:[%s8053_s2 + $0x128] sm:$0xf] }
 0x6b4   :  { %3298 = vmatpush.bf16.xpose.msrb.mxu3 %v3289_v42  ;;  %v5400_v42 = vld [vmem:[%s8053_s2 + $0x148] sm:$0xf0] }
 0x6bb   :  { %5021 = vmatmul.msk.bf16.vlgmr.msra.gmra.mxu3 %vm2053_vm0, %v7079_v53 }
 0x6bf   :  { %3552 = vrot.lane.b32.xlu0 %v7196_v23, %s5566_s29 }
 0x6cb   :  { %5022 = vmatmul.msk.bf16.vlgmr.msrb.gmra.mxu3 %vm2053_vm0, %v7086_v27 }
 0x6cc   :  { %3046 = vrot.lane.b32.xlu1 %v7121_v43, %s5566_s29 }
 0x71e   :  { %v3022_v44 = vpop.xlane.xlu0 %3021 }
 0x726   :  { %v3025_v28 = vpop.xlane.xlu1 %3024 }
 0x727   :  { %5504 = vrcp.f32 %v3025_v28  ;;  %v5397_v28 = vld [vmem:[%s8053_s2 + $0x130] sm:$0xf0] }
 0x728   :  { %5506 = vrcp.f32 %v3022_v44  ;;  %v7749_v44 = vpop.f32.mrf.mxu2 }
 0x72d   :  { %v5505_v5 = vpop.eup %5504 }
 0x72e   :  { %v3103_v24 = vpop.f32.mrf.mxu3  ;;  %v5507_v14 = vpop.eup %5506  ;;  %v3037_v23 = vmul.f32 %v5505_v5, %v5503_v41  ;;  %v4990_v41 = vor.u32 %v5400_v42, %v4989_v63 }
 0x72f   :  { %v3036_v21 = vmul.f32 %v5507_v14, %v5501_v1 }
 0x730   :  { %v3041_v62 = vpack.c.bf16 %v3037_v23, %v3037_v23 }
 0x731   :  { %v3040_v57 = vpack.c.bf16 %v3036_v21, %v3036_v21  ;;  %v3553_v16 = vpop.permute.xlu0 %3552 }
 0x732   :  { %v3053_v4 = vunpack.c.l.b16 %v3041_v62  ;;  %v3555_v21 = vrot.slane %v3553_v16, 4 }
 0x733   :  { %v3052_v61 = vunpack.c.l.b16 %v3040_v57 }
 0x735   :  { %v3054_v13 = vpack.c.b16 %v3053_v4, %v3052_v61 }
 0x736   :  { %v3105_v38 = vpop.f32.mrf.mxu3 }
 0x737   :  { %v7706_v47 = vpack.c.bf16 %v3105_v38, %v3103_v24  ;;  %v4978_v24 = vor.u32 %v5397_v28, %v4977_v12 }
 0x73e   :  { %v3047_v49 = vpop.permute.xlu1 %3046  ;;  %v7708_v10 = vpop.f32.mrf.mxu3 }
 0x73f   :  { %v3049_v43 = vrot.slane %v3047_v49, 4 }
 0x741   :  { %v3056_v59 = vunpack.c.l.b16 %v3049_v43 }
 0x743   :  { %v3057_v46 = vpack.c.b16 %v3056_v59, %v3055_v29  ;;  %v3559_v29 = vunpack.c.l.b16 %v3555_v21 }
 0x745   :  { %3069 = vmatpush.bf16.msrb.mxu2 %v3057_v46 }
 0x746   :  { %v3274_v30 = vpop.f32.mrf.mxu3 }
 0x747   :  { %v3275_v58 = vadd.f32 %v3274_v30, %v7157_v40 }
 0x748   :  { %4965 = vmatmul.msk.bf16.vlgmr.msrb.gmra.mxu2 %vm2106_vm2, %v3054_v13 }
 0x749   :  { %v3308_v1 = vsel %vm2106_vm2, %v3275_v58, -inf }
 0x74e   :  { %v3300_v56 = vpop.f32.mrf.mxu3 }
 0x74f   :  { %v3301_v31 = vadd.f32 %v3300_v56, %v7152_v11 }
 0x751   :  { %v3311_v37 = vsel %vm2106_vm2, %v3301_v31, -inf }
 0x752   :  { %3312 = vmax.xlane.f32.xlu2 %v3311_v37 }
 0x756   :  { %v3302_v32 = vpop.f32.mrf.mxu3 }
 0x757   :  { %v3303_v7 = vadd.f32 %v3302_v32, %v7157_v40 }
 0x759   :  { %v3314_v50 = vsel %vm2106_vm2, %v3303_v7, -inf }
 0x75a   :  { %3315 = vmax.xlane.f32.xlu1 %v3314_v50 }
 0x76a   :  { %3550 = vrot.lane.b32.xlu2 %v7107_v8, %s5566_s29  ;;  %v5406_v8 = vld [vmem:[%s8053_s2 + $0x178] sm:$0xf0] }
 0x772   :  { %3583 = vrot.lane.b32.xlu2 %v7212_v6, %s5566_s29  ;;  %v5014_v6 = vor.u32 %v5406_v8, %v5013_v54  ;;  %v3273_v54 = vadd.f32 %v7708_v10, %v7152_v11 }
 0x773   :  { %3556 = vrot.lane.b32.xlu1 %v7079_v53, %s5566_s29  ;;  %v5001_v53 = vld [vmem:[%s8053_s2 + $0x158] sm:$0xf] }
 0x774   :  { %3222 = vmatpush.bf16.msra.mxu2 %v5014_v6  ;;  %v3305_v8 = vsel %vm2106_vm2, %v3273_v54, -inf }
 0x77b   :  { %3587 = vrot.lane.b32.xlu1 %v7086_v27, %s5566_s29  ;;  %v5403_v27 = vld [vmem:[%s8053_s2 + $0x160] sm:$0xf0] }
 0x77c   :  { %v5002_v22 = vor.u32 %v5403_v27, %v5001_v53 }
 0x77e   :  { %3223 = vmatpush.bf16.msra.mxu2 %v5002_v22 }
 0x782   :  { %3224 = vmatpush.bf16.msra.mxu2 %v4990_v41 }
 0x786   :  { %3225 = vmatpush.bf16.msra.mxu2 %v4978_v24 }
 0x79b   :  { %3309 = vmax.xlane.f32.xlu2 %v3308_v1 }
 0x7c5   :  { %v3313_v38 = vpop.xlane.xlu2 %3312 }
 0x7c6   :  { %v3319_v5 = vsub.f32 %v3301_v31, %v3313_v38 }
 0x7c8   :  { %v3325_v14 = vmul.f32 1.442695, %v3319_v5  ;;  %v2584_v5 = vadd.f32 %v7407_v60, %v7430_v19 }
 0x7ca   :  { %5508 = vpow2.f32 %v3325_v14 }
 0x7cb   :  { %v3071_v23 = vpop.f32.mrf.mxu2 }
 0x7cd   :  { %v3316_v0 = vpop.xlane.xlu1 %3315  ;;  %v3551_v62 = vpop.permute.xlu2 %3550 }
 0x7ce   :  { %v3320_v49 = vsub.f32 %v3303_v7, %v3316_v0  ;;  %v3554_v43 = vrot.slane %v3551_v62, 4 }
 0x7d0   :  { %v5509_v57 = vpop.eup %5508  ;;  %v3327_v59 = vmul.f32 1.442695, %v3320_v49  ;;  %v3558_v4 = vunpack.c.l.b16 %v3554_v43 }
 0x7d1   :  { %v3335_v46 = vsel %vm2106_vm2, %v5509_v57, 0.0 }
 0x7d2   :  { %5510 = vpow2.f32 %v3327_v59  ;;  %v3560_v61 = vpack.c.b16 %v3559_v29, %v3558_v4  ;;  %3336 = vadd.xlane.f32.xlu0 %v3335_v46 }
 0x7d3   :  { %v3073_v13 = vpop.f32.mrf.mxu2 }
 0x7d4   :  { %v3108_v30 = vpack.c.bf16 %v3073_v13, %v3071_v23  ;;  %v3565_v56 = vsel %vm2053_vm0, %v3560_v61, 0  ;;  %v2925_v23 = vadd.f32 %v7671_v39, %v2584_v5 }
 0x7d5   :  { %v3584_v32 = vpop.permute.xlu2 %3583 }
 0x7d6   :  { %5015 = vmatmul.msk.bf16.vlgmr.msrb.gmra.mxu0 %vm2053_vm0, %v3108_v30  ;;  %5017 = vmatmul.msk.bf16.vlgmr.msra.gmra.mxu1 %vm2053_vm0, %v3108_v30 }
 0x7d7   :  { %5019 = vmatmul.msk.bf16.vlgmr.msra.gmra.mxu2 %vm2053_vm0, %v3108_v30  ;;  %3574 = vmatpush.bf16.xpose.msra.mxu1 %v3565_v56 }
 0x7d8   :  { %v5511_v31 = vpop.eup %5510 }
 0x7d9   :  { %v3338_v37 = vsel %vm2106_vm2, %v5511_v31, 0.0 }
 0x7da   :  { %3339 = vadd.xlane.f32.xlu0 %v3338_v37 }
 0x7e5   :  { %v3557_v37 = vpop.permute.xlu1 %3556 }
 0x7e6   :  { %5016 = vmatmul.msk.bf16.gmra.mxu0 %vm2053_vm0, %v7706_v47  ;;  %5018 = vmatmul.msk.bf16.gmra.mxu1 %vm2053_vm0, %v7706_v47 }
 0x7e7   :  { %5020 = vmatmul.msk.bf16.gmra.mxu2 %vm2053_vm0, %v7706_v47 }
 0x7ee   :  { %3581 = vrot.lane.b32.xlu0 %v7113_v3, %s5566_s29  ;;  %v7772_v3 = vpop.f32.mrf.mxu0 }
 0x80e   :  { %v3310_v7 = vpop.xlane.xlu2 %3309 }
 0x80f   :  { %v3318_v50 = vsub.f32 %v3275_v58, %v3310_v7 }
 0x811   :  { %v3323_v1 = vmul.f32 1.442695, %v3318_v50 }
 0x813   :  { %5512 = vpow2.f32 %v3323_v1 }
 0x818   :  { %3306 = vmax.xlane.f32.xlu0 %v3305_v8 }
 0x819   :  { %v7768_v6 = vpop.eup %5512 }
 0x81a   :  { %v3332_v53 = vsel %vm2106_vm2, %v7768_v6, 0.0 }
 0x820   :  { %3333 = vadd.xlane.f32.xlu0 %v3332_v53 }
 0x845   :  { %v3337_v47 = vpop.xlane.xlu0 %3336 }
 0x846   :  { %5514 = vrcp.f32 %v3337_v47 }
 0x84c   :  { %v5515_v58 = vpop.eup %5514 }
 0x84d   :  { %v3340_v27 = vpop.xlane.xlu0 %3339  ;;  %v3347_v22 = vmul.f32 %v5515_v58, %v5509_v57  ;;  %v3586_v57 = vrot.slane %v3584_v32, 4 }
 0x84e   :  { %5516 = vrcp.f32 %v3340_v27 }
 0x84f   :  { %v3351_v28 = vpack.c.bf16 %v3347_v22, %v3347_v22  ;;  %v3590_v59 = vunpack.c.l.b16 %v3586_v57 }
 0x851   :  { %v3383_v14 = vunpack.c.l.b16 %v3351_v28 }
 0x853   :  { %v3189_v63 = vpop.f32.mrf.mxu0  ;;  %v3208_v10 = vpop.f32.mrf.mxu1 }
 0x854   :  { %v5517_v42 = vpop.eup %5516  ;;  %v7775_v41 = vadd.f32 %v3189_v63, %v7662_v18  ;;  %v7778_v12 = vadd.f32 %v3208_v10, %v7665_v2 }
 0x855   :  { %v3348_v24 = vmul.f32 %v5517_v42, %v5511_v31 }
 0x857   :  { %v3352_v38 = vpack.c.bf16 %v3348_v24, %v3348_v24 }
 0x859   :  { %v3384_v16 = vunpack.c.l.b16 %v3352_v38 }
 0x85a   :  { %v3227_v21 = vpop.f32.mrf.mxu2 }
 0x85b   :  { %v3385_v0 = vpack.c.b16 %v3384_v16, %v3383_v14  ;;  %v7784_v62 = vadd.f32 %v3227_v21, %v7658_v9  ;;  %v3191_v18 = vpop.f32.mrf.mxu0  ;;  %v3210_v49 = vpop.f32.mrf.mxu1 }
 0x85c   :  { %v7786_v43 = vadd.f32 %v3191_v18, %v2925_v23  ;;  %v7789_v2 = vadd.f32 %v3210_v49, %v7674_v45 }
 0x85d   :  { %5024 = vmatmul.msk.bf16.vlgmr.msrb.gmra.mxu1 %vm2106_vm2, %v3385_v0 }
 0x860   :  { %v3582_v60 = vpop.permute.xlu0 %3581 }
 0x861   :  { %v3585_v19 = vrot.slane %v3582_v60, 4 }
 0x862   :  { %v3229_v29 = vpop.f32.mrf.mxu2 }
 0x863   :  { %v3589_v39 = vunpack.c.l.b16 %v3585_v19  ;;  %v7793_v4 = vadd.f32 %v3229_v29, %v7669_v25  ;;  %v3194_v9 = vpop.f32.mrf.mxu0  ;;  %v3213_v46 = vpop.f32.mrf.mxu1  ;;  %v5051_v29 = vld [vmem:[%s8053_s2 + $0x1b0] sm:$0xf] }
 0x864   :  { %v7796_v61 = vadd.f32 %v3194_v9, %v7681_v20  ;;  %v7799_v13 = vadd.f32 %v3213_v46, %v7684_v36  ;;  %v3588_v25 = vpop.permute.xlu1 %3587 }
 0x865   :  { %v3591_v45 = vpack.c.b16 %v3590_v59, %v3589_v39  ;;  %v5414_v39 = vld [vmem:[%s8053_s2 + $0x1b8] sm:$0xf0] }
 0x866   :  { %v5052_v9 = vor.u32 %v5414_v39, %v5051_v29 }
 0x867   :  { %v3596_v30 = vsel %vm2053_vm0, %v3591_v45, 0 }
 0x868   :  { %3605 = vmatpush.bf16.xpose.msrb.mxu1 %v3596_v30  ;;  %v5039_v30 = vld [vmem:[%s8053_s2 + $0x198] sm:$0xf] }
 0x86a   :  { %v3232_v56 = vpop.f32.mrf.mxu2 }
 0x86b   :  { %v7803_v31 = vadd.f32 %v3232_v56, %v7677_v17  ;;  %v7808_v1 = vpop.f32.mrf.mxu1  ;;  %v5411_v56 = vld [vmem:[%s8053_s2 + $0x1a0] sm:$0xf0] }
 0x86d   :  { %5079 = vmatmul.msk.bf16.vlgmr.msra.gmra.mxu1 %vm2053_vm0, %v3557_v37  ;;  %v5027_v37 = vld [vmem:[%s8053_s2 + $0x180] sm:$0xf] }
 0x87d   :  { %5080 = vmatmul.msk.bf16.vlgmr.msrb.gmra.mxu1 %vm2053_vm0, %v3588_v25  ;;  %v5040_v25 = vor.u32 %v5411_v56, %v5039_v30  ;;  %v5409_v30 = vld [vmem:[%s8053_s2 + $0x190] sm:$0xf0] }
 0x88b   :  { %v3307_v32 = vpop.xlane.xlu0 %3306 }
 0x88c   :  { %v3317_v20 = vsub.f32 %v3273_v54, %v3307_v32  ;;  %v5408_v32 = vld [vmem:[%s8053_s2 + $0x188] sm:$0xf0] }
 0x88e   :  { %v3321_v7 = vmul.f32 1.442695, %v3317_v20 }
 0x890   :  { %5518 = vpow2.f32 %v3321_v7  ;;  %v5028_v7 = vor.u32 %v5408_v32, %v5027_v37 }
 0x893   :  { %v3334_v38 = vpop.xlane.xlu0 %3333 }
 0x894   :  { %5520 = vrcp.f32 %v3334_v38 }
 0x896   :  { %v5519_v36 = vpop.eup %5518 }
 0x897   :  { %v3329_v50 = vsel %vm2106_vm2, %v5519_v36, 0.0 }
 0x898   :  { %3330 = vadd.xlane.f32.xlu1 %v3329_v50 }
 0x89a   :  { %v5521_v23 = vpop.eup %5520 }
 0x89b   :  { %v3346_v21 = vmul.f32 %v5521_v23, %v7768_v6  ;;  %v5417_v6 = vld [vmem:[%s8053_s2 + $0x1d0] sm:$0xf0]  ;;  %v5053_v23 = vld [vmem:[%s8053_s2 + $0x1bc] sm:$0xf0] }
 0x8da   :  { %v3404_v8 = vpop.f32.mrf.mxu1 }
 0x8e2   :  { %v3406_v53 = vpop.f32.mrf.mxu1 }
 0x8e3   :  { %v7810_v17 = vpack.c.bf16 %v3406_v53, %v3404_v8 }
 0x8ea   :  { %v3576_v47 = vpop.f32.mrf.mxu1 }
 0x8eb   :  { %v3577_v27 = vadd.f32 %v3576_v47, %v7152_v11  ;;  %v5416_v47 = vld [vmem:[%s8053_s2 + $0x1cc] sm:$0xf] }
 0x8ed   :  { %v3612_v58 = vsel %vm2106_vm2, %v3577_v27, -inf }
 0x8ee   :  { %3613 = vmax.xlane.f32.xlu2 %v3612_v58 }
 0x8f2   :  { %v3578_v22 = vpop.f32.mrf.mxu1 }
 0x8f3   :  { %v3579_v54 = vadd.f32 %v3578_v22, %v7157_v40  ;;  %v5071_v22 = vld [vmem:[%s8053_s2 + $0x1d0] sm:$0xf] }
 0x8f5   :  { %v3615_v63 = vsel %vm2106_vm2, %v3579_v54, -inf }
 0x8f6   :  { %3616 = vmax.xlane.f32.xlu0 %v3615_v63 }
 0x8fa   :  { %v3607_v10 = vpop.f32.mrf.mxu1 }
 0x8fb   :  { %v3608_v42 = vadd.f32 %v3607_v10, %v7152_v11  ;;  %v3350_v11 = vpack.c.bf16 %v3346_v21, %v3346_v21  ;;  %v5059_v21 = vld [vmem:[%s8053_s2 + $0x1b8] sm:$0xf] }
 0x8fd   :  { %v3618_v28 = vsel %vm2106_vm2, %v3608_v42, -inf  ;;  %v3356_v57 = vunpack.c.l.b16 %v3350_v11  ;;  %v5410_v11 = vld [vmem:[%s8053_s2 + $0x19c] sm:$0xf] }
 0x8fe   :  { %3619 = vmax.xlane.f32.xlu2 %v3618_v28 }
 0x902   :  { %v3609_v24 = vpop.f32.mrf.mxu1 }
 0x903   :  { %v7819_v5 = vadd.f32 %v3609_v24, %v7157_v40  ;;  %v5063_v40 = vld [vmem:[%s8053_s2 + $0x1c8] sm:$0xf] }
 0x904   :  { %v5064_v59 = vor.u32 %v5417_v6, %v5063_v40 }
 0x905   :  { %v3621_v14 = vsel %vm2106_vm2, %v7819_v5, -inf }
 0x906   :  { %3622 = vmax.xlane.f32.xlu0 %v3621_v14  ;;  %3485 = vmatpush.bf16.msrb.mxu2 %v5064_v59 }
 0x90a   :  { %3486 = vmatpush.bf16.msrb.mxu2 %v5052_v9  ;;  %v5407_v9 = vld [vmem:[%s8053_s2 + $0x184] sm:$0xf] }
 0x90b   :  { %v3331_v16 = vpop.xlane.xlu1 %3330 }
 0x90c   :  { %5522 = vrcp.f32 %v3331_v16  ;;  %v5413_v16 = vld [vmem:[%s8053_s2 + $0x1b4] sm:$0xf] }
 0x90e   :  { %3487 = vmatpush.bf16.msrb.mxu2 %v5040_v25 }
 0x912   :  { %v5523_v0 = vpop.eup %5522  ;;  %3488 = vmatpush.bf16.msrb.mxu2 %v5028_v7 }
 0x913   :  { %v3345_v18 = vmul.f32 %v5523_v0, %v5519_v36  ;;  %v5056_v0 = vor.u32 %v5413_v16, %v5053_v23 }
 0x915   :  { %v3349_v49 = vpack.c.bf16 %v3345_v18, %v3345_v18  ;;  %v5041_v18 = vld [vmem:[%s8053_s2 + $0x1a4] sm:$0xf0] }
 0x916   :  { %v5044_v6 = vor.u32 %v5410_v11, %v5041_v18 }
 0x917   :  { %v3355_v60 = vunpack.c.l.b16 %v3349_v49 }
 0x919   :  { %v3357_v19 = vpack.c.b16 %v3356_v57, %v3355_v60  ;;  %v5047_v60 = vld [vmem:[%s8053_s2 + $0x1a0] sm:$0xf] }
 0x91a   :  { %3665 = vrot.lane.b32.xlu0 %v7627_v15, %s5566_s29 }
 0x91b   :  { %5023 = vmatmul.msk.bf16.vlgmr.msra.gmra.mxu0 %vm2106_vm2, %v3357_v19  ;;  %v5412_v19 = vld [vmem:[%s8053_s2 + $0x1a8] sm:$0xf0] }
 0x91c   :  { %v5048_v29 = vor.u32 %v5412_v19, %v5047_v60  ;;  %v5121_v60 = vld [vmem:[%s8053_s2 + $0x228] sm:$0xf]  ;;  %v5429_v19 = vld [vmem:[%s8053_s2 + $0x230] sm:$0xf0] }
 0x961   :  { %v3614_v15 = vpop.xlane.xlu2 %3613 }
 0x962   :  { %v3624_v46 = vsub.f32 %v3577_v27, %v3614_v15  ;;  %v5065_v27 = vld [vmem:[%s8053_s2 + $0x1d4] sm:$0xf0] }
 0x963   :  { %v5068_v58 = vor.u32 %v5416_v47, %v5065_v27 }
 0x964   :  { %v3628_v45 = vmul.f32 1.442695, %v3624_v46  ;;  %v5035_v46 = vld [vmem:[%s8053_s2 + $0x188] sm:$0xf] }
 0x965   :  { %3504 = vmatpush.bf16.msra.mxu3 %v5068_v58  ;;  %v5036_v56 = vor.u32 %v5409_v30, %v5035_v46 }
 0x966   :  { %5524 = vpow2.f32 %v3628_v45 }
 0x969   :  { %v3617_v20 = vpop.xlane.xlu0 %3616  ;;  %3505 = vmatpush.bf16.msra.mxu3 %v5056_v0 }
 0x96a   :  { %v3625_v36 = vsub.f32 %v3579_v54, %v3617_v20  ;;  %v5418_v54 = vld [vmem:[%s8053_s2 + $0x1d8] sm:$0xf0]  ;;  %v7907_v20 = vpop.f32.mrf.mxu0 }
 0x96b   :  { %v5072_v63 = vor.u32 %v5418_v54, %v5071_v22 }
 0x96c   :  { %v7851_v50 = vpop.eup %5524  ;;  %v3630_v8 = vmul.f32 1.442695, %v3625_v36 }
 0x96d   :  { %v3636_v53 = vsel %vm2106_vm2, %v7851_v50, 0.0  ;;  %3523 = vmatpush.bf16.msrb.mxu0 %v5072_v63  ;;  %3506 = vmatpush.bf16.msra.mxu3 %v5044_v6  ;;  %v5122_v6 = vor.u32 %v5429_v19, %v5121_v60 }
 0x96e   :  { %5526 = vpow2.f32 %v3630_v8  ;;  %3637 = vadd.xlane.f32.xlu2 %v3636_v53 }
 0x971   :  { %v3620_v10 = vpop.xlane.xlu2 %3619 }
 0x972   :  { %v3626_v28 = vsub.f32 %v3608_v42, %v3620_v10  ;;  %v5415_v42 = vld [vmem:[%s8053_s2 + $0x1c0] sm:$0xf0] }
 0x973   :  { %v5060_v57 = vor.u32 %v5415_v42, %v5059_v21 }
 0x974   :  { %v5527_v24 = vpop.eup %5526  ;;  %v3632_v38 = vmul.f32 1.442695, %v3626_v28 }
 0x975   :  { %v3639_v14 = vsel %vm2106_vm2, %v5527_v24, 0.0  ;;  %3524 = vmatpush.bf16.msrb.mxu0 %v5060_v57  ;;  %v7923_v57 = vpop.f32.mrf.mxu2 }
 0x976   :  { %5528 = vpow2.f32 %v3632_v38  ;;  %3640 = vadd.xlane.f32.xlu1 %v3639_v14 }
 0x979   :  { %v3623_v49 = vpop.xlane.xlu0 %3622  ;;  %3525 = vmatpush.bf16.msrb.mxu0 %v5048_v29  ;;  %v5123_v29 = vld [vmem:[%s8053_s2 + $0x234] sm:$0xf0] }
 0x97a   :  { %v3627_v40 = vsub.f32 %v7819_v5, %v3623_v49  ;;  %v5029_v5 = vld [vmem:[%s8053_s2 + $0x18c] sm:$0xf0] }
 0x97b   :  { %v5032_v45 = vor.u32 %v5407_v9, %v5029_v5 }
 0x97c   :  { %v5529_v59 = vpop.eup %5528  ;;  %v3634_v39 = vmul.f32 1.442695, %v3627_v40  ;;  %v5428_v40 = vld [vmem:[%s8053_s2 + $0x22c] sm:$0xf] }
 0x97d   :  { %v3642_v15 = vsel %vm2106_vm2, %v5529_v59, 0.0  ;;  %3507 = vmatpush.bf16.msra.mxu3 %v5032_v45  ;;  %3526 = vmatpush.bf16.msrb.mxu0 %v5036_v56 }
 0x97e   :  { %5530 = vpow2.f32 %v3634_v39  ;;  %3643 = vadd.xlane.f32.xlu2 %v3642_v15  ;;  %v5430_v39 = vld [vmem:[%s8053_s2 + $0x238] sm:$0xf0]  ;;  %v5126_v15 = vor.u32 %v5428_v40, %v5123_v29 }
 0x980   :  { %3805 = vmatpush.bf16.msra.mxu1 %v5126_v15 }
 0x981   :  { %3786 = vmatpush.bf16.msra.mxu0 %v5122_v6 }
 0x984   :  { %v5531_v37 = vpop.eup %5530 }
 0x985   :  { %v3645_v25 = vsel %vm2106_vm2, %v5531_v37, 0.0 }
 0x986   :  { %3646 = vadd.xlane.f32.xlu1 %v3645_v25 }
 0x98c   :  { %v3666_v32 = vpop.permute.xlu0 %3665 }
 0x98d   :  { %3678 = vmatpush.bf16.msra.mxu2 %v3666_v32 }
 0x996   :  { %3690 = vrot.lane.b32.xlu2 %v7506_v35, %s5566_s29 }
 0x998   :  { %v3376_v7 = vpop.f32.mrf.mxu0 }
 0x9a0   :  { %v3378_v36 = vpop.f32.mrf.mxu0 }
 0x9a1   :  { %v3409_v8 = vpack.c.bf16 %v3378_v36, %v3376_v7 }
 0x9a3   :  { %5073 = vmatmul.msk.bf16.vlgmr.msrb.gmra.mxu2 %vm2053_vm0, %v3409_v8  ;;  %5075 = vmatmul.msk.bf16.vlgmr.msra.gmra.mxu3 %vm2053_vm0, %v3409_v8 }
 0x9a4   :  { %5077 = vmatmul.msk.bf16.vlgmr.msrb.gmra.mxu0 %vm2053_vm0, %v3409_v8 }
 0x9b3   :  { %5074 = vmatmul.msk.bf16.gmra.mxu2 %vm2053_vm0, %v7810_v17  ;;  %5076 = vmatmul.msk.bf16.gmra.mxu3 %vm2053_vm0, %v7810_v17 }
 0x9b4   :  { %5078 = vmatmul.msk.bf16.gmra.mxu0 %vm2053_vm0, %v7810_v17 }
 0x9e1   :  { %v3638_v53 = vpop.xlane.xlu2 %3637 }
 0x9e2   :  { %5532 = vrcp.f32 %v3638_v53 }
 0x9e8   :  { %v5533_v47 = vpop.eup %5532 }
 0x9e9   :  { %v3641_v35 = vpop.xlane.xlu1 %3640  ;;  %v3652_v27 = vmul.f32 %v5533_v47, %v7851_v50 }
 0x9ea   :  { %5534 = vrcp.f32 %v3641_v35  ;;  %v5427_v35 = vld [vmem:[%s8053_s2 + $0x220] sm:$0xf0] }
 0x9eb   :  { %v3656_v22 = vpack.c.bf16 %v3652_v27, %v3652_v27 }
 0x9ed   :  { %v3662_v28 = vunpack.c.l.b16 %v3656_v22  ;;  %v5423_v22 = vld [vmem:[%s8053_s2 + $0x200] sm:$0xf0] }
 0x9f0   :  { %v5535_v58 = vpop.eup %5534 }
 0x9f1   :  { %v3653_v54 = vmul.f32 %v5535_v58, %v5527_v24  ;;  %v3644_v63 = vpop.xlane.xlu2 %3643  ;;  %v5097_v58 = vld [vmem:[%s8053_s2 + $0x1f8] sm:$0xf] }
 0x9f2   :  { %5536 = vrcp.f32 %v3644_v63  ;;  %v5098_v63 = vor.u32 %v5423_v22, %v5097_v58 }
 0x9f3   :  { %v3657_v10 = vpack.c.bf16 %v3653_v54, %v3653_v54  ;;  %v5422_v54 = vld [vmem:[%s8053_s2 + $0x1fc] sm:$0xf] }
 0x9f5   :  { %v3663_v38 = vunpack.c.l.b16 %v3657_v10  ;;  %v5099_v10 = vld [vmem:[%s8053_s2 + $0x204] sm:$0xf0] }
 0x9f7   :  { %v3664_v14 = vpack.c.b16 %v3663_v38, %v3662_v28  ;;  %v5105_v28 = vld [vmem:[%s8053_s2 + $0x200] sm:$0xf]  ;;  %v5424_v38 = vld [vmem:[%s8053_s2 + $0x208] sm:$0xf0] }
 0x9f8   :  { %v5537_v17 = vpop.eup %5536 }
 0x9f9   :  { %v3691_v16 = vpop.permute.xlu2 %3690  ;;  %v3647_v23 = vpop.xlane.xlu1 %3646  ;;  %5081 = vmatmul.msk.bf16.vlgmr.msra.gmra.mxu2 %vm2106_vm2, %v3664_v14  ;;  %v3654_v21 = vmul.f32 %v5537_v17, %v5529_v59  ;;  %v5129_v59 = vld [vmem:[%s8053_s2 + $0x230] sm:$0xf]  ;;  %v5102_v14 = vor.u32 %v5422_v54, %v5099_v10  ;;  %v5420_v17 = vld [vmem:[%s8053_s2 + $0x1e8] sm:$0xf0] }
 0x9fa   :  { %5538 = vrcp.f32 %v3647_v23  ;;  %3703 = vmatpush.bf16.msrb.mxu3 %v3691_v16  ;;  %v5130_v9 = vor.u32 %v5430_v39, %v5129_v59  ;;  %v5106_v16 = vor.u32 %v5424_v38, %v5105_v28  ;;  %v5085_v23 = vld [vmem:[%s8053_s2 + $0x1e0] sm:$0xf] }
 0x9fb   :  { %v3658_v42 = vpack.c.bf16 %v3654_v21, %v3654_v21  ;;  %v5419_v21 = vld [vmem:[%s8053_s2 + $0x1e4] sm:$0xf] }
 0x9fc   :  { %3824 = vmatpush.bf16.msrb.mxu2 %v5130_v9 }
 0x9fd   :  { %v3687_v18 = vunpack.c.l.b16 %v3658_v42  ;;  %v5087_v42 = vld [vmem:[%s8053_s2 + $0x1ec] sm:$0xf0] }
 0xa00   :  { %v5539_v0 = vpop.eup %5538 }
 0xa01   :  { %v3655_v50 = vmul.f32 %v5539_v0, %v5531_v37  ;;  %v5086_v0 = vor.u32 %v5420_v17, %v5085_v23  ;;  %v2589_v23 = vadd.f32 %v7416_v51, %v7436_v52 }
 0xa03   :  { %v3659_v11 = vpack.c.bf16 %v3655_v50, %v3655_v50  ;;  %v5093_v50 = vld [vmem:[%s8053_s2 + $0x1e8] sm:$0xf] }
 0xa05   :  { %v3688_v24 = vunpack.c.l.b16 %v3659_v11  ;;  %v5421_v11 = vld [vmem:[%s8053_s2 + $0x1f0] sm:$0xf0] }
 0xa07   :  { %v3689_v49 = vpack.c.b16 %v3688_v24, %v3687_v18  ;;  %v5090_v18 = vor.u32 %v5419_v21, %v5087_v42  ;;  %v5094_v24 = vor.u32 %v5421_v11, %v5093_v50 }
 0xa09   :  { %5082 = vmatmul.msk.bf16.vlgmr.msrb.gmra.mxu3 %vm2106_vm2, %v3689_v49 }
 0xa21   :  { %v3528_v15 = vpop.f32.mrf.mxu0 }
 0xa26   :  { %v3490_v5 = vpop.f32.mrf.mxu2  ;;  %v3509_v46 = vpop.f32.mrf.mxu3 }
 0xa27   :  { %v7944_v45 = vadd.f32 %v3490_v5, %v7775_v41  ;;  %v7947_v30 = vadd.f32 %v3509_v46, %v7778_v12  ;;  %v5109_v41 = vld [vmem:[%s8053_s2 + $0x210] sm:$0xf]  ;;  %v5426_v12 = vld [vmem:[%s8053_s2 + $0x218] sm:$0xf0] }
 0xa29   :  { %v3530_v9 = vpop.f32.mrf.mxu0 }
 0xa2e   :  { %v3492_v56 = vpop.f32.mrf.mxu2  ;;  %v3511_v37 = vpop.f32.mrf.mxu3 }
 0xa2f   :  { %v7950_v25 = vadd.f32 %v3492_v56, %v7786_v43  ;;  %v7953_v32 = vadd.f32 %v3511_v37, %v7789_v2  ;;  %v5425_v43 = vld [vmem:[%s8053_s2 + $0x214] sm:$0xf]  ;;  %v5110_v2 = vor.u32 %v5426_v12, %v5109_v41  ;;  %v3851_v56 = vld [vmem:[%s8054_s3] sm:$0x7]  ;;  %s5568_s3 = smov [#allocation2]  }
 0xa30   :  { %v3853_v37 = vperm.slane %v3851_v56, 0  ;;  %s3887_s11 = sshll.u32 %s5568_s3, 4  ;;  %s3888_s11 = int_to_ptr.vmem [resolvable:$true] %s3887_s11 }
 0xa31   :  { %3787 = vmatpush.bf16.msra.mxu0 %v5110_v2  ;;  %v3533_v5 = vpop.f32.mrf.mxu0 }
 0xa32   :  { %v3546_v51 = vadd.f32 %v3533_v5, %v7803_v31 }
 0xa35   :  { %3788 = vmatpush.bf16.msra.mxu0 %v5098_v63 }
 0xa36   :  { %v3495_v7 = vpop.f32.mrf.mxu2  ;;  %v3514_v36 = vpop.f32.mrf.mxu3 }
 0xa37   :  { %v7956_v8 = vadd.f32 %v3495_v7, %v7796_v61  ;;  %v7959_v53 = vadd.f32 %v3514_v36, %v7799_v13  ;;  %v5111_v61 = vld [vmem:[%s8053_s2 + $0x21c] sm:$0xf0]  ;;  %v5117_v13 = vld [vmem:[%s8053_s2 + $0x218] sm:$0xf]  ;;  %v3854_v7 = vperm.slane %v3851_v56, 1 }
 0xa38   :  { %v5114_v47 = vor.u32 %v5425_v43, %v5111_v61  ;;  %v5118_v27 = vor.u32 %v5427_v35, %v5117_v13  ;;  %v3540_v13 = vadd.f32 %v3528_v15, %v7784_v62  ;;  %v3855_v35 = vperm.slane %v3851_v56, 2 }
 0xa39   :  { %3789 = vmatpush.bf16.msra.mxu0 %v5086_v0  ;;  %v3535_v46 = vpop.f32.mrf.mxu0  ;;  %v2931_v0 = vadd.f32 %v7749_v44, %v2589_v23  ;;  %v2627_v44 = vadd.f32 %v7655_v48, %v7434_v55 }
 0xa3a   :  { %3806 = vmatpush.bf16.msra.mxu1 %v5114_v47  ;;  %3825 = vmatpush.bf16.msrb.mxu2 %v5118_v27 }
 0xa3b   :  { %v3246_v11 = vadd.f32 %v7907_v20, %v2931_v0  ;;  %v2933_v20 = vadd.f32 %v7772_v3, %v2627_v44 }
 0xa3d   :  { %v3248_v31 = vadd.f32 %v7923_v57, %v2933_v20 }
 0xa3e   :  { %3807 = vmatpush.bf16.msra.mxu1 %v5102_v14  ;;  %3826 = vmatpush.bf16.msrb.mxu2 %v5106_v16  ;;  %v8015_v49 = vpop.f32.mrf.mxu2  ;;  %v3516_v19 = vpop.f32.mrf.mxu3 }
 0xa3f   :  { %v3547_v52 = vadd.f32 %v8015_v49, %v3246_v11  ;;  %v3549_v49 = vadd.f32 %v3535_v46, %v3248_v31 }
 0xa42   :  { %3808 = vmatpush.bf16.msra.mxu1 %v5090_v18  ;;  %3827 = vmatpush.bf16.msrb.mxu2 %v5094_v24 }
 0xa7c   :  { %v3680_v60 = vpop.f32.mrf.mxu2 }
 0xa84   :  { %v3682_v40 = vpop.f32.mrf.mxu2 }
 0xa85   :  { %v3710_v6 = vpack.c.bf16 %v3682_v40, %v3680_v60 }
 0xa87   :  { %5131 = vmatmul.msk.bf16.vlgmr.msra.gmra.mxu0 %vm2053_vm0, %v3710_v6  ;;  %5133 = vmatmul.msk.bf16.vlgmr.msra.gmra.mxu1 %vm2053_vm0, %v3710_v6 }
 0xa88   :  { %5135 = vmatmul.msk.bf16.vlgmr.msrb.gmra.mxu2 %vm2053_vm0, %v3710_v6 }
 0xa8c   :  { %v3705_v29 = vpop.f32.mrf.mxu3 }
 0xa94   :  { %v3707_v59 = vpop.f32.mrf.mxu3 }
 0xa95   :  { %v3711_v39 = vpack.c.bf16 %v3707_v59, %v3705_v29 }
 0xa97   :  { %5132 = vmatmul.msk.bf16.gmra.mxu0 %vm2053_vm0, %v3711_v39  ;;  %5134 = vmatmul.msk.bf16.gmra.mxu1 %vm2053_vm0, %v3711_v39 }
 0xa98   :  { %5136 = vmatmul.msk.bf16.gmra.mxu2 %vm2053_vm0, %v3711_v39 }
 0xb04   :  { %v3791_v36 = vpop.f32.mrf.mxu0  ;;  %v3810_v41 = vpop.f32.mrf.mxu1 }
 0xb05   :  { %v3839_v12 = vadd.f32 %v3791_v36, %v7944_v45  ;;  %v3840_v43 = vadd.f32 %v3810_v41, %v7947_v30  ;;  %v3543_v30 = vadd.f32 %v3530_v9, %v7793_v4 }
 0xb07   :  { %v3859_v2 = vadd.f32 %v3853_v37, %v3839_v12  ;;  %v3860_v61 = vadd.f32 %v3854_v7, %v3840_v43 }
 0xb09   :  { %3871 = vst [vmem:[#allocation2] sm:$0xff] %v3859_v2 }
 0xb0a   :  { %3872 = vst [vmem:[#allocation2 + $0x8] sm:$0xff] %v3860_v61 }
 0xb0b   :  { %v3829_v47 = vpop.f32.mrf.mxu2 }
 0xb0c   :  { %v3841_v27 = vadd.f32 %v3829_v47, %v3540_v13  ;;  %v3793_v58 = vpop.f32.mrf.mxu0  ;;  %v3812_v22 = vpop.f32.mrf.mxu1 }
 0xb0d   :  { %v3842_v54 = vadd.f32 %v3793_v58, %v7950_v25  ;;  %v3843_v63 = vadd.f32 %v3812_v22, %v7953_v32  ;;  %v2608_v25 = vadd.f32 %v7653_v26, %v7438_v34 }
 0xb0e   :  { %v3861_v10 = vadd.f32 %v3855_v35, %v3841_v27 }
 0xb0f   :  { %v3862_v28 = vadd.f32 %v3853_v37, %v3842_v54  ;;  %v3863_v45 = vadd.f32 %v3854_v7, %v3843_v63  ;;  %v2932_v4 = vadd.f32 %v7704_v33, %v2608_v25 }
 0xb10   :  { %3873 = vst [vmem:[#allocation2 + $0x10] sm:$0xff] %v3861_v10 }
 0xb11   :  { %3874 = vst [vmem:[#allocation2 + $0x18] sm:$0xff] %v3862_v28  ;;  %v3247_v18 = vadd.f32 %v7808_v1, %v2932_v4 }
 0xb12   :  { %3875 = vst [vmem:[#allocation2 + $0x20] sm:$0xff] %v3863_v45 }
 0xb13   :  { %v3831_v38 = vpop.f32.mrf.mxu2  ;;  %v3548_v34 = vadd.f32 %v3516_v19, %v3247_v18 }
 0xb14   :  { %v3844_v62 = vadd.f32 %v3831_v38, %v3543_v30  ;;  %v3796_v14 = vpop.f32.mrf.mxu0  ;;  %v3815_v16 = vpop.f32.mrf.mxu1 }
 0xb15   :  { %v3845_v32 = vadd.f32 %v3796_v14, %v7956_v8  ;;  %v3846_v17 = vadd.f32 %v3815_v16, %v7959_v53 }
 0xb16   :  { %v3864_v21 = vadd.f32 %v3855_v35, %v3844_v62 }
 0xb17   :  { %v3865_v42 = vadd.f32 %v3853_v37, %v3845_v32  ;;  %v3866_v50 = vadd.f32 %v3854_v7, %v3846_v17 }
 0xb18   :  { %3876 = vst [vmem:[#allocation2 + $0x28] sm:$0xff] %v3864_v21 }
 0xb19   :  { %3877 = vst [vmem:[#allocation2 + $0x30] sm:$0xff] %v3865_v42 }
 0xb1a   :  { %3878 = vst [vmem:[#allocation2 + $0x38] sm:$0xff] %v3866_v50 }
 0xb1b   :  { %v3834_v26 = vpop.f32.mrf.mxu2 }
 0xb1c   :  { %v3847_v8 = vadd.f32 %v3834_v26, %v3546_v51  ;;  %v3798_v33 = vpop.f32.mrf.mxu0  ;;  %v3817_v53 = vpop.f32.mrf.mxu1 }
 0xb1d   :  { %v3848_v24 = vadd.f32 %v3798_v33, %v3547_v52  ;;  %v3849_v60 = vadd.f32 %v3817_v53, %v3548_v34 }
 0xb1e   :  { %v3867_v40 = vadd.f32 %v3855_v35, %v3847_v8 }
 0xb1f   :  { %v3868_v1 = vadd.f32 %v3853_v37, %v3848_v24  ;;  %v3869_v6 = vadd.f32 %v3854_v7, %v3849_v60 }
 0xb20   :  { %3879 = vst [vmem:[#allocation2 + $0x40] sm:$0xff] %v3867_v40 }
 0xb21   :  { %3880 = vst [vmem:[#allocation2 + $0x48] sm:$0xff] %v3868_v1 }
 0xb22   :  { %3881 = vst [vmem:[#allocation2 + $0x50] sm:$0xff] %v3869_v6 }
 0xb23   :  { %v3836_v55 = vpop.f32.mrf.mxu2 }
 0xb24   :  { %v3850_v48 = vadd.f32 %v3836_v55, %v3549_v49 }
 0xb26   :  { %v3870_v3 = vadd.f32 %v3855_v35, %v3850_v48 }
 0xb28   :  { %3882 = vst [vmem:[#allocation2 + $0x58] sm:$0xff] %v3870_v3 }
 0xb29   :  { %3895 = dma.vmem_to_hbm [thread:$0]  %s3888_s11, 1536, %s3890_s14, [#allocation3], %s5569_s15, %s5569_s15, %s5570_s16  }
 0xb2a   :  { %5564 = dma.done.wait [#allocation3], 1536  }
 0xb2b   :  { %5565 = vsyncadd [#allocation3], 4294965760 }
 0xb2c   :  { %3900 = vsyncpa [#allocation3], 1 }

</bundles_post_ra>
